<compile_context>
chip_gen: v7x
topology: tpu7x:2x2x1
jax: 0.10.0
libtpu: 0.0.40
codegen_flags: <defaults>
</compile_context>

<pallas_src>
import math
import functools

import jax
import jax.numpy as jnp
from jax.experimental import pallas as pl
from jax.experimental.pallas import tpu as pltpu

C = 1.0                      # Poincare ball curvature
MXU_DTYPE = jnp.bfloat16     # matmul operand dtype (f32 accumulation)


def _beta_fn(a, b):
    return math.exp(math.lgamma(a) + math.lgamma(b) - math.lgamma(a + b))


# ---------------- manifold ops (pure jnp; used inside Pallas kernels) --------
def _sumsq(x):
    return jnp.sum(x * x, axis=-1, keepdims=True)


def _artanh(x):
    x = jnp.clip(x, -1.0 + 1e-7, 1.0 - 1e-7)
    return 0.5 * jnp.log((1.0 + x) / (1.0 - x))


def _logmap0(x, sumsq=None):
    if sumsq is None:
        sumsq = _sumsq(x)
    ss = jnp.maximum(sumsq, 1e-30)
    inv_n = jax.lax.rsqrt(ss)
    n = ss * inv_n                      # = sqrt(sumsq)
    return _artanh(n) * inv_n * x


def _expmap0(v, sumsq=None):
    if sumsq is None:
        sumsq = _sumsq(v)
    ss = jnp.maximum(sumsq, 1e-30)
    inv_n = jax.lax.rsqrt(ss)
    n = ss * inv_n
    return jnp.tanh(n) * inv_n * v


def _mobius_add(x, y, x2=None):
    if x2 is None:
        x2 = _sumsq(x)
    y2 = _sumsq(y)
    xy = jnp.sum(x * y, axis=-1, keepdims=True)
    num = (1.0 + 2.0 * C * xy + C * y2) * x + (1.0 - C * x2) * y
    den = jnp.maximum(1.0 + 2.0 * C * xy + C * C * x2 * y2, 1e-15)
    # exact division (approx reciprocal error compounds across layers in
    # hyperbolic space -- per correctness review).
    return num / den


def _layernorm(t, eps=1e-6):
    mu = jnp.mean(t, axis=-1, keepdims=True)
    var = jnp.mean(jnp.square(t - mu), axis=-1, keepdims=True)
    return (t - mu) * jax.lax.rsqrt(var + eps)


# ---------------- fused transformer-layer kernel ------------------------------
def make_layer_kernel(num_heads, model_dim, add_pos, apply_outproj):
    H, D = num_heads, model_dim
    hd = D // H

    def layer_kernel(*refs):
        it = iter(refs)
        x_ref = next(it)                        # (1, S, D) f32
        mod_ref = next(it)                      # (1, 6, D) f32  (AdaLN, precomputed)
        pos_ref = next(it) if add_pos else None  # (S, D) f32
        w_qkv = next(it)                        # (D, 3D) bf16  [q|k|v], scale folded in q
        b_qkv = next(it)                        # (1, 3D) f32
        w_o = next(it)                          # (D, D) bf16
        b_o = next(it)                          # (1, D) f32
        w1 = next(it)                           # (D, 4D) bf16
        b1 = next(it)                           # (1, 4D) f32
        w2 = next(it)                           # (4D, D) bf16
        b2 = next(it)                           # (1, D) f32
        if apply_outproj:
            wop = next(it)                      # (D, D) bf16
            bop = next(it)                      # (1, D) f32
        o_ref = next(it)                        # (1, S, D) f32

        x = x_ref[0]                            # [S, D]
        if add_pos:
            # fused: x = mobius_add(x, pos_emb)
            x = _mobius_add(x, pos_ref[...])

        mod = mod_ref[0]                        # [6, D]
        shift_msa = mod[0:1, :]
        scale_msa = mod[1:2, :]
        gate_msa = mod[2:3, :]
        shift_mlp = mod[3:4, :]
        scale_mlp = mod[4:5, :]
        gate_mlp = mod[5:6, :]

        # ---------------- attention branch ----------------
        x_sq = _sumsq(x)                        # shared with the residual mobius_add
        xt = _logmap0(x, x_sq)
        # modulate(LayerNorm(logmap0(x))) IS the tangent of x_norm_poincare, so
        # expmap0 followed by PoincareLinear's logmap0 cancels exactly.
        xm = _layernorm(xt) * (1.0 + scale_msa) + shift_msa          # [S, D]

        # single lane-dense QKV projection (full-width MXU, no broadcast):
        qkv = jnp.dot(xm.astype(MXU_DTYPE), w_qkv[...],
                      preferred_element_type=jnp.float32) + b_qkv[...]   # [S, 3D]

        # per-head attention on static lane slices of the flat QKV result.
        # (score_scale already folded into the q columns of w_qkv / b_qkv;
        #  beta-split scale on v cancels with the beta-concat scale.)
        head_outs = []
        for h in range(H):
            q_h = qkv[:, h * hd:(h + 1) * hd]                   # [S, hd]
            k_h = qkv[:, D + h * hd:D + (h + 1) * hd]           # [S, hd]
            v_h = qkv[:, 2 * D + h * hd:2 * D + (h + 1) * hd]   # [S, hd]
            s = jax.lax.dot_general(
                q_h.astype(MXU_DTYPE), k_h.astype(MXU_DTYPE),
                (((1,), (1,)), ((), ())),
                preferred_element_type=jnp.float32)              # [S, S]
            m = jnp.max(s, axis=-1, keepdims=True)
            p = jnp.exp(s - m)
            l = jnp.sum(p, axis=-1, keepdims=True)               # [S, 1]
            o_h = jnp.dot(p.astype(MXU_DTYPE), v_h.astype(MXU_DTYPE),
                          preferred_element_type=jnp.float32)    # [S, hd]
            # deferred softmax normalization (S*hd work instead of S*S)
            head_outs.append(o_h * pl.reciprocal(l, approx=True))

        attn_cat = jnp.concatenate(head_outs, axis=-1)           # [S, D]

        # flat out-projection in tangent space: [S,D] @ [D,D]
        attn_t = jnp.dot(attn_cat.astype(MXU_DTYPE), w_o[...],
                         preferred_element_type=jnp.float32) + b_o[...]  # [S, D]

        x2 = _mobius_add(x, _expmap0(gate_msa * attn_t), x_sq)

        # ---------------- FFN branch ----------------
        x2_sq = _sumsq(x2)
        x2t = _logmap0(x2, x2_sq)
        xm2 = _layernorm(x2t) * (1.0 + scale_mlp) + shift_mlp
        h1 = jnp.dot(xm2.astype(MXU_DTYPE), w1[...],
                     preferred_element_type=jnp.float32) + b1[...]       # [S, 4D]
        ffn_t = jnp.dot(h1.astype(MXU_DTYPE), w2[...],
                        preferred_element_type=jnp.float32) + b2[...]    # [S, D]
        out = _mobius_add(x2, _expmap0(gate_mlp * ffn_t), x2_sq)

        if apply_outproj:
            # fused final output_projection (PoincareLinear)
            yt = jnp.dot(_logmap0(out).astype(MXU_DTYPE), wop[...],
                         preferred_element_type=jnp.float32) + bop[...]
            out = _expmap0(yt)

        o_ref[0] = out

    return layer_kernel


# ---------------- pallas_call wrapper -----------------------------------------
def _vmem_limit_bytes():
    # 3/4 of physical VMEM per TensorCore: ~48 MiB on v7x, ~96 MiB on v5e/v6e.
    try:
        cap = pltpu.get_tpu_info().vmem_capacity_bytes
        return int(min(cap * 3 // 4, 112 * 1024 * 1024))
    except Exception:  # pragma: no cover - fallback if query unavailable
        return 48 * 1024 * 1024


_COMP_CACHE = {}


def _compiler_params():
    if "cp" not in _COMP_CACHE:
        _COMP_CACHE["cp"] = pltpu.CompilerParams(
            dimension_semantics=("parallel",),       # shard batch across TCs (v7x)
            vmem_limit_bytes=_vmem_limit_bytes())
    return _COMP_CACHE["cp"]


def layer_call(x, mod3, weights, num_heads, pos=None, outproj=None):
    B, S, D = x.shape
    add_pos = pos is not None
    apply_outproj = outproj is not None
    kern = make_layer_kernel(num_heads, D, add_pos, apply_outproj)

    inputs = [x, mod3]
    in_specs = [pl.BlockSpec((1, S, D), lambda b: (b, 0, 0)),
                pl.BlockSpec((1, 6, D), lambda b: (b, 0, 0))]
    if add_pos:
        inputs.append(pos)
        in_specs.append(pl.BlockSpec((S, D), lambda b: (0, 0)))
    all_w = list(weights) + (list(outproj) if apply_outproj else [])
    for w in all_w:
        inputs.append(w)
        # constant block across the batch grid (all weights are 2-D).
        # TODO(synk): pipeline_mode=pl.Buffered(1) to single-buffer resident
        #             weights on v7x once validated on the target jax version.
        in_specs.append(pl.BlockSpec(w.shape, lambda b: (0, 0)))

    return pl.pallas_call(
        kern,
        out_shape=jax.ShapeDtypeStruct((B, S, D), jnp.float32),
        grid=(B,),
        in_specs=in_specs,
        out_specs=pl.BlockSpec((1, S, D), lambda b: (b, 0, 0)),
        compiler_params=_compiler_params(),
    )(*inputs)


# ---------------- host-side weight packing (done ONCE, outside forward) --------
def pack_layer(lp, H):
    D = lp["wq"].shape[0]
    hd = D // H
    # beta-split scale; split*concat == 1 on v, so only q carries the score scale.
    ratio_split = _beta_fn(hd / 2.0, 0.5) / _beta_fn(D / 2.0, 0.5)
    score_scale = (ratio_split * ratio_split) / math.sqrt(hd)
    # fold score_scale into q weights/bias at pack time (zero runtime cost)
    w_qkv = jnp.concatenate(
        [lp["wq"] * score_scale, lp["wk"], lp["wv"]], axis=1).astype(MXU_DTYPE)  # [D, 3D]
    b_qkv = jnp.concatenate(
        [lp["bq"] * score_scale, lp["bk"], lp["bv"]], axis=1)                    # [1, 3D]
    return (w_qkv, b_qkv,
            lp["wo"].astype(MXU_DTYPE), lp["bo"],
            lp["w1"].astype(MXU_DTYPE), lp["b1"],
            lp["w2"].astype(MXU_DTYPE), lp["b2"])


def prepack_params(params, num_heads):
    """Pre-pack all layer weights once (hoisted out of forward per review)."""
    return {
        "te_w1": params["te_w1"], "te_b1": params["te_b1"],
        "te_w2": params["te_w2"], "te_b2": params["te_b2"],
        "pos_table": params["pos_table"],
        "ada": [(lp["ada_w"], lp["ada_b"]) for lp in params["layers"]],
        "layers": [pack_layer(lp, num_heads) for lp in params["layers"]],
        "op": (params["op_w"].astype(MXU_DTYPE), params["op_b"]),
    }


# ---------------- parameters & full forward (glue in plain JAX) ----------------
def init_params(key, D, num_layers, max_seq_len, freq_dim=256, scale=0.02):
    keys = iter(jax.random.split(key, 8 + 28 * num_layers + 8))

    def lin(in_d, out_d):
        w = jax.random.normal(next(keys), (in_d, out_d), jnp.float32) * scale
        b = jax.random.normal(next(keys), (1, out_d), jnp.float32) * scale
        return w, b

    p = {}
    # TimestepEmbedder MLP (Euclidean): Linear(256->D), SiLU, Linear(D->D)
    p["te_w1"], p["te_b1"] = lin(freq_dim, D)
    p["te_w2"], p["te_b2"] = lin(D, D)
    # learned positional embedding table, padding_idx=0 row zeroed
    tbl = jax.random.normal(next(keys), (max_seq_len, D), jnp.float32) * scale
    p["pos_table"] = tbl.at[0].set(0.0)
    layers = []
    for _ in range(num_layers):
        lp = {}
        lp["ada_w"], lp["ada_b"] = lin(D, 6 * D)
        lp["wq"], lp["bq"] = lin(D, D)
        lp["wk"], lp["bk"] = lin(D, D)
        lp["wv"], lp["bv"] = lin(D, D)
        lp["wo"], lp["bo"] = lin(D, D)
        lp["w1"], lp["b1"] = lin(D, 4 * D)
        lp["w2"], lp["b2"] = lin(4 * D, D)
        layers.append(lp)
    p["layers"] = layers
    p["op_w"], p["op_b"] = lin(D, D)
    return p


def timestep_embedding(t, dim=256, max_period=10000.0):
    half = dim // 2
    freqs = jnp.exp(-math.log(max_period) *
                    jnp.arange(half, dtype=jnp.float32) / half)
    args = t[:, None].astype(jnp.float32) * freqs[None]
    return jnp.concatenate([jnp.cos(args), jnp.sin(args)], axis=-1)


def forward(packed, t, x, num_heads):
    """Full TimedPoincareTransformer forward on pre-packed params."""
    B, S, D = x.shape
    # TimestepEmbedder: tiny Euclidean MLP (glue, not the hot path)
    tf = timestep_embedding(t, 256)
    h = jax.nn.silu(tf @ packed["te_w1"] + packed["te_b1"])
    t_emb = h @ packed["te_w2"] + packed["te_b2"]                       # [B, D]

    pos = packed["pos_table"][:S]                                       # [S, D]
    n_layers = len(packed["layers"])

    # TODO(synk): hide layer i+1 weight DMA behind layer i compute (layer grid
    #             axis with a weight carry, or cross-call DMA futures).
    for i, (lw, (ada_w, ada_b)) in enumerate(zip(packed["layers"], packed["ada"])):
        # AdaLN modulation hoisted out of the kernel (M=1 matmul) -> [B, 6, D]
        mod3 = (t_emb @ ada_w + ada_b).reshape(B, 6, D)
        x = layer_call(
            x, mod3, lw, num_heads,
            pos=pos if i == 0 else None,                       # fuse positional add
            outproj=packed["op"] if i == n_layers - 1 else None)  # fuse output proj
    return x


if __name__ == "__main__":
    # small shapes consistent with the module: [batch, seq, model_dim]
    B, S, D = 2, 8, 32
    NUM_HEADS = 4
    NUM_LAYERS = 2
    MAX_SEQ_LEN = 16

    key = jax.random.PRNGKey(0)
    k_x, k_t, k_p = jax.random.split(key, 3)

    # input points well inside the Poincare ball
    x = jax.random.normal(k_x, (B, S, D), jnp.float32) * 0.05
    t = jax.random.uniform(k_t, (B,), jnp.float32) * 1000.0

    params = init_params(k_p, D, NUM_LAYERS, MAX_SEQ_LEN)
    packed = prepack_params(params, NUM_HEADS)          # pack weights ONCE
    packed = jax.tree_util.tree_map(jnp.asarray, packed)

    fwd = jax.jit(functools.partial(forward, num_heads=NUM_HEADS))
    out = fwd(packed, t, x)
    out = jax.block_until_ready(out)
    assert out.shape == (B, S, D)
    assert bool(jnp.all(jnp.isfinite(out)))
    print("KERNEL_OK")
</pallas_src>

<mosaic_0001>
module attributes {stable_mosaic.version = 11 : i64} {
  func.func @layer_kernel(%arg0: i32, %arg1: memref<1x8x32xf32, #tpu.memory_space<vmem>>, %arg2: memref<1x6x32xf32, #tpu.memory_space<vmem>>, %arg3: memref<8x32xf32, #tpu.memory_space<vmem>>, %arg4: memref<32x96xbf16, #tpu.memory_space<vmem>>, %arg5: memref<1x96xf32, #tpu.memory_space<vmem>>, %arg6: memref<32x32xbf16, #tpu.memory_space<vmem>>, %arg7: memref<1x32xf32, #tpu.memory_space<vmem>>, %arg8: memref<32x128xbf16, #tpu.memory_space<vmem>>, %arg9: memref<1x128xf32, #tpu.memory_space<vmem>>, %arg10: memref<128x32xbf16, #tpu.memory_space<vmem>>, %arg11: memref<1x32xf32, #tpu.memory_space<vmem>>, %arg12: memref<1x8x32xf32, #tpu.memory_space<vmem>>) attributes {dimension_semantics = [#tpu.dimension_semantics<parallel>], iteration_bounds = array<i64: 2>, scalar_prefetch = 0 : i64, scratch_operands = 0 : i64, tpu.core_type = #tpu.core_type<tc>, window_params = [{transform_indices = @transform_0, window_bounds = array<i64: 1, 8, 32>}, {transform_indices = @transform_1, window_bounds = array<i64: 1, 6, 32>}, {pipeline_mode = #tpu.pipeline_mode<synchronous>, transform_indices = @transform_2, window_bounds = array<i64: 8, 32>}, {pipeline_mode = #tpu.pipeline_mode<synchronous>, transform_indices = @transform_3, window_bounds = array<i64: 32, 96>}, {pipeline_mode = #tpu.pipeline_mode<synchronous>, transform_indices = @transform_4, window_bounds = array<i64: 1, 96>}, {pipeline_mode = #tpu.pipeline_mode<synchronous>, transform_indices = @transform_5, window_bounds = array<i64: 32, 32>}, {pipeline_mode = #tpu.pipeline_mode<synchronous>, transform_indices = @transform_6, window_bounds = array<i64: 1, 32>}, {pipeline_mode = #tpu.pipeline_mode<synchronous>, transform_indices = @transform_7, window_bounds = array<i64: 32, 128>}, {pipeline_mode = #tpu.pipeline_mode<synchronous>, transform_indices = @transform_8, window_bounds = array<i64: 1, 128>}, {pipeline_mode = #tpu.pipeline_mode<synchronous>, transform_indices = @transform_9, window_bounds = array<i64: 128, 32>}, {pipeline_mode = #tpu.pipeline_mode<synchronous>, transform_indices = @transform_10, window_bounds = array<i64: 1, 32>}, {transform_indices = @transform_11, window_bounds = array<i64: 1, 8, 32>}]} {
    %c0 = arith.constant 0 : index
    %c0_0 = arith.constant 0 : index
    %c0_1 = arith.constant 0 : index
    %0 = vector.load %arg1[%c0, %c0_0, %c0_1] : memref<1x8x32xf32, #tpu.memory_space<vmem>>, vector<1x8x32xf32>
    %1 = vector.shape_cast %0 : vector<1x8x32xf32> to vector<8x32xf32>
    %c0_2 = arith.constant 0 : index
    %c0_3 = arith.constant 0 : index
    %2 = vector.load %arg3[%c0_2, %c0_3] : memref<8x32xf32, #tpu.memory_space<vmem>>, vector<8x32xf32>
    %3 = arith.mulf %1, %1 : vector<8x32xf32>
    %cst = arith.constant dense<0.000000e+00> : vector<8xf32>
    %4 = vector.multi_reduction <add>, %3, %cst [1] : vector<8x32xf32> to vector<8xf32>
    %5 = vector.shape_cast %4 : vector<8xf32> to vector<8x1xf32>
    %6 = arith.mulf %2, %2 : vector<8x32xf32>
    %cst_4 = arith.constant dense<0.000000e+00> : vector<8xf32>
    %7 = vector.multi_reduction <add>, %6, %cst_4 [1] : vector<8x32xf32> to vector<8xf32>
    %8 = vector.shape_cast %7 : vector<8xf32> to vector<8x1xf32>
    %9 = arith.mulf %1, %2 : vector<8x32xf32>
    %cst_5 = arith.constant dense<0.000000e+00> : vector<8xf32>
    %10 = vector.multi_reduction <add>, %9, %cst_5 [1] : vector<8x32xf32> to vector<8xf32>
    %11 = vector.shape_cast %10 : vector<8xf32> to vector<8x1xf32>
    %cst_6 = arith.constant 2.000000e+00 : f32
    %12 = vector.broadcast %cst_6 : f32 to vector<8x1xf32>
    %13 = arith.mulf %12, %11 : vector<8x1xf32>
    %cst_7 = arith.constant 1.000000e+00 : f32
    %14 = vector.broadcast %cst_7 : f32 to vector<8x1xf32>
    %15 = arith.addf %14, %13 : vector<8x1xf32>
    %cst_8 = arith.constant 1.000000e+00 : f32
    %16 = vector.broadcast %cst_8 : f32 to vector<8x1xf32>
    %17 = arith.mulf %16, %8 : vector<8x1xf32>
    %18 = arith.addf %15, %17 : vector<8x1xf32>
    %19 = vector.broadcast %18 : vector<8x1xf32> to vector<8x32xf32>
    %20 = arith.mulf %19, %1 : vector<8x32xf32>
    %cst_9 = arith.constant 1.000000e+00 : f32
    %21 = vector.broadcast %cst_9 : f32 to vector<8x1xf32>
    %22 = arith.mulf %21, %5 : vector<8x1xf32>
    %cst_10 = arith.constant 1.000000e+00 : f32
    %23 = vector.broadcast %cst_10 : f32 to vector<8x1xf32>
    %24 = arith.subf %23, %22 : vector<8x1xf32>
    %25 = vector.broadcast %24 : vector<8x1xf32> to vector<8x32xf32>
    %26 = arith.mulf %25, %2 : vector<8x32xf32>
    %27 = arith.addf %20, %26 : vector<8x32xf32>
    %cst_11 = arith.constant 2.000000e+00 : f32
    %28 = vector.broadcast %cst_11 : f32 to vector<8x1xf32>
    %29 = arith.mulf %28, %11 : vector<8x1xf32>
    %cst_12 = arith.constant 1.000000e+00 : f32
    %30 = vector.broadcast %cst_12 : f32 to vector<8x1xf32>
    %31 = arith.addf %30, %29 : vector<8x1xf32>
    %cst_13 = arith.constant 1.000000e+00 : f32
    %32 = vector.broadcast %cst_13 : f32 to vector<8x1xf32>
    %33 = arith.mulf %32, %5 : vector<8x1xf32>
    %34 = arith.mulf %33, %8 : vector<8x1xf32>
    %35 = arith.addf %31, %34 : vector<8x1xf32>
    %cst_14 = arith.constant 1.000000e-15 : f32
    %36 = vector.broadcast %cst_14 : f32 to vector<8x1xf32>
    %37 = arith.maximumf %35, %36 : vector<8x1xf32>
    %38 = vector.broadcast %37 : vector<8x1xf32> to vector<8x32xf32>
    %39 = arith.divf %27, %38 : vector<8x32xf32>
    %c0_15 = arith.constant 0 : index
    %c0_16 = arith.constant 0 : index
    %c0_17 = arith.constant 0 : index
    %40 = vector.load %arg2[%c0_15, %c0_16, %c0_17] : memref<1x6x32xf32, #tpu.memory_space<vmem>>, vector<1x6x32xf32>
    %41 = vector.shape_cast %40 : vector<1x6x32xf32> to vector<6x32xf32>
    %42 = vector.extract_strided_slice %41 {offsets = [0, 0], sizes = [1, 32], strides = [1, 1]} : vector<6x32xf32> to vector<1x32xf32>
    %43 = vector.extract_strided_slice %41 {offsets = [1, 0], sizes = [1, 32], strides = [1, 1]} : vector<6x32xf32> to vector<1x32xf32>
    %44 = vector.extract_strided_slice %41 {offsets = [2, 0], sizes = [1, 32], strides = [1, 1]} : vector<6x32xf32> to vector<1x32xf32>
    %45 = vector.extract_strided_slice %41 {offsets = [3, 0], sizes = [1, 32], strides = [1, 1]} : vector<6x32xf32> to vector<1x32xf32>
    %46 = vector.extract_strided_slice %41 {offsets = [4, 0], sizes = [1, 32], strides = [1, 1]} : vector<6x32xf32> to vector<1x32xf32>
    %47 = vector.extract_strided_slice %41 {offsets = [5, 0], sizes = [1, 32], strides = [1, 1]} : vector<6x32xf32> to vector<1x32xf32>
    %48 = arith.mulf %39, %39 : vector<8x32xf32>
    %cst_18 = arith.constant dense<0.000000e+00> : vector<8xf32>
    %49 = vector.multi_reduction <add>, %48, %cst_18 [1] : vector<8x32xf32> to vector<8xf32>
    %50 = vector.shape_cast %49 : vector<8xf32> to vector<8x1xf32>
    %cst_19 = arith.constant 1.000000e-30 : f32
    %51 = vector.broadcast %cst_19 : f32 to vector<8x1xf32>
    %52 = arith.maximumf %50, %51 : vector<8x1xf32>
    %53 = math.rsqrt %52 : vector<8x1xf32>
    %54 = arith.mulf %52, %53 : vector<8x1xf32>
    %cst_20 = arith.constant -0.99999988 : f32
    %cst_21 = arith.constant 0.99999988 : f32
    %55 = vector.broadcast %cst_20 : f32 to vector<8x1xf32>
    %56 = arith.maximumf %55, %54 : vector<8x1xf32>
    %57 = vector.broadcast %cst_21 : f32 to vector<8x1xf32>
    %58 = arith.minimumf %57, %56 : vector<8x1xf32>
    %cst_22 = arith.constant 1.000000e+00 : f32
    %59 = vector.broadcast %cst_22 : f32 to vector<8x1xf32>
    %60 = arith.addf %59, %58 : vector<8x1xf32>
    %cst_23 = arith.constant 1.000000e+00 : f32
    %61 = vector.broadcast %cst_23 : f32 to vector<8x1xf32>
    %62 = arith.subf %61, %58 : vector<8x1xf32>
    %63 = arith.divf %60, %62 : vector<8x1xf32>
    %64 = math.log %63 : vector<8x1xf32>
    %cst_24 = arith.constant 5.000000e-01 : f32
    %65 = vector.broadcast %cst_24 : f32 to vector<8x1xf32>
    %66 = arith.mulf %65, %64 : vector<8x1xf32>
    %67 = arith.mulf %66, %53 : vector<8x1xf32>
    %68 = vector.broadcast %67 : vector<8x1xf32> to vector<8x32xf32>
    %69 = arith.mulf %68, %39 : vector<8x32xf32>
    %cst_25 = arith.constant dense<0.000000e+00> : vector<8xf32>
    %70 = vector.multi_reduction <add>, %69, %cst_25 [1] : vector<8x32xf32> to vector<8xf32>
    %71 = vector.shape_cast %70 : vector<8xf32> to vector<8x1xf32>
    %cst_26 = arith.constant 3.200000e+01 : f32
    %72 = vector.broadcast %cst_26 : f32 to vector<8x1xf32>
    %73 = arith.divf %71, %72 : vector<8x1xf32>
    %74 = vector.broadcast %73 : vector<8x1xf32> to vector<8x32xf32>
    %75 = arith.subf %69, %74 : vector<8x32xf32>
    %76 = arith.mulf %75, %75 : vector<8x32xf32>
    %cst_27 = arith.constant dense<0.000000e+00> : vector<8xf32>
    %77 = vector.multi_reduction <add>, %76, %cst_27 [1] : vector<8x32xf32> to vector<8xf32>
    %78 = vector.shape_cast %77 : vector<8xf32> to vector<8x1xf32>
    %cst_28 = arith.constant 3.200000e+01 : f32
    %79 = vector.broadcast %cst_28 : f32 to vector<8x1xf32>
    %80 = arith.divf %78, %79 : vector<8x1xf32>
    %81 = vector.broadcast %73 : vector<8x1xf32> to vector<8x32xf32>
    %82 = arith.subf %69, %81 : vector<8x32xf32>
    %cst_29 = arith.constant 9.99999997E-7 : f32
    %83 = vector.broadcast %cst_29 : f32 to vector<8x1xf32>
    %84 = arith.addf %80, %83 : vector<8x1xf32>
    %85 = math.rsqrt %84 : vector<8x1xf32>
    %86 = vector.broadcast %85 : vector<8x1xf32> to vector<8x32xf32>
    %87 = arith.mulf %82, %86 : vector<8x32xf32>
    %cst_30 = arith.constant 1.000000e+00 : f32
    %88 = vector.broadcast %cst_30 : f32 to vector<1x32xf32>
    %89 = arith.addf %88, %43 : vector<1x32xf32>
    %90 = vector.broadcast %89 : vector<1x32xf32> to vector<8x32xf32>
    %91 = arith.mulf %87, %90 : vector<8x32xf32>
    %92 = vector.broadcast %42 : vector<1x32xf32> to vector<8x32xf32>
    %93 = arith.addf %91, %92 : vector<8x32xf32>
    %94 = arith.truncf %93 : vector<8x32xf32> to vector<8x32xbf16>
    %c0_31 = arith.constant 0 : index
    %c0_32 = arith.constant 0 : index
    %95 = vector.load %arg4[%c0_31, %c0_32] : memref<32x96xbf16, #tpu.memory_space<vmem>>, vector<32x96xbf16>
    %cst_33 = arith.constant dense<0.000000e+00> : vector<8x96xf32>
    %96 = tpu.matmul %94, %95, %cst_33 {dimension_numbers = #tpu.dot_dimension_numbers<[1], [0], [0], [1], [0, 0, 1, 1], [], []>} : vector<8x32xbf16>, vector<32x96xbf16>, vector<8x96xf32> -> vector<8x96xf32>
    %c0_34 = arith.constant 0 : index
    %c0_35 = arith.constant 0 : index
    %97 = vector.load %arg5[%c0_34, %c0_35] : memref<1x96xf32, #tpu.memory_space<vmem>>, vector<1x96xf32>
    %98 = vector.broadcast %97 : vector<1x96xf32> to vector<8x96xf32>
    %99 = arith.addf %96, %98 : vector<8x96xf32>
    %100 = vector.extract_strided_slice %99 {offsets = [0, 0], sizes = [8, 8], strides = [1, 1]} : vector<8x96xf32> to vector<8x8xf32>
    %101 = vector.extract_strided_slice %99 {offsets = [0, 32], sizes = [8, 8], strides = [1, 1]} : vector<8x96xf32> to vector<8x8xf32>
    %102 = vector.extract_strided_slice %99 {offsets = [0, 64], sizes = [8, 8], strides = [1, 1]} : vector<8x96xf32> to vector<8x8xf32>
    %103 = arith.truncf %100 : vector<8x8xf32> to vector<8x8xbf16>
    %104 = arith.truncf %101 : vector<8x8xf32> to vector<8x8xbf16>
    %cst_36 = arith.constant dense<0.000000e+00> : vector<8x8xf32>
    %105 = tpu.matmul %103, %104, %cst_36 {dimension_numbers = #tpu.dot_dimension_numbers<[1], [1], [0], [0], [0, 0, 1, 0], [], []>} : vector<8x8xbf16>, vector<8x8xbf16>, vector<8x8xf32> -> vector<8x8xf32>
    %cst_37 = arith.constant dense<0xFF800000> : vector<8xf32>
    %106 = vector.multi_reduction <maximumf>, %105, %cst_37 [1] : vector<8x8xf32> to vector<8xf32>
    %107 = vector.shape_cast %106 : vector<8xf32> to vector<8x1xf32>
    %108 = vector.broadcast %107 : vector<8x1xf32> to vector<8x8xf32>
    %109 = arith.subf %105, %108 : vector<8x8xf32>
    %110 = math.exp %109 : vector<8x8xf32>
    %cst_38 = arith.constant dense<0.000000e+00> : vector<8xf32>
    %111 = vector.multi_reduction <add>, %110, %cst_38 [1] : vector<8x8xf32> to vector<8xf32>
    %112 = vector.shape_cast %111 : vector<8xf32> to vector<8x1xf32>
    %113 = arith.truncf %110 : vector<8x8xf32> to vector<8x8xbf16>
    %114 = arith.truncf %102 : vector<8x8xf32> to vector<8x8xbf16>
    %cst_39 = arith.constant dense<0.000000e+00> : vector<8x8xf32>
    %115 = tpu.matmul %113, %114, %cst_39 {dimension_numbers = #tpu.dot_dimension_numbers<[1], [0], [0], [1], [0, 0, 1, 1], [], []>} : vector<8x8xbf16>, vector<8x8xbf16>, vector<8x8xf32> -> vector<8x8xf32>
    %116 = tpu.reciprocal %112 {approx = true} : vector<8x1xf32> -> vector<8x1xf32>
    %117 = vector.broadcast %116 : vector<8x1xf32> to vector<8x8xf32>
    %118 = arith.mulf %115, %117 : vector<8x8xf32>
    %119 = vector.extract_strided_slice %99 {offsets = [0, 8], sizes = [8, 8], strides = [1, 1]} : vector<8x96xf32> to vector<8x8xf32>
    %120 = vector.extract_strided_slice %99 {offsets = [0, 40], sizes = [8, 8], strides = [1, 1]} : vector<8x96xf32> to vector<8x8xf32>
    %121 = vector.extract_strided_slice %99 {offsets = [0, 72], sizes = [8, 8], strides = [1, 1]} : vector<8x96xf32> to vector<8x8xf32>
    %122 = arith.truncf %119 : vector<8x8xf32> to vector<8x8xbf16>
    %123 = arith.truncf %120 : vector<8x8xf32> to vector<8x8xbf16>
    %cst_40 = arith.constant dense<0.000000e+00> : vector<8x8xf32>
    %124 = tpu.matmul %122, %123, %cst_40 {dimension_numbers = #tpu.dot_dimension_numbers<[1], [1], [0], [0], [0, 0, 1, 0], [], []>} : vector<8x8xbf16>, vector<8x8xbf16>, vector<8x8xf32> -> vector<8x8xf32>
    %cst_41 = arith.constant dense<0xFF800000> : vector<8xf32>
    %125 = vector.multi_reduction <maximumf>, %124, %cst_41 [1] : vector<8x8xf32> to vector<8xf32>
    %126 = vector.shape_cast %125 : vector<8xf32> to vector<8x1xf32>
    %127 = vector.broadcast %126 : vector<8x1xf32> to vector<8x8xf32>
    %128 = arith.subf %124, %127 : vector<8x8xf32>
    %129 = math.exp %128 : vector<8x8xf32>
    %cst_42 = arith.constant dense<0.000000e+00> : vector<8xf32>
    %130 = vector.multi_reduction <add>, %129, %cst_42 [1] : vector<8x8xf32> to vector<8xf32>
    %131 = vector.shape_cast %130 : vector<8xf32> to vector<8x1xf32>
    %132 = arith.truncf %129 : vector<8x8xf32> to vector<8x8xbf16>
    %133 = arith.truncf %121 : vector<8x8xf32> to vector<8x8xbf16>
    %cst_43 = arith.constant dense<0.000000e+00> : vector<8x8xf32>
    %134 = tpu.matmul %132, %133, %cst_43 {dimension_numbers = #tpu.dot_dimension_numbers<[1], [0], [0], [1], [0, 0, 1, 1], [], []>} : vector<8x8xbf16>, vector<8x8xbf16>, vector<8x8xf32> -> vector<8x8xf32>
    %135 = tpu.reciprocal %131 {approx = true} : vector<8x1xf32> -> vector<8x1xf32>
    %136 = vector.broadcast %135 : vector<8x1xf32> to vector<8x8xf32>
    %137 = arith.mulf %134, %136 : vector<8x8xf32>
    %138 = vector.extract_strided_slice %99 {offsets = [0, 16], sizes = [8, 8], strides = [1, 1]} : vector<8x96xf32> to vector<8x8xf32>
    %139 = vector.extract_strided_slice %99 {offsets = [0, 48], sizes = [8, 8], strides = [1, 1]} : vector<8x96xf32> to vector<8x8xf32>
    %140 = vector.extract_strided_slice %99 {offsets = [0, 80], sizes = [8, 8], strides = [1, 1]} : vector<8x96xf32> to vector<8x8xf32>
    %141 = arith.truncf %138 : vector<8x8xf32> to vector<8x8xbf16>
    %142 = arith.truncf %139 : vector<8x8xf32> to vector<8x8xbf16>
    %cst_44 = arith.constant dense<0.000000e+00> : vector<8x8xf32>
    %143 = tpu.matmul %141, %142, %cst_44 {dimension_numbers = #tpu.dot_dimension_numbers<[1], [1], [0], [0], [0, 0, 1, 0], [], []>} : vector<8x8xbf16>, vector<8x8xbf16>, vector<8x8xf32> -> vector<8x8xf32>
    %cst_45 = arith.constant dense<0xFF800000> : vector<8xf32>
    %144 = vector.multi_reduction <maximumf>, %143, %cst_45 [1] : vector<8x8xf32> to vector<8xf32>
    %145 = vector.shape_cast %144 : vector<8xf32> to vector<8x1xf32>
    %146 = vector.broadcast %145 : vector<8x1xf32> to vector<8x8xf32>
    %147 = arith.subf %143, %146 : vector<8x8xf32>
    %148 = math.exp %147 : vector<8x8xf32>
    %cst_46 = arith.constant dense<0.000000e+00> : vector<8xf32>
    %149 = vector.multi_reduction <add>, %148, %cst_46 [1] : vector<8x8xf32> to vector<8xf32>
    %150 = vector.shape_cast %149 : vector<8xf32> to vector<8x1xf32>
    %151 = arith.truncf %148 : vector<8x8xf32> to vector<8x8xbf16>
    %152 = arith.truncf %140 : vector<8x8xf32> to vector<8x8xbf16>
    %cst_47 = arith.constant dense<0.000000e+00> : vector<8x8xf32>
    %153 = tpu.matmul %151, %152, %cst_47 {dimension_numbers = #tpu.dot_dimension_numbers<[1], [0], [0], [1], [0, 0, 1, 1], [], []>} : vector<8x8xbf16>, vector<8x8xbf16>, vector<8x8xf32> -> vector<8x8xf32>
    %154 = tpu.reciprocal %150 {approx = true} : vector<8x1xf32> -> vector<8x1xf32>
    %155 = vector.broadcast %154 : vector<8x1xf32> to vector<8x8xf32>
    %156 = arith.mulf %153, %155 : vector<8x8xf32>
    %157 = vector.extract_strided_slice %99 {offsets = [0, 24], sizes = [8, 8], strides = [1, 1]} : vector<8x96xf32> to vector<8x8xf32>
    %158 = vector.extract_strided_slice %99 {offsets = [0, 56], sizes = [8, 8], strides = [1, 1]} : vector<8x96xf32> to vector<8x8xf32>
    %159 = vector.extract_strided_slice %99 {offsets = [0, 88], sizes = [8, 8], strides = [1, 1]} : vector<8x96xf32> to vector<8x8xf32>
    %160 = arith.truncf %157 : vector<8x8xf32> to vector<8x8xbf16>
    %161 = arith.truncf %158 : vector<8x8xf32> to vector<8x8xbf16>
    %cst_48 = arith.constant dense<0.000000e+00> : vector<8x8xf32>
    %162 = tpu.matmul %160, %161, %cst_48 {dimension_numbers = #tpu.dot_dimension_numbers<[1], [1], [0], [0], [0, 0, 1, 0], [], []>} : vector<8x8xbf16>, vector<8x8xbf16>, vector<8x8xf32> -> vector<8x8xf32>
    %cst_49 = arith.constant dense<0xFF800000> : vector<8xf32>
    %163 = vector.multi_reduction <maximumf>, %162, %cst_49 [1] : vector<8x8xf32> to vector<8xf32>
    %164 = vector.shape_cast %163 : vector<8xf32> to vector<8x1xf32>
    %165 = vector.broadcast %164 : vector<8x1xf32> to vector<8x8xf32>
    %166 = arith.subf %162, %165 : vector<8x8xf32>
    %167 = math.exp %166 : vector<8x8xf32>
    %cst_50 = arith.constant dense<0.000000e+00> : vector<8xf32>
    %168 = vector.multi_reduction <add>, %167, %cst_50 [1] : vector<8x8xf32> to vector<8xf32>
    %169 = vector.shape_cast %168 : vector<8xf32> to vector<8x1xf32>
    %170 = arith.truncf %167 : vector<8x8xf32> to vector<8x8xbf16>
    %171 = arith.truncf %159 : vector<8x8xf32> to vector<8x8xbf16>
    %cst_51 = arith.constant dense<0.000000e+00> : vector<8x8xf32>
    %172 = tpu.matmul %170, %171, %cst_51 {dimension_numbers = #tpu.dot_dimension_numbers<[1], [0], [0], [1], [0, 0, 1, 1], [], []>} : vector<8x8xbf16>, vector<8x8xbf16>, vector<8x8xf32> -> vector<8x8xf32>
    %173 = tpu.reciprocal %169 {approx = true} : vector<8x1xf32> -> vector<8x1xf32>
    %174 = vector.broadcast %173 : vector<8x1xf32> to vector<8x8xf32>
    %175 = arith.mulf %172, %174 : vector<8x8xf32>
    %176 = tpu.concatenate %118, %137, %156, %175 in 1 : vector<8x8xf32>, vector<8x8xf32>, vector<8x8xf32>, vector<8x8xf32> -> vector<8x32xf32>
    %177 = arith.truncf %176 : vector<8x32xf32> to vector<8x32xbf16>
    %c0_52 = arith.constant 0 : index
    %c0_53 = arith.constant 0 : index
    %178 = vector.load %arg6[%c0_52, %c0_53] : memref<32x32xbf16, #tpu.memory_space<vmem>>, vector<32x32xbf16>
    %cst_54 = arith.constant dense<0.000000e+00> : vector<8x32xf32>
    %179 = tpu.matmul %177, %178, %cst_54 {dimension_numbers = #tpu.dot_dimension_numbers<[1], [0], [0], [1], [0, 0, 1, 1], [], []>} : vector<8x32xbf16>, vector<32x32xbf16>, vector<8x32xf32> -> vector<8x32xf32>
    %c0_55 = arith.constant 0 : index
    %c0_56 = arith.constant 0 : index
    %180 = vector.load %arg7[%c0_55, %c0_56] : memref<1x32xf32, #tpu.memory_space<vmem>>, vector<1x32xf32>
    %181 = vector.broadcast %180 : vector<1x32xf32> to vector<8x32xf32>
    %182 = arith.addf %179, %181 : vector<8x32xf32>
    %183 = vector.broadcast %44 : vector<1x32xf32> to vector<8x32xf32>
    %184 = arith.mulf %183, %182 : vector<8x32xf32>
    %185 = arith.mulf %184, %184 : vector<8x32xf32>
    %cst_57 = arith.constant dense<0.000000e+00> : vector<8xf32>
    %186 = vector.multi_reduction <add>, %185, %cst_57 [1] : vector<8x32xf32> to vector<8xf32>
    %187 = vector.shape_cast %186 : vector<8xf32> to vector<8x1xf32>
    %cst_58 = arith.constant 1.000000e-30 : f32
    %188 = vector.broadcast %cst_58 : f32 to vector<8x1xf32>
    %189 = arith.maximumf %187, %188 : vector<8x1xf32>
    %190 = math.rsqrt %189 : vector<8x1xf32>
    %191 = arith.mulf %189, %190 : vector<8x1xf32>
    %192 = math.tanh %191 : vector<8x1xf32>
    %193 = arith.mulf %192, %190 : vector<8x1xf32>
    %194 = vector.broadcast %193 : vector<8x1xf32> to vector<8x32xf32>
    %195 = arith.mulf %194, %184 : vector<8x32xf32>
    %196 = arith.mulf %195, %195 : vector<8x32xf32>
    %cst_59 = arith.constant dense<0.000000e+00> : vector<8xf32>
    %197 = vector.multi_reduction <add>, %196, %cst_59 [1] : vector<8x32xf32> to vector<8xf32>
    %198 = vector.shape_cast %197 : vector<8xf32> to vector<8x1xf32>
    %199 = arith.mulf %39, %195 : vector<8x32xf32>
    %cst_60 = arith.constant dense<0.000000e+00> : vector<8xf32>
    %200 = vector.multi_reduction <add>, %199, %cst_60 [1] : vector<8x32xf32> to vector<8xf32>
    %201 = vector.shape_cast %200 : vector<8xf32> to vector<8x1xf32>
    %cst_61 = arith.constant 2.000000e+00 : f32
    %202 = vector.broadcast %cst_61 : f32 to vector<8x1xf32>
    %203 = arith.mulf %202, %201 : vector<8x1xf32>
    %cst_62 = arith.constant 1.000000e+00 : f32
    %204 = vector.broadcast %cst_62 : f32 to vector<8x1xf32>
    %205 = arith.addf %204, %203 : vector<8x1xf32>
    %cst_63 = arith.constant 1.000000e+00 : f32
    %206 = vector.broadcast %cst_63 : f32 to vector<8x1xf32>
    %207 = arith.mulf %206, %198 : vector<8x1xf32>
    %208 = arith.addf %205, %207 : vector<8x1xf32>
    %209 = vector.broadcast %208 : vector<8x1xf32> to vector<8x32xf32>
    %210 = arith.mulf %209, %39 : vector<8x32xf32>
    %cst_64 = arith.constant 1.000000e+00 : f32
    %211 = vector.broadcast %cst_64 : f32 to vector<8x1xf32>
    %212 = arith.mulf %211, %50 : vector<8x1xf32>
    %cst_65 = arith.constant 1.000000e+00 : f32
    %213 = vector.broadcast %cst_65 : f32 to vector<8x1xf32>
    %214 = arith.subf %213, %212 : vector<8x1xf32>
    %215 = vector.broadcast %214 : vector<8x1xf32> to vector<8x32xf32>
    %216 = arith.mulf %215, %195 : vector<8x32xf32>
    %217 = arith.addf %210, %216 : vector<8x32xf32>
    %cst_66 = arith.constant 2.000000e+00 : f32
    %218 = vector.broadcast %cst_66 : f32 to vector<8x1xf32>
    %219 = arith.mulf %218, %201 : vector<8x1xf32>
    %cst_67 = arith.constant 1.000000e+00 : f32
    %220 = vector.broadcast %cst_67 : f32 to vector<8x1xf32>
    %221 = arith.addf %220, %219 : vector<8x1xf32>
    %cst_68 = arith.constant 1.000000e+00 : f32
    %222 = vector.broadcast %cst_68 : f32 to vector<8x1xf32>
    %223 = arith.mulf %222, %50 : vector<8x1xf32>
    %224 = arith.mulf %223, %198 : vector<8x1xf32>
    %225 = arith.addf %221, %224 : vector<8x1xf32>
    %cst_69 = arith.constant 1.000000e-15 : f32
    %226 = vector.broadcast %cst_69 : f32 to vector<8x1xf32>
    %227 = arith.maximumf %225, %226 : vector<8x1xf32>
    %228 = vector.broadcast %227 : vector<8x1xf32> to vector<8x32xf32>
    %229 = arith.divf %217, %228 : vector<8x32xf32>
    %230 = arith.mulf %229, %229 : vector<8x32xf32>
    %cst_70 = arith.constant dense<0.000000e+00> : vector<8xf32>
    %231 = vector.multi_reduction <add>, %230, %cst_70 [1] : vector<8x32xf32> to vector<8xf32>
    %232 = vector.shape_cast %231 : vector<8xf32> to vector<8x1xf32>
    %cst_71 = arith.constant 1.000000e-30 : f32
    %233 = vector.broadcast %cst_71 : f32 to vector<8x1xf32>
    %234 = arith.maximumf %232, %233 : vector<8x1xf32>
    %235 = math.rsqrt %234 : vector<8x1xf32>
    %236 = arith.mulf %234, %235 : vector<8x1xf32>
    %cst_72 = arith.constant -0.99999988 : f32
    %cst_73 = arith.constant 0.99999988 : f32
    %237 = vector.broadcast %cst_72 : f32 to vector<8x1xf32>
    %238 = arith.maximumf %237, %236 : vector<8x1xf32>
    %239 = vector.broadcast %cst_73 : f32 to vector<8x1xf32>
    %240 = arith.minimumf %239, %238 : vector<8x1xf32>
    %cst_74 = arith.constant 1.000000e+00 : f32
    %241 = vector.broadcast %cst_74 : f32 to vector<8x1xf32>
    %242 = arith.addf %241, %240 : vector<8x1xf32>
    %cst_75 = arith.constant 1.000000e+00 : f32
    %243 = vector.broadcast %cst_75 : f32 to vector<8x1xf32>
    %244 = arith.subf %243, %240 : vector<8x1xf32>
    %245 = arith.divf %242, %244 : vector<8x1xf32>
    %246 = math.log %245 : vector<8x1xf32>
    %cst_76 = arith.constant 5.000000e-01 : f32
    %247 = vector.broadcast %cst_76 : f32 to vector<8x1xf32>
    %248 = arith.mulf %247, %246 : vector<8x1xf32>
    %249 = arith.mulf %248, %235 : vector<8x1xf32>
    %250 = vector.broadcast %249 : vector<8x1xf32> to vector<8x32xf32>
    %251 = arith.mulf %250, %229 : vector<8x32xf32>
    %cst_77 = arith.constant dense<0.000000e+00> : vector<8xf32>
    %252 = vector.multi_reduction <add>, %251, %cst_77 [1] : vector<8x32xf32> to vector<8xf32>
    %253 = vector.shape_cast %252 : vector<8xf32> to vector<8x1xf32>
    %cst_78 = arith.constant 3.200000e+01 : f32
    %254 = vector.broadcast %cst_78 : f32 to vector<8x1xf32>
    %255 = arith.divf %253, %254 : vector<8x1xf32>
    %256 = vector.broadcast %255 : vector<8x1xf32> to vector<8x32xf32>
    %257 = arith.subf %251, %256 : vector<8x32xf32>
    %258 = arith.mulf %257, %257 : vector<8x32xf32>
    %cst_79 = arith.constant dense<0.000000e+00> : vector<8xf32>
    %259 = vector.multi_reduction <add>, %258, %cst_79 [1] : vector<8x32xf32> to vector<8xf32>
    %260 = vector.shape_cast %259 : vector<8xf32> to vector<8x1xf32>
    %cst_80 = arith.constant 3.200000e+01 : f32
    %261 = vector.broadcast %cst_80 : f32 to vector<8x1xf32>
    %262 = arith.divf %260, %261 : vector<8x1xf32>
    %263 = vector.broadcast %255 : vector<8x1xf32> to vector<8x32xf32>
    %264 = arith.subf %251, %263 : vector<8x32xf32>
    %cst_81 = arith.constant 9.99999997E-7 : f32
    %265 = vector.broadcast %cst_81 : f32 to vector<8x1xf32>
    %266 = arith.addf %262, %265 : vector<8x1xf32>
    %267 = math.rsqrt %266 : vector<8x1xf32>
    %268 = vector.broadcast %267 : vector<8x1xf32> to vector<8x32xf32>
    %269 = arith.mulf %264, %268 : vector<8x32xf32>
    %cst_82 = arith.constant 1.000000e+00 : f32
    %270 = vector.broadcast %cst_82 : f32 to vector<1x32xf32>
    %271 = arith.addf %270, %46 : vector<1x32xf32>
    %272 = vector.broadcast %271 : vector<1x32xf32> to vector<8x32xf32>
    %273 = arith.mulf %269, %272 : vector<8x32xf32>
    %274 = vector.broadcast %45 : vector<1x32xf32> to vector<8x32xf32>
    %275 = arith.addf %273, %274 : vector<8x32xf32>
    %276 = arith.truncf %275 : vector<8x32xf32> to vector<8x32xbf16>
    %c0_83 = arith.constant 0 : index
    %c0_84 = arith.constant 0 : index
    %277 = vector.load %arg8[%c0_83, %c0_84] : memref<32x128xbf16, #tpu.memory_space<vmem>>, vector<32x128xbf16>
    %cst_85 = arith.constant dense<0.000000e+00> : vector<8x128xf32>
    %278 = tpu.matmul %276, %277, %cst_85 {dimension_numbers = #tpu.dot_dimension_numbers<[1], [0], [0], [1], [0, 0, 1, 1], [], []>} : vector<8x32xbf16>, vector<32x128xbf16>, vector<8x128xf32> -> vector<8x128xf32>
    %c0_86 = arith.constant 0 : index
    %c0_87 = arith.constant 0 : index
    %279 = vector.load %arg9[%c0_86, %c0_87] : memref<1x128xf32, #tpu.memory_space<vmem>>, vector<1x128xf32>
    %280 = vector.broadcast %279 : vector<1x128xf32> to vector<8x128xf32>
    %281 = arith.addf %278, %280 : vector<8x128xf32>
    %282 = arith.truncf %281 : vector<8x128xf32> to vector<8x128xbf16>
    %c0_88 = arith.constant 0 : index
    %c0_89 = arith.constant 0 : index
    %283 = vector.load %arg10[%c0_88, %c0_89] : memref<128x32xbf16, #tpu.memory_space<vmem>>, vector<128x32xbf16>
    %cst_90 = arith.constant dense<0.000000e+00> : vector<8x32xf32>
    %284 = tpu.matmul %282, %283, %cst_90 {dimension_numbers = #tpu.dot_dimension_numbers<[1], [0], [0], [1], [0, 0, 1, 1], [], []>} : vector<8x128xbf16>, vector<128x32xbf16>, vector<8x32xf32> -> vector<8x32xf32>
    %c0_91 = arith.constant 0 : index
    %c0_92 = arith.constant 0 : index
    %285 = vector.load %arg11[%c0_91, %c0_92] : memref<1x32xf32, #tpu.memory_space<vmem>>, vector<1x32xf32>
    %286 = vector.broadcast %285 : vector<1x32xf32> to vector<8x32xf32>
    %287 = arith.addf %284, %286 : vector<8x32xf32>
    %288 = vector.broadcast %47 : vector<1x32xf32> to vector<8x32xf32>
    %289 = arith.mulf %288, %287 : vector<8x32xf32>
    %290 = arith.mulf %289, %289 : vector<8x32xf32>
    %cst_93 = arith.constant dense<0.000000e+00> : vector<8xf32>
    %291 = vector.multi_reduction <add>, %290, %cst_93 [1] : vector<8x32xf32> to vector<8xf32>
    %292 = vector.shape_cast %291 : vector<8xf32> to vector<8x1xf32>
    %cst_94 = arith.constant 1.000000e-30 : f32
    %293 = vector.broadcast %cst_94 : f32 to vector<8x1xf32>
    %294 = arith.maximumf %292, %293 : vector<8x1xf32>
    %295 = math.rsqrt %294 : vector<8x1xf32>
    %296 = arith.mulf %294, %295 : vector<8x1xf32>
    %297 = math.tanh %296 : vector<8x1xf32>
    %298 = arith.mulf %297, %295 : vector<8x1xf32>
    %299 = vector.broadcast %298 : vector<8x1xf32> to vector<8x32xf32>
    %300 = arith.mulf %299, %289 : vector<8x32xf32>
    %301 = arith.mulf %300, %300 : vector<8x32xf32>
    %cst_95 = arith.constant dense<0.000000e+00> : vector<8xf32>
    %302 = vector.multi_reduction <add>, %301, %cst_95 [1] : vector<8x32xf32> to vector<8xf32>
    %303 = vector.shape_cast %302 : vector<8xf32> to vector<8x1xf32>
    %304 = arith.mulf %229, %300 : vector<8x32xf32>
    %cst_96 = arith.constant dense<0.000000e+00> : vector<8xf32>
    %305 = vector.multi_reduction <add>, %304, %cst_96 [1] : vector<8x32xf32> to vector<8xf32>
    %306 = vector.shape_cast %305 : vector<8xf32> to vector<8x1xf32>
    %cst_97 = arith.constant 2.000000e+00 : f32
    %307 = vector.broadcast %cst_97 : f32 to vector<8x1xf32>
    %308 = arith.mulf %307, %306 : vector<8x1xf32>
    %cst_98 = arith.constant 1.000000e+00 : f32
    %309 = vector.broadcast %cst_98 : f32 to vector<8x1xf32>
    %310 = arith.addf %309, %308 : vector<8x1xf32>
    %cst_99 = arith.constant 1.000000e+00 : f32
    %311 = vector.broadcast %cst_99 : f32 to vector<8x1xf32>
    %312 = arith.mulf %311, %303 : vector<8x1xf32>
    %313 = arith.addf %310, %312 : vector<8x1xf32>
    %314 = vector.broadcast %313 : vector<8x1xf32> to vector<8x32xf32>
    %315 = arith.mulf %314, %229 : vector<8x32xf32>
    %cst_100 = arith.constant 1.000000e+00 : f32
    %316 = vector.broadcast %cst_100 : f32 to vector<8x1xf32>
    %317 = arith.mulf %316, %232 : vector<8x1xf32>
    %cst_101 = arith.constant 1.000000e+00 : f32
    %318 = vector.broadcast %cst_101 : f32 to vector<8x1xf32>
    %319 = arith.subf %318, %317 : vector<8x1xf32>
    %320 = vector.broadcast %319 : vector<8x1xf32> to vector<8x32xf32>
    %321 = arith.mulf %320, %300 : vector<8x32xf32>
    %322 = arith.addf %315, %321 : vector<8x32xf32>
    %cst_102 = arith.constant 2.000000e+00 : f32
    %323 = vector.broadcast %cst_102 : f32 to vector<8x1xf32>
    %324 = arith.mulf %323, %306 : vector<8x1xf32>
    %cst_103 = arith.constant 1.000000e+00 : f32
    %325 = vector.broadcast %cst_103 : f32 to vector<8x1xf32>
    %326 = arith.addf %325, %324 : vector<8x1xf32>
    %cst_104 = arith.constant 1.000000e+00 : f32
    %327 = vector.broadcast %cst_104 : f32 to vector<8x1xf32>
    %328 = arith.mulf %327, %232 : vector<8x1xf32>
    %329 = arith.mulf %328, %303 : vector<8x1xf32>
    %330 = arith.addf %326, %329 : vector<8x1xf32>
    %cst_105 = arith.constant 1.000000e-15 : f32
    %331 = vector.broadcast %cst_105 : f32 to vector<8x1xf32>
    %332 = arith.maximumf %330, %331 : vector<8x1xf32>
    %333 = vector.broadcast %332 : vector<8x1xf32> to vector<8x32xf32>
    %334 = arith.divf %322, %333 : vector<8x32xf32>
    %c0_106 = arith.constant 0 : index
    %c0_107 = arith.constant 0 : index
    %c0_108 = arith.constant 0 : index
    %335 = vector.load %arg12[%c0_106, %c0_107, %c0_108] : memref<1x8x32xf32, #tpu.memory_space<vmem>>, vector<1x8x32xf32>
    %336 = vector.shape_cast %335 : vector<1x8x32xf32> to vector<8x32xf32>
    %337 = vector.shape_cast %334 : vector<8x32xf32> to vector<1x8x32xf32>
    tpu.vector_store %arg12[%c0_106, %c0_107, %c0_108], %337 {strides = array<i32>} : memref<1x8x32xf32, #tpu.memory_space<vmem>>, vector<1x8x32xf32>,
    return
  }
  func.func @transform_0(%arg0: i32) -> (i32, i32, i32) {
    %c0_i32 = arith.constant 0 : i32
    %c0_i32_0 = arith.constant 0 : i32
    %c0_i32_1 = arith.constant 0 : i32
    return %arg0, %c0_i32, %c0_i32_0 : i32, i32, i32
  }
  func.func @transform_1(%arg0: i32) -> (i32, i32, i32) {
    %c0_i32 = arith.constant 0 : i32
    %c0_i32_0 = arith.constant 0 : i32
    %c0_i32_1 = arith.constant 0 : i32
    return %arg0, %c0_i32, %c0_i32_0 : i32, i32, i32
  }
  func.func @transform_2(%arg0: i32) -> (i32, i32) {
    %c0_i32 = arith.constant 0 : i32
    %c0_i32_0 = arith.constant 0 : i32
    %c0_i32_1 = arith.constant 0 : i32
    return %c0_i32, %c0_i32_0 : i32, i32
  }
  func.func @transform_3(%arg0: i32) -> (i32, i32) {
    %c0_i32 = arith.constant 0 : i32
    %c0_i32_0 = arith.constant 0 : i32
    %c0_i32_1 = arith.constant 0 : i32
    return %c0_i32, %c0_i32_0 : i32, i32
  }
  func.func @transform_4(%arg0: i32) -> (i32, i32) {
    %c0_i32 = arith.constant 0 : i32
    %c0_i32_0 = arith.constant 0 : i32
    %c0_i32_1 = arith.constant 0 : i32
    return %c0_i32, %c0_i32_0 : i32, i32
  }
  func.func @transform_5(%arg0: i32) -> (i32, i32) {
    %c0_i32 = arith.constant 0 : i32
    %c0_i32_0 = arith.constant 0 : i32
    %c0_i32_1 = arith.constant 0 : i32
    return %c0_i32, %c0_i32_0 : i32, i32
  }
  func.func @transform_6(%arg0: i32) -> (i32, i32) {
    %c0_i32 = arith.constant 0 : i32
    %c0_i32_0 = arith.constant 0 : i32
    %c0_i32_1 = arith.constant 0 : i32
    return %c0_i32, %c0_i32_0 : i32, i32
  }
  func.func @transform_7(%arg0: i32) -> (i32, i32) {
    %c0_i32 = arith.constant 0 : i32
    %c0_i32_0 = arith.constant 0 : i32
    %c0_i32_1 = arith.constant 0 : i32
    return %c0_i32, %c0_i32_0 : i32, i32
  }
  func.func @transform_8(%arg0: i32) -> (i32, i32) {
    %c0_i32 = arith.constant 0 : i32
    %c0_i32_0 = arith.constant 0 : i32
    %c0_i32_1 = arith.constant 0 : i32
    return %c0_i32, %c0_i32_0 : i32, i32
  }
  func.func @transform_9(%arg0: i32) -> (i32, i32) {
    %c0_i32 = arith.constant 0 : i32
    %c0_i32_0 = arith.constant 0 : i32
    %c0_i32_1 = arith.constant 0 : i32
    return %c0_i32, %c0_i32_0 : i32, i32
  }
  func.func @transform_10(%arg0: i32) -> (i32, i32) {
    %c0_i32 = arith.constant 0 : i32
    %c0_i32_0 = arith.constant 0 : i32
    %c0_i32_1 = arith.constant 0 : i32
    return %c0_i32, %c0_i32_0 : i32, i32
  }
  func.func @transform_11(%arg0: i32) -> (i32, i32, i32) {
    %c0_i32 = arith.constant 0 : i32
    %c0_i32_0 = arith.constant 0 : i32
    %c0_i32_1 = arith.constant 0 : i32
    return %arg0, %c0_i32, %c0_i32_0 : i32, i32, i32
  }
}

module attributes {stable_mosaic.version = 11 : i64} {
  func.func @layer_kernel(%arg0: i32, %arg1: memref<1x8x32xf32, #tpu.memory_space<vmem>>, %arg2: memref<1x6x32xf32, #tpu.memory_space<vmem>>, %arg3: memref<32x96xbf16, #tpu.memory_space<vmem>>, %arg4: memref<1x96xf32, #tpu.memory_space<vmem>>, %arg5: memref<32x32xbf16, #tpu.memory_space<vmem>>, %arg6: memref<1x32xf32, #tpu.memory_space<vmem>>, %arg7: memref<32x128xbf16, #tpu.memory_space<vmem>>, %arg8: memref<1x128xf32, #tpu.memory_space<vmem>>, %arg9: memref<128x32xbf16, #tpu.memory_space<vmem>>, %arg10: memref<1x32xf32, #tpu.memory_space<vmem>>, %arg11: memref<32x32xbf16, #tpu.memory_space<vmem>>, %arg12: memref<1x32xf32, #tpu.memory_space<vmem>>, %arg13: memref<1x8x32xf32, #tpu.memory_space<vmem>>) attributes {dimension_semantics = [#tpu.dimension_semantics<parallel>], iteration_bounds = array<i64: 2>, scalar_prefetch = 0 : i64, scratch_operands = 0 : i64, tpu.core_type = #tpu.core_type<tc>, window_params = [{transform_indices = @transform_0, window_bounds = array<i64: 1, 8, 32>}, {transform_indices = @transform_1, window_bounds = array<i64: 1, 6, 32>}, {pipeline_mode = #tpu.pipeline_mode<synchronous>, transform_indices = @transform_2, window_bounds = array<i64: 32, 96>}, {pipeline_mode = #tpu.pipeline_mode<synchronous>, transform_indices = @transform_3, window_bounds = array<i64: 1, 96>}, {pipeline_mode = #tpu.pipeline_mode<synchronous>, transform_indices = @transform_4, window_bounds = array<i64: 32, 32>}, {pipeline_mode = #tpu.pipeline_mode<synchronous>, transform_indices = @transform_5, window_bounds = array<i64: 1, 32>}, {pipeline_mode = #tpu.pipeline_mode<synchronous>, transform_indices = @transform_6, window_bounds = array<i64: 32, 128>}, {pipeline_mode = #tpu.pipeline_mode<synchronous>, transform_indices = @transform_7, window_bounds = array<i64: 1, 128>}, {pipeline_mode = #tpu.pipeline_mode<synchronous>, transform_indices = @transform_8, window_bounds = array<i64: 128, 32>}, {pipeline_mode = #tpu.pipeline_mode<synchronous>, transform_indices = @transform_9, window_bounds = array<i64: 1, 32>}, {pipeline_mode = #tpu.pipeline_mode<synchronous>, transform_indices = @transform_10, window_bounds = array<i64: 32, 32>}, {pipeline_mode = #tpu.pipeline_mode<synchronous>, transform_indices = @transform_11, window_bounds = array<i64: 1, 32>}, {transform_indices = @transform_12, window_bounds = array<i64: 1, 8, 32>}]} {
    %c0 = arith.constant 0 : index
    %c0_0 = arith.constant 0 : index
    %c0_1 = arith.constant 0 : index
    %0 = vector.load %arg1[%c0, %c0_0, %c0_1] : memref<1x8x32xf32, #tpu.memory_space<vmem>>, vector<1x8x32xf32>
    %1 = vector.shape_cast %0 : vector<1x8x32xf32> to vector<8x32xf32>
    %c0_2 = arith.constant 0 : index
    %c0_3 = arith.constant 0 : index
    %c0_4 = arith.constant 0 : index
    %2 = vector.load %arg2[%c0_2, %c0_3, %c0_4] : memref<1x6x32xf32, #tpu.memory_space<vmem>>, vector<1x6x32xf32>
    %3 = vector.shape_cast %2 : vector<1x6x32xf32> to vector<6x32xf32>
    %4 = vector.extract_strided_slice %3 {offsets = [0, 0], sizes = [1, 32], strides = [1, 1]} : vector<6x32xf32> to vector<1x32xf32>
    %5 = vector.extract_strided_slice %3 {offsets = [1, 0], sizes = [1, 32], strides = [1, 1]} : vector<6x32xf32> to vector<1x32xf32>
    %6 = vector.extract_strided_slice %3 {offsets = [2, 0], sizes = [1, 32], strides = [1, 1]} : vector<6x32xf32> to vector<1x32xf32>
    %7 = vector.extract_strided_slice %3 {offsets = [3, 0], sizes = [1, 32], strides = [1, 1]} : vector<6x32xf32> to vector<1x32xf32>
    %8 = vector.extract_strided_slice %3 {offsets = [4, 0], sizes = [1, 32], strides = [1, 1]} : vector<6x32xf32> to vector<1x32xf32>
    %9 = vector.extract_strided_slice %3 {offsets = [5, 0], sizes = [1, 32], strides = [1, 1]} : vector<6x32xf32> to vector<1x32xf32>
    %10 = arith.mulf %1, %1 : vector<8x32xf32>
    %cst = arith.constant dense<0.000000e+00> : vector<8xf32>
    %11 = vector.multi_reduction <add>, %10, %cst [1] : vector<8x32xf32> to vector<8xf32>
    %12 = vector.shape_cast %11 : vector<8xf32> to vector<8x1xf32>
    %cst_5 = arith.constant 1.000000e-30 : f32
    %13 = vector.broadcast %cst_5 : f32 to vector<8x1xf32>
    %14 = arith.maximumf %12, %13 : vector<8x1xf32>
    %15 = math.rsqrt %14 : vector<8x1xf32>
    %16 = arith.mulf %14, %15 : vector<8x1xf32>
    %cst_6 = arith.constant -0.99999988 : f32
    %cst_7 = arith.constant 0.99999988 : f32
    %17 = vector.broadcast %cst_6 : f32 to vector<8x1xf32>
    %18 = arith.maximumf %17, %16 : vector<8x1xf32>
    %19 = vector.broadcast %cst_7 : f32 to vector<8x1xf32>
    %20 = arith.minimumf %19, %18 : vector<8x1xf32>
    %cst_8 = arith.constant 1.000000e+00 : f32
    %21 = vector.broadcast %cst_8 : f32 to vector<8x1xf32>
    %22 = arith.addf %21, %20 : vector<8x1xf32>
    %cst_9 = arith.constant 1.000000e+00 : f32
    %23 = vector.broadcast %cst_9 : f32 to vector<8x1xf32>
    %24 = arith.subf %23, %20 : vector<8x1xf32>
    %25 = arith.divf %22, %24 : vector<8x1xf32>
    %26 = math.log %25 : vector<8x1xf32>
    %cst_10 = arith.constant 5.000000e-01 : f32
    %27 = vector.broadcast %cst_10 : f32 to vector<8x1xf32>
    %28 = arith.mulf %27, %26 : vector<8x1xf32>
    %29 = arith.mulf %28, %15 : vector<8x1xf32>
    %30 = vector.broadcast %29 : vector<8x1xf32> to vector<8x32xf32>
    %31 = arith.mulf %30, %1 : vector<8x32xf32>
    %cst_11 = arith.constant dense<0.000000e+00> : vector<8xf32>
    %32 = vector.multi_reduction <add>, %31, %cst_11 [1] : vector<8x32xf32> to vector<8xf32>
    %33 = vector.shape_cast %32 : vector<8xf32> to vector<8x1xf32>
    %cst_12 = arith.constant 3.200000e+01 : f32
    %34 = vector.broadcast %cst_12 : f32 to vector<8x1xf32>
    %35 = arith.divf %33, %34 : vector<8x1xf32>
    %36 = vector.broadcast %35 : vector<8x1xf32> to vector<8x32xf32>
    %37 = arith.subf %31, %36 : vector<8x32xf32>
    %38 = arith.mulf %37, %37 : vector<8x32xf32>
    %cst_13 = arith.constant dense<0.000000e+00> : vector<8xf32>
    %39 = vector.multi_reduction <add>, %38, %cst_13 [1] : vector<8x32xf32> to vector<8xf32>
    %40 = vector.shape_cast %39 : vector<8xf32> to vector<8x1xf32>
    %cst_14 = arith.constant 3.200000e+01 : f32
    %41 = vector.broadcast %cst_14 : f32 to vector<8x1xf32>
    %42 = arith.divf %40, %41 : vector<8x1xf32>
    %43 = vector.broadcast %35 : vector<8x1xf32> to vector<8x32xf32>
    %44 = arith.subf %31, %43 : vector<8x32xf32>
    %cst_15 = arith.constant 9.99999997E-7 : f32
    %45 = vector.broadcast %cst_15 : f32 to vector<8x1xf32>
    %46 = arith.addf %42, %45 : vector<8x1xf32>
    %47 = math.rsqrt %46 : vector<8x1xf32>
    %48 = vector.broadcast %47 : vector<8x1xf32> to vector<8x32xf32>
    %49 = arith.mulf %44, %48 : vector<8x32xf32>
    %cst_16 = arith.constant 1.000000e+00 : f32
    %50 = vector.broadcast %cst_16 : f32 to vector<1x32xf32>
    %51 = arith.addf %50, %5 : vector<1x32xf32>
    %52 = vector.broadcast %51 : vector<1x32xf32> to vector<8x32xf32>
    %53 = arith.mulf %49, %52 : vector<8x32xf32>
    %54 = vector.broadcast %4 : vector<1x32xf32> to vector<8x32xf32>
    %55 = arith.addf %53, %54 : vector<8x32xf32>
    %56 = arith.truncf %55 : vector<8x32xf32> to vector<8x32xbf16>
    %c0_17 = arith.constant 0 : index
    %c0_18 = arith.constant 0 : index
    %57 = vector.load %arg3[%c0_17, %c0_18] : memref<32x96xbf16, #tpu.memory_space<vmem>>, vector<32x96xbf16>
    %cst_19 = arith.constant dense<0.000000e+00> : vector<8x96xf32>
    %58 = tpu.matmul %56, %57, %cst_19 {dimension_numbers = #tpu.dot_dimension_numbers<[1], [0], [0], [1], [0, 0, 1, 1], [], []>} : vector<8x32xbf16>, vector<32x96xbf16>, vector<8x96xf32> -> vector<8x96xf32>
    %c0_20 = arith.constant 0 : index
    %c0_21 = arith.constant 0 : index
    %59 = vector.load %arg4[%c0_20, %c0_21] : memref<1x96xf32, #tpu.memory_space<vmem>>, vector<1x96xf32>
    %60 = vector.broadcast %59 : vector<1x96xf32> to vector<8x96xf32>
    %61 = arith.addf %58, %60 : vector<8x96xf32>
    %62 = vector.extract_strided_slice %61 {offsets = [0, 0], sizes = [8, 8], strides = [1, 1]} : vector<8x96xf32> to vector<8x8xf32>
    %63 = vector.extract_strided_slice %61 {offsets = [0, 32], sizes = [8, 8], strides = [1, 1]} : vector<8x96xf32> to vector<8x8xf32>
    %64 = vector.extract_strided_slice %61 {offsets = [0, 64], sizes = [8, 8], strides = [1, 1]} : vector<8x96xf32> to vector<8x8xf32>
    %65 = arith.truncf %62 : vector<8x8xf32> to vector<8x8xbf16>
    %66 = arith.truncf %63 : vector<8x8xf32> to vector<8x8xbf16>
    %cst_22 = arith.constant dense<0.000000e+00> : vector<8x8xf32>
    %67 = tpu.matmul %65, %66, %cst_22 {dimension_numbers = #tpu.dot_dimension_numbers<[1], [1], [0], [0], [0, 0, 1, 0], [], []>} : vector<8x8xbf16>, vector<8x8xbf16>, vector<8x8xf32> -> vector<8x8xf32>
    %cst_23 = arith.constant dense<0xFF800000> : vector<8xf32>
    %68 = vector.multi_reduction <maximumf>, %67, %cst_23 [1] : vector<8x8xf32> to vector<8xf32>
    %69 = vector.shape_cast %68 : vector<8xf32> to vector<8x1xf32>
    %70 = vector.broadcast %69 : vector<8x1xf32> to vector<8x8xf32>
    %71 = arith.subf %67, %70 : vector<8x8xf32>
    %72 = math.exp %71 : vector<8x8xf32>
    %cst_24 = arith.constant dense<0.000000e+00> : vector<8xf32>
    %73 = vector.multi_reduction <add>, %72, %cst_24 [1] : vector<8x8xf32> to vector<8xf32>
    %74 = vector.shape_cast %73 : vector<8xf32> to vector<8x1xf32>
    %75 = arith.truncf %72 : vector<8x8xf32> to vector<8x8xbf16>
    %76 = arith.truncf %64 : vector<8x8xf32> to vector<8x8xbf16>
    %cst_25 = arith.constant dense<0.000000e+00> : vector<8x8xf32>
    %77 = tpu.matmul %75, %76, %cst_25 {dimension_numbers = #tpu.dot_dimension_numbers<[1], [0], [0], [1], [0, 0, 1, 1], [], []>} : vector<8x8xbf16>, vector<8x8xbf16>, vector<8x8xf32> -> vector<8x8xf32>
    %78 = tpu.reciprocal %74 {approx = true} : vector<8x1xf32> -> vector<8x1xf32>
    %79 = vector.broadcast %78 : vector<8x1xf32> to vector<8x8xf32>
    %80 = arith.mulf %77, %79 : vector<8x8xf32>
    %81 = vector.extract_strided_slice %61 {offsets = [0, 8], sizes = [8, 8], strides = [1, 1]} : vector<8x96xf32> to vector<8x8xf32>
    %82 = vector.extract_strided_slice %61 {offsets = [0, 40], sizes = [8, 8], strides = [1, 1]} : vector<8x96xf32> to vector<8x8xf32>
    %83 = vector.extract_strided_slice %61 {offsets = [0, 72], sizes = [8, 8], strides = [1, 1]} : vector<8x96xf32> to vector<8x8xf32>
    %84 = arith.truncf %81 : vector<8x8xf32> to vector<8x8xbf16>
    %85 = arith.truncf %82 : vector<8x8xf32> to vector<8x8xbf16>
    %cst_26 = arith.constant dense<0.000000e+00> : vector<8x8xf32>
    %86 = tpu.matmul %84, %85, %cst_26 {dimension_numbers = #tpu.dot_dimension_numbers<[1], [1], [0], [0], [0, 0, 1, 0], [], []>} : vector<8x8xbf16>, vector<8x8xbf16>, vector<8x8xf32> -> vector<8x8xf32>
    %cst_27 = arith.constant dense<0xFF800000> : vector<8xf32>
    %87 = vector.multi_reduction <maximumf>, %86, %cst_27 [1] : vector<8x8xf32> to vector<8xf32>
    %88 = vector.shape_cast %87 : vector<8xf32> to vector<8x1xf32>
    %89 = vector.broadcast %88 : vector<8x1xf32> to vector<8x8xf32>
    %90 = arith.subf %86, %89 : vector<8x8xf32>
    %91 = math.exp %90 : vector<8x8xf32>
    %cst_28 = arith.constant dense<0.000000e+00> : vector<8xf32>
    %92 = vector.multi_reduction <add>, %91, %cst_28 [1] : vector<8x8xf32> to vector<8xf32>
    %93 = vector.shape_cast %92 : vector<8xf32> to vector<8x1xf32>
    %94 = arith.truncf %91 : vector<8x8xf32> to vector<8x8xbf16>
    %95 = arith.truncf %83 : vector<8x8xf32> to vector<8x8xbf16>
    %cst_29 = arith.constant dense<0.000000e+00> : vector<8x8xf32>
    %96 = tpu.matmul %94, %95, %cst_29 {dimension_numbers = #tpu.dot_dimension_numbers<[1], [0], [0], [1], [0, 0, 1, 1], [], []>} : vector<8x8xbf16>, vector<8x8xbf16>, vector<8x8xf32> -> vector<8x8xf32>
    %97 = tpu.reciprocal %93 {approx = true} : vector<8x1xf32> -> vector<8x1xf32>
    %98 = vector.broadcast %97 : vector<8x1xf32> to vector<8x8xf32>
    %99 = arith.mulf %96, %98 : vector<8x8xf32>
    %100 = vector.extract_strided_slice %61 {offsets = [0, 16], sizes = [8, 8], strides = [1, 1]} : vector<8x96xf32> to vector<8x8xf32>
    %101 = vector.extract_strided_slice %61 {offsets = [0, 48], sizes = [8, 8], strides = [1, 1]} : vector<8x96xf32> to vector<8x8xf32>
    %102 = vector.extract_strided_slice %61 {offsets = [0, 80], sizes = [8, 8], strides = [1, 1]} : vector<8x96xf32> to vector<8x8xf32>
    %103 = arith.truncf %100 : vector<8x8xf32> to vector<8x8xbf16>
    %104 = arith.truncf %101 : vector<8x8xf32> to vector<8x8xbf16>
    %cst_30 = arith.constant dense<0.000000e+00> : vector<8x8xf32>
    %105 = tpu.matmul %103, %104, %cst_30 {dimension_numbers = #tpu.dot_dimension_numbers<[1], [1], [0], [0], [0, 0, 1, 0], [], []>} : vector<8x8xbf16>, vector<8x8xbf16>, vector<8x8xf32> -> vector<8x8xf32>
    %cst_31 = arith.constant dense<0xFF800000> : vector<8xf32>
    %106 = vector.multi_reduction <maximumf>, %105, %cst_31 [1] : vector<8x8xf32> to vector<8xf32>
    %107 = vector.shape_cast %106 : vector<8xf32> to vector<8x1xf32>
    %108 = vector.broadcast %107 : vector<8x1xf32> to vector<8x8xf32>
    %109 = arith.subf %105, %108 : vector<8x8xf32>
    %110 = math.exp %109 : vector<8x8xf32>
    %cst_32 = arith.constant dense<0.000000e+00> : vector<8xf32>
    %111 = vector.multi_reduction <add>, %110, %cst_32 [1] : vector<8x8xf32> to vector<8xf32>
    %112 = vector.shape_cast %111 : vector<8xf32> to vector<8x1xf32>
    %113 = arith.truncf %110 : vector<8x8xf32> to vector<8x8xbf16>
    %114 = arith.truncf %102 : vector<8x8xf32> to vector<8x8xbf16>
    %cst_33 = arith.constant dense<0.000000e+00> : vector<8x8xf32>
    %115 = tpu.matmul %113, %114, %cst_33 {dimension_numbers = #tpu.dot_dimension_numbers<[1], [0], [0], [1], [0, 0, 1, 1], [], []>} : vector<8x8xbf16>, vector<8x8xbf16>, vector<8x8xf32> -> vector<8x8xf32>
    %116 = tpu.reciprocal %112 {approx = true} : vector<8x1xf32> -> vector<8x1xf32>
    %117 = vector.broadcast %116 : vector<8x1xf32> to vector<8x8xf32>
    %118 = arith.mulf %115, %117 : vector<8x8xf32>
    %119 = vector.extract_strided_slice %61 {offsets = [0, 24], sizes = [8, 8], strides = [1, 1]} : vector<8x96xf32> to vector<8x8xf32>
    %120 = vector.extract_strided_slice %61 {offsets = [0, 56], sizes = [8, 8], strides = [1, 1]} : vector<8x96xf32> to vector<8x8xf32>
    %121 = vector.extract_strided_slice %61 {offsets = [0, 88], sizes = [8, 8], strides = [1, 1]} : vector<8x96xf32> to vector<8x8xf32>
    %122 = arith.truncf %119 : vector<8x8xf32> to vector<8x8xbf16>
    %123 = arith.truncf %120 : vector<8x8xf32> to vector<8x8xbf16>
    %cst_34 = arith.constant dense<0.000000e+00> : vector<8x8xf32>
    %124 = tpu.matmul %122, %123, %cst_34 {dimension_numbers = #tpu.dot_dimension_numbers<[1], [1], [0], [0], [0, 0, 1, 0], [], []>} : vector<8x8xbf16>, vector<8x8xbf16>, vector<8x8xf32> -> vector<8x8xf32>
    %cst_35 = arith.constant dense<0xFF800000> : vector<8xf32>
    %125 = vector.multi_reduction <maximumf>, %124, %cst_35 [1] : vector<8x8xf32> to vector<8xf32>
    %126 = vector.shape_cast %125 : vector<8xf32> to vector<8x1xf32>
    %127 = vector.broadcast %126 : vector<8x1xf32> to vector<8x8xf32>
    %128 = arith.subf %124, %127 : vector<8x8xf32>
    %129 = math.exp %128 : vector<8x8xf32>
    %cst_36 = arith.constant dense<0.000000e+00> : vector<8xf32>
    %130 = vector.multi_reduction <add>, %129, %cst_36 [1] : vector<8x8xf32> to vector<8xf32>
    %131 = vector.shape_cast %130 : vector<8xf32> to vector<8x1xf32>
    %132 = arith.truncf %129 : vector<8x8xf32> to vector<8x8xbf16>
    %133 = arith.truncf %121 : vector<8x8xf32> to vector<8x8xbf16>
    %cst_37 = arith.constant dense<0.000000e+00> : vector<8x8xf32>
    %134 = tpu.matmul %132, %133, %cst_37 {dimension_numbers = #tpu.dot_dimension_numbers<[1], [0], [0], [1], [0, 0, 1, 1], [], []>} : vector<8x8xbf16>, vector<8x8xbf16>, vector<8x8xf32> -> vector<8x8xf32>
    %135 = tpu.reciprocal %131 {approx = true} : vector<8x1xf32> -> vector<8x1xf32>
    %136 = vector.broadcast %135 : vector<8x1xf32> to vector<8x8xf32>
    %137 = arith.mulf %134, %136 : vector<8x8xf32>
    %138 = tpu.concatenate %80, %99, %118, %137 in 1 : vector<8x8xf32>, vector<8x8xf32>, vector<8x8xf32>, vector<8x8xf32> -> vector<8x32xf32>
    %139 = arith.truncf %138 : vector<8x32xf32> to vector<8x32xbf16>
    %c0_38 = arith.constant 0 : index
    %c0_39 = arith.constant 0 : index
    %140 = vector.load %arg5[%c0_38, %c0_39] : memref<32x32xbf16, #tpu.memory_space<vmem>>, vector<32x32xbf16>
    %cst_40 = arith.constant dense<0.000000e+00> : vector<8x32xf32>
    %141 = tpu.matmul %139, %140, %cst_40 {dimension_numbers = #tpu.dot_dimension_numbers<[1], [0], [0], [1], [0, 0, 1, 1], [], []>} : vector<8x32xbf16>, vector<32x32xbf16>, vector<8x32xf32> -> vector<8x32xf32>
    %c0_41 = arith.constant 0 : index
    %c0_42 = arith.constant 0 : index
    %142 = vector.load %arg6[%c0_41, %c0_42] : memref<1x32xf32, #tpu.memory_space<vmem>>, vector<1x32xf32>
    %143 = vector.broadcast %142 : vector<1x32xf32> to vector<8x32xf32>
    %144 = arith.addf %141, %143 : vector<8x32xf32>
    %145 = vector.broadcast %6 : vector<1x32xf32> to vector<8x32xf32>
    %146 = arith.mulf %145, %144 : vector<8x32xf32>
    %147 = arith.mulf %146, %146 : vector<8x32xf32>
    %cst_43 = arith.constant dense<0.000000e+00> : vector<8xf32>
    %148 = vector.multi_reduction <add>, %147, %cst_43 [1] : vector<8x32xf32> to vector<8xf32>
    %149 = vector.shape_cast %148 : vector<8xf32> to vector<8x1xf32>
    %cst_44 = arith.constant 1.000000e-30 : f32
    %150 = vector.broadcast %cst_44 : f32 to vector<8x1xf32>
    %151 = arith.maximumf %149, %150 : vector<8x1xf32>
    %152 = math.rsqrt %151 : vector<8x1xf32>
    %153 = arith.mulf %151, %152 : vector<8x1xf32>
    %154 = math.tanh %153 : vector<8x1xf32>
    %155 = arith.mulf %154, %152 : vector<8x1xf32>
    %156 = vector.broadcast %155 : vector<8x1xf32> to vector<8x32xf32>
    %157 = arith.mulf %156, %146 : vector<8x32xf32>
    %158 = arith.mulf %157, %157 : vector<8x32xf32>
    %cst_45 = arith.constant dense<0.000000e+00> : vector<8xf32>
    %159 = vector.multi_reduction <add>, %158, %cst_45 [1] : vector<8x32xf32> to vector<8xf32>
    %160 = vector.shape_cast %159 : vector<8xf32> to vector<8x1xf32>
    %161 = arith.mulf %1, %157 : vector<8x32xf32>
    %cst_46 = arith.constant dense<0.000000e+00> : vector<8xf32>
    %162 = vector.multi_reduction <add>, %161, %cst_46 [1] : vector<8x32xf32> to vector<8xf32>
    %163 = vector.shape_cast %162 : vector<8xf32> to vector<8x1xf32>
    %cst_47 = arith.constant 2.000000e+00 : f32
    %164 = vector.broadcast %cst_47 : f32 to vector<8x1xf32>
    %165 = arith.mulf %164, %163 : vector<8x1xf32>
    %cst_48 = arith.constant 1.000000e+00 : f32
    %166 = vector.broadcast %cst_48 : f32 to vector<8x1xf32>
    %167 = arith.addf %166, %165 : vector<8x1xf32>
    %cst_49 = arith.constant 1.000000e+00 : f32
    %168 = vector.broadcast %cst_49 : f32 to vector<8x1xf32>
    %169 = arith.mulf %168, %160 : vector<8x1xf32>
    %170 = arith.addf %167, %169 : vector<8x1xf32>
    %171 = vector.broadcast %170 : vector<8x1xf32> to vector<8x32xf32>
    %172 = arith.mulf %171, %1 : vector<8x32xf32>
    %cst_50 = arith.constant 1.000000e+00 : f32
    %173 = vector.broadcast %cst_50 : f32 to vector<8x1xf32>
    %174 = arith.mulf %173, %12 : vector<8x1xf32>
    %cst_51 = arith.constant 1.000000e+00 : f32
    %175 = vector.broadcast %cst_51 : f32 to vector<8x1xf32>
    %176 = arith.subf %175, %174 : vector<8x1xf32>
    %177 = vector.broadcast %176 : vector<8x1xf32> to vector<8x32xf32>
    %178 = arith.mulf %177, %157 : vector<8x32xf32>
    %179 = arith.addf %172, %178 : vector<8x32xf32>
    %cst_52 = arith.constant 2.000000e+00 : f32
    %180 = vector.broadcast %cst_52 : f32 to vector<8x1xf32>
    %181 = arith.mulf %180, %163 : vector<8x1xf32>
    %cst_53 = arith.constant 1.000000e+00 : f32
    %182 = vector.broadcast %cst_53 : f32 to vector<8x1xf32>
    %183 = arith.addf %182, %181 : vector<8x1xf32>
    %cst_54 = arith.constant 1.000000e+00 : f32
    %184 = vector.broadcast %cst_54 : f32 to vector<8x1xf32>
    %185 = arith.mulf %184, %12 : vector<8x1xf32>
    %186 = arith.mulf %185, %160 : vector<8x1xf32>
    %187 = arith.addf %183, %186 : vector<8x1xf32>
    %cst_55 = arith.constant 1.000000e-15 : f32
    %188 = vector.broadcast %cst_55 : f32 to vector<8x1xf32>
    %189 = arith.maximumf %187, %188 : vector<8x1xf32>
    %190 = vector.broadcast %189 : vector<8x1xf32> to vector<8x32xf32>
    %191 = arith.divf %179, %190 : vector<8x32xf32>
    %192 = arith.mulf %191, %191 : vector<8x32xf32>
    %cst_56 = arith.constant dense<0.000000e+00> : vector<8xf32>
    %193 = vector.multi_reduction <add>, %192, %cst_56 [1] : vector<8x32xf32> to vector<8xf32>
    %194 = vector.shape_cast %193 : vector<8xf32> to vector<8x1xf32>
    %cst_57 = arith.constant 1.000000e-30 : f32
    %195 = vector.broadcast %cst_57 : f32 to vector<8x1xf32>
    %196 = arith.maximumf %194, %195 : vector<8x1xf32>
    %197 = math.rsqrt %196 : vector<8x1xf32>
    %198 = arith.mulf %196, %197 : vector<8x1xf32>
    %cst_58 = arith.constant -0.99999988 : f32
    %cst_59 = arith.constant 0.99999988 : f32
    %199 = vector.broadcast %cst_58 : f32 to vector<8x1xf32>
    %200 = arith.maximumf %199, %198 : vector<8x1xf32>
    %201 = vector.broadcast %cst_59 : f32 to vector<8x1xf32>
    %202 = arith.minimumf %201, %200 : vector<8x1xf32>
    %cst_60 = arith.constant 1.000000e+00 : f32
    %203 = vector.broadcast %cst_60 : f32 to vector<8x1xf32>
    %204 = arith.addf %203, %202 : vector<8x1xf32>
    %cst_61 = arith.constant 1.000000e+00 : f32
    %205 = vector.broadcast %cst_61 : f32 to vector<8x1xf32>
    %206 = arith.subf %205, %202 : vector<8x1xf32>
    %207 = arith.divf %204, %206 : vector<8x1xf32>
    %208 = math.log %207 : vector<8x1xf32>
    %cst_62 = arith.constant 5.000000e-01 : f32
    %209 = vector.broadcast %cst_62 : f32 to vector<8x1xf32>
    %210 = arith.mulf %209, %208 : vector<8x1xf32>
    %211 = arith.mulf %210, %197 : vector<8x1xf32>
    %212 = vector.broadcast %211 : vector<8x1xf32> to vector<8x32xf32>
    %213 = arith.mulf %212, %191 : vector<8x32xf32>
    %cst_63 = arith.constant dense<0.000000e+00> : vector<8xf32>
    %214 = vector.multi_reduction <add>, %213, %cst_63 [1] : vector<8x32xf32> to vector<8xf32>
    %215 = vector.shape_cast %214 : vector<8xf32> to vector<8x1xf32>
    %cst_64 = arith.constant 3.200000e+01 : f32
    %216 = vector.broadcast %cst_64 : f32 to vector<8x1xf32>
    %217 = arith.divf %215, %216 : vector<8x1xf32>
    %218 = vector.broadcast %217 : vector<8x1xf32> to vector<8x32xf32>
    %219 = arith.subf %213, %218 : vector<8x32xf32>
    %220 = arith.mulf %219, %219 : vector<8x32xf32>
    %cst_65 = arith.constant dense<0.000000e+00> : vector<8xf32>
    %221 = vector.multi_reduction <add>, %220, %cst_65 [1] : vector<8x32xf32> to vector<8xf32>
    %222 = vector.shape_cast %221 : vector<8xf32> to vector<8x1xf32>
    %cst_66 = arith.constant 3.200000e+01 : f32
    %223 = vector.broadcast %cst_66 : f32 to vector<8x1xf32>
    %224 = arith.divf %222, %223 : vector<8x1xf32>
    %225 = vector.broadcast %217 : vector<8x1xf32> to vector<8x32xf32>
    %226 = arith.subf %213, %225 : vector<8x32xf32>
    %cst_67 = arith.constant 9.99999997E-7 : f32
    %227 = vector.broadcast %cst_67 : f32 to vector<8x1xf32>
    %228 = arith.addf %224, %227 : vector<8x1xf32>
    %229 = math.rsqrt %228 : vector<8x1xf32>
    %230 = vector.broadcast %229 : vector<8x1xf32> to vector<8x32xf32>
    %231 = arith.mulf %226, %230 : vector<8x32xf32>
    %cst_68 = arith.constant 1.000000e+00 : f32
    %232 = vector.broadcast %cst_68 : f32 to vector<1x32xf32>
    %233 = arith.addf %232, %8 : vector<1x32xf32>
    %234 = vector.broadcast %233 : vector<1x32xf32> to vector<8x32xf32>
    %235 = arith.mulf %231, %234 : vector<8x32xf32>
    %236 = vector.broadcast %7 : vector<1x32xf32> to vector<8x32xf32>
    %237 = arith.addf %235, %236 : vector<8x32xf32>
    %238 = arith.truncf %237 : vector<8x32xf32> to vector<8x32xbf16>
    %c0_69 = arith.constant 0 : index
    %c0_70 = arith.constant 0 : index
    %239 = vector.load %arg7[%c0_69, %c0_70] : memref<32x128xbf16, #tpu.memory_space<vmem>>, vector<32x128xbf16>
    %cst_71 = arith.constant dense<0.000000e+00> : vector<8x128xf32>
    %240 = tpu.matmul %238, %239, %cst_71 {dimension_numbers = #tpu.dot_dimension_numbers<[1], [0], [0], [1], [0, 0, 1, 1], [], []>} : vector<8x32xbf16>, vector<32x128xbf16>, vector<8x128xf32> -> vector<8x128xf32>
    %c0_72 = arith.constant 0 : index
    %c0_73 = arith.constant 0 : index
    %241 = vector.load %arg8[%c0_72, %c0_73] : memref<1x128xf32, #tpu.memory_space<vmem>>, vector<1x128xf32>
    %242 = vector.broadcast %241 : vector<1x128xf32> to vector<8x128xf32>
    %243 = arith.addf %240, %242 : vector<8x128xf32>
    %244 = arith.truncf %243 : vector<8x128xf32> to vector<8x128xbf16>
    %c0_74 = arith.constant 0 : index
    %c0_75 = arith.constant 0 : index
    %245 = vector.load %arg9[%c0_74, %c0_75] : memref<128x32xbf16, #tpu.memory_space<vmem>>, vector<128x32xbf16>
    %cst_76 = arith.constant dense<0.000000e+00> : vector<8x32xf32>
    %246 = tpu.matmul %244, %245, %cst_76 {dimension_numbers = #tpu.dot_dimension_numbers<[1], [0], [0], [1], [0, 0, 1, 1], [], []>} : vector<8x128xbf16>, vector<128x32xbf16>, vector<8x32xf32> -> vector<8x32xf32>
    %c0_77 = arith.constant 0 : index
    %c0_78 = arith.constant 0 : index
    %247 = vector.load %arg10[%c0_77, %c0_78] : memref<1x32xf32, #tpu.memory_space<vmem>>, vector<1x32xf32>
    %248 = vector.broadcast %247 : vector<1x32xf32> to vector<8x32xf32>
    %249 = arith.addf %246, %248 : vector<8x32xf32>
    %250 = vector.broadcast %9 : vector<1x32xf32> to vector<8x32xf32>
    %251 = arith.mulf %250, %249 : vector<8x32xf32>
    %252 = arith.mulf %251, %251 : vector<8x32xf32>
    %cst_79 = arith.constant dense<0.000000e+00> : vector<8xf32>
    %253 = vector.multi_reduction <add>, %252, %cst_79 [1] : vector<8x32xf32> to vector<8xf32>
    %254 = vector.shape_cast %253 : vector<8xf32> to vector<8x1xf32>
    %cst_80 = arith.constant 1.000000e-30 : f32
    %255 = vector.broadcast %cst_80 : f32 to vector<8x1xf32>
    %256 = arith.maximumf %254, %255 : vector<8x1xf32>
    %257 = math.rsqrt %256 : vector<8x1xf32>
    %258 = arith.mulf %256, %257 : vector<8x1xf32>
    %259 = math.tanh %258 : vector<8x1xf32>
    %260 = arith.mulf %259, %257 : vector<8x1xf32>
    %261 = vector.broadcast %260 : vector<8x1xf32> to vector<8x32xf32>
    %262 = arith.mulf %261, %251 : vector<8x32xf32>
    %263 = arith.mulf %262, %262 : vector<8x32xf32>
    %cst_81 = arith.constant dense<0.000000e+00> : vector<8xf32>
    %264 = vector.multi_reduction <add>, %263, %cst_81 [1] : vector<8x32xf32> to vector<8xf32>
    %265 = vector.shape_cast %264 : vector<8xf32> to vector<8x1xf32>
    %266 = arith.mulf %191, %262 : vector<8x32xf32>
    %cst_82 = arith.constant dense<0.000000e+00> : vector<8xf32>
    %267 = vector.multi_reduction <add>, %266, %cst_82 [1] : vector<8x32xf32> to vector<8xf32>
    %268 = vector.shape_cast %267 : vector<8xf32> to vector<8x1xf32>
    %cst_83 = arith.constant 2.000000e+00 : f32
    %269 = vector.broadcast %cst_83 : f32 to vector<8x1xf32>
    %270 = arith.mulf %269, %268 : vector<8x1xf32>
    %cst_84 = arith.constant 1.000000e+00 : f32
    %271 = vector.broadcast %cst_84 : f32 to vector<8x1xf32>
    %272 = arith.addf %271, %270 : vector<8x1xf32>
    %cst_85 = arith.constant 1.000000e+00 : f32
    %273 = vector.broadcast %cst_85 : f32 to vector<8x1xf32>
    %274 = arith.mulf %273, %265 : vector<8x1xf32>
    %275 = arith.addf %272, %274 : vector<8x1xf32>
    %276 = vector.broadcast %275 : vector<8x1xf32> to vector<8x32xf32>
    %277 = arith.mulf %276, %191 : vector<8x32xf32>
    %cst_86 = arith.constant 1.000000e+00 : f32
    %278 = vector.broadcast %cst_86 : f32 to vector<8x1xf32>
    %279 = arith.mulf %278, %194 : vector<8x1xf32>
    %cst_87 = arith.constant 1.000000e+00 : f32
    %280 = vector.broadcast %cst_87 : f32 to vector<8x1xf32>
    %281 = arith.subf %280, %279 : vector<8x1xf32>
    %282 = vector.broadcast %281 : vector<8x1xf32> to vector<8x32xf32>
    %283 = arith.mulf %282, %262 : vector<8x32xf32>
    %284 = arith.addf %277, %283 : vector<8x32xf32>
    %cst_88 = arith.constant 2.000000e+00 : f32
    %285 = vector.broadcast %cst_88 : f32 to vector<8x1xf32>
    %286 = arith.mulf %285, %268 : vector<8x1xf32>
    %cst_89 = arith.constant 1.000000e+00 : f32
    %287 = vector.broadcast %cst_89 : f32 to vector<8x1xf32>
    %288 = arith.addf %287, %286 : vector<8x1xf32>
    %cst_90 = arith.constant 1.000000e+00 : f32
    %289 = vector.broadcast %cst_90 : f32 to vector<8x1xf32>
    %290 = arith.mulf %289, %194 : vector<8x1xf32>
    %291 = arith.mulf %290, %265 : vector<8x1xf32>
    %292 = arith.addf %288, %291 : vector<8x1xf32>
    %cst_91 = arith.constant 1.000000e-15 : f32
    %293 = vector.broadcast %cst_91 : f32 to vector<8x1xf32>
    %294 = arith.maximumf %292, %293 : vector<8x1xf32>
    %295 = vector.broadcast %294 : vector<8x1xf32> to vector<8x32xf32>
    %296 = arith.divf %284, %295 : vector<8x32xf32>
    %297 = arith.mulf %296, %296 : vector<8x32xf32>
    %cst_92 = arith.constant dense<0.000000e+00> : vector<8xf32>
    %298 = vector.multi_reduction <add>, %297, %cst_92 [1] : vector<8x32xf32> to vector<8xf32>
    %299 = vector.shape_cast %298 : vector<8xf32> to vector<8x1xf32>
    %cst_93 = arith.constant 1.000000e-30 : f32
    %300 = vector.broadcast %cst_93 : f32 to vector<8x1xf32>
    %301 = arith.maximumf %299, %300 : vector<8x1xf32>
    %302 = math.rsqrt %301 : vector<8x1xf32>
    %303 = arith.mulf %301, %302 : vector<8x1xf32>
    %cst_94 = arith.constant -0.99999988 : f32
    %cst_95 = arith.constant 0.99999988 : f32
    %304 = vector.broadcast %cst_94 : f32 to vector<8x1xf32>
    %305 = arith.maximumf %304, %303 : vector<8x1xf32>
    %306 = vector.broadcast %cst_95 : f32 to vector<8x1xf32>
    %307 = arith.minimumf %306, %305 : vector<8x1xf32>
    %cst_96 = arith.constant 1.000000e+00 : f32
    %308 = vector.broadcast %cst_96 : f32 to vector<8x1xf32>
    %309 = arith.addf %308, %307 : vector<8x1xf32>
    %cst_97 = arith.constant 1.000000e+00 : f32
    %310 = vector.broadcast %cst_97 : f32 to vector<8x1xf32>
    %311 = arith.subf %310, %307 : vector<8x1xf32>
    %312 = arith.divf %309, %311 : vector<8x1xf32>
    %313 = math.log %312 : vector<8x1xf32>
    %cst_98 = arith.constant 5.000000e-01 : f32
    %314 = vector.broadcast %cst_98 : f32 to vector<8x1xf32>
    %315 = arith.mulf %314, %313 : vector<8x1xf32>
    %316 = arith.mulf %315, %302 : vector<8x1xf32>
    %317 = vector.broadcast %316 : vector<8x1xf32> to vector<8x32xf32>
    %318 = arith.mulf %317, %296 : vector<8x32xf32>
    %319 = arith.truncf %318 : vector<8x32xf32> to vector<8x32xbf16>
    %c0_99 = arith.constant 0 : index
    %c0_100 = arith.constant 0 : index
    %320 = vector.load %arg11[%c0_99, %c0_100] : memref<32x32xbf16, #tpu.memory_space<vmem>>, vector<32x32xbf16>
    %cst_101 = arith.constant dense<0.000000e+00> : vector<8x32xf32>
    %321 = tpu.matmul %319, %320, %cst_101 {dimension_numbers = #tpu.dot_dimension_numbers<[1], [0], [0], [1], [0, 0, 1, 1], [], []>} : vector<8x32xbf16>, vector<32x32xbf16>, vector<8x32xf32> -> vector<8x32xf32>
    %c0_102 = arith.constant 0 : index
    %c0_103 = arith.constant 0 : index
    %322 = vector.load %arg12[%c0_102, %c0_103] : memref<1x32xf32, #tpu.memory_space<vmem>>, vector<1x32xf32>
    %323 = vector.broadcast %322 : vector<1x32xf32> to vector<8x32xf32>
    %324 = arith.addf %321, %323 : vector<8x32xf32>
    %325 = arith.mulf %324, %324 : vector<8x32xf32>
    %cst_104 = arith.constant dense<0.000000e+00> : vector<8xf32>
    %326 = vector.multi_reduction <add>, %325, %cst_104 [1] : vector<8x32xf32> to vector<8xf32>
    %327 = vector.shape_cast %326 : vector<8xf32> to vector<8x1xf32>
    %cst_105 = arith.constant 1.000000e-30 : f32
    %328 = vector.broadcast %cst_105 : f32 to vector<8x1xf32>
    %329 = arith.maximumf %327, %328 : vector<8x1xf32>
    %330 = math.rsqrt %329 : vector<8x1xf32>
    %331 = arith.mulf %329, %330 : vector<8x1xf32>
    %332 = math.tanh %331 : vector<8x1xf32>
    %333 = arith.mulf %332, %330 : vector<8x1xf32>
    %334 = vector.broadcast %333 : vector<8x1xf32> to vector<8x32xf32>
    %335 = arith.mulf %334, %324 : vector<8x32xf32>
    %c0_106 = arith.constant 0 : index
    %c0_107 = arith.constant 0 : index
    %c0_108 = arith.constant 0 : index
    %336 = vector.load %arg13[%c0_106, %c0_107, %c0_108] : memref<1x8x32xf32, #tpu.memory_space<vmem>>, vector<1x8x32xf32>
    %337 = vector.shape_cast %336 : vector<1x8x32xf32> to vector<8x32xf32>
    %338 = vector.shape_cast %335 : vector<8x32xf32> to vector<1x8x32xf32>
    tpu.vector_store %arg13[%c0_106, %c0_107, %c0_108], %338 {strides = array<i32>} : memref<1x8x32xf32, #tpu.memory_space<vmem>>, vector<1x8x32xf32>,
    return
  }
  func.func @transform_0(%arg0: i32) -> (i32, i32, i32) {
    %c0_i32 = arith.constant 0 : i32
    %c0_i32_0 = arith.constant 0 : i32
    %c0_i32_1 = arith.constant 0 : i32
    return %arg0, %c0_i32, %c0_i32_0 : i32, i32, i32
  }
  func.func @transform_1(%arg0: i32) -> (i32, i32, i32) {
    %c0_i32 = arith.constant 0 : i32
    %c0_i32_0 = arith.constant 0 : i32
    %c0_i32_1 = arith.constant 0 : i32
    return %arg0, %c0_i32, %c0_i32_0 : i32, i32, i32
  }
  func.func @transform_2(%arg0: i32) -> (i32, i32) {
    %c0_i32 = arith.constant 0 : i32
    %c0_i32_0 = arith.constant 0 : i32
    %c0_i32_1 = arith.constant 0 : i32
    return %c0_i32, %c0_i32_0 : i32, i32
  }
  func.func @transform_3(%arg0: i32) -> (i32, i32) {
    %c0_i32 = arith.constant 0 : i32
    %c0_i32_0 = arith.constant 0 : i32
    %c0_i32_1 = arith.constant 0 : i32
    return %c0_i32, %c0_i32_0 : i32, i32
  }
  func.func @transform_4(%arg0: i32) -> (i32, i32) {
    %c0_i32 = arith.constant 0 : i32
    %c0_i32_0 = arith.constant 0 : i32
    %c0_i32_1 = arith.constant 0 : i32
    return %c0_i32, %c0_i32_0 : i32, i32
  }
  func.func @transform_5(%arg0: i32) -> (i32, i32) {
    %c0_i32 = arith.constant 0 : i32
    %c0_i32_0 = arith.constant 0 : i32
    %c0_i32_1 = arith.constant 0 : i32
    return %c0_i32, %c0_i32_0 : i32, i32
  }
  func.func @transform_6(%arg0: i32) -> (i32, i32) {
    %c0_i32 = arith.constant 0 : i32
    %c0_i32_0 = arith.constant 0 : i32
    %c0_i32_1 = arith.constant 0 : i32
    return %c0_i32, %c0_i32_0 : i32, i32
  }
  func.func @transform_7(%arg0: i32) -> (i32, i32) {
    %c0_i32 = arith.constant 0 : i32
    %c0_i32_0 = arith.constant 0 : i32
    %c0_i32_1 = arith.constant 0 : i32
    return %c0_i32, %c0_i32_0 : i32, i32
  }
  func.func @transform_8(%arg0: i32) -> (i32, i32) {
    %c0_i32 = arith.constant 0 : i32
    %c0_i32_0 = arith.constant 0 : i32
    %c0_i32_1 = arith.constant 0 : i32
    return %c0_i32, %c0_i32_0 : i32, i32
  }
  func.func @transform_9(%arg0: i32) -> (i32, i32) {
    %c0_i32 = arith.constant 0 : i32
    %c0_i32_0 = arith.constant 0 : i32
    %c0_i32_1 = arith.constant 0 : i32
    return %c0_i32, %c0_i32_0 : i32, i32
  }
  func.func @transform_10(%arg0: i32) -> (i32, i32) {
    %c0_i32 = arith.constant 0 : i32
    %c0_i32_0 = arith.constant 0 : i32
    %c0_i32_1 = arith.constant 0 : i32
    return %c0_i32, %c0_i32_0 : i32, i32
  }
  func.func @transform_11(%arg0: i32) -> (i32, i32) {
    %c0_i32 = arith.constant 0 : i32
    %c0_i32_0 = arith.constant 0 : i32
    %c0_i32_1 = arith.constant 0 : i32
    return %c0_i32, %c0_i32_0 : i32, i32
  }
  func.func @transform_12(%arg0: i32) -> (i32, i32, i32) {
    %c0_i32 = arith.constant 0 : i32
    %c0_i32_0 = arith.constant 0 : i32
    %c0_i32_1 = arith.constant 0 : i32
    return %arg0, %c0_i32, %c0_i32_0 : i32, i32, i32
  }
}

</mosaic_0001>

<bundles_post_ra>
// kernel: forward.2
= control target key start
LH: loop header
LB: loop body
LE: loop exit
PB: predicated region body
PF: predicated region fallthrough
CT: control target
= control target key end

     0   :  { %s1755_s17 = smov 0   ;;  %s1984_s0 = inlined_call_operand.vmem [shape: f32[2,8,32], index: 0, kind: input, shape index: {}]   ;;  %s1985_s1 = inlined_call_operand.vmem [shape: f32[2,6,32], index: 1, kind: input, shape index: {}]   ;;  %s1986_s2 = inlined_call_operand.vmem [shape: f32[8,32], index: 2, kind: input, shape index: {}]   ;;  %s1987_s3 = inlined_call_operand.vmem [shape: bf16[32,96], index: 3, kind: input, shape index: {}]   ;;  %s1988_s4 = inlined_call_operand.vmem [shape: f32[1,96], index: 4, kind: input, shape index: {}]   ;;  %s1989_s5 = inlined_call_operand.vmem [shape: bf16[32,32], index: 5, kind: input, shape index: {}]   ;;  %s1990_s6 = inlined_call_operand.vmem [shape: f32[1,32], index: 6, kind: input, shape index: {}]   ;;  %s1991_s7 = inlined_call_operand.vmem [shape: bf16[32,128], index: 7, kind: input, shape index: {}]   ;;  %s1992_s8 = inlined_call_operand.vmem [shape: f32[1,128], index: 8, kind: input, shape index: {}]   ;;  %s1993_s9 = inlined_call_operand.vmem [shape: bf16[128,32], index: 9, kind: input, shape index: {}]   ;;  %s1994_s10 = inlined_call_operand.vmem [shape: f32[1,32], index: 10, kind: input, shape index: {}]   ;;  %s1995_s11 = inlined_call_operand.vmem [shape: f32[2,8,32], index: 11, kind: output, shape index: {}]  }
   0x1 LB: > { %s1420_s18 = sadd.s32 4294967295, %s1677_s17   ;;  %p1424_p0 = scmp.ge.s32.totalorder %s1677_s17, 1  ;;  %s1677_s17 = sphi %s1755_s17, %s21_s17  }
   0x2   : > { %p345_p1 = scmp.lt.s32.totalorder %s1677_s17, 3 }
   0x4   : > { %p346_p2 = pnand %p1424_p0, %p345_p1 }
   0x5   : > { %p387_p3 = scmp.lt.s32.totalorder (!%p346_p2), %s1420_s18, 1  ;;  %v401_v0 = vld [vmem:[%s1986_s2] sm:$0xff] (!%p346_p2)  ;;  %vm403_vm0 = vcmask (!%p346_p2), 261120   ;;  %v1679_v46 = vmov (!%p346_p2), 0.0   ;;  %vm1680_vm1 = vmmov (!%p346_p2), 0   ;;  %v1612_v47 = vld [vmem:[%s1987_s3 + $0x8] sm:$0xff] (!%p346_p2)   ;;  %v461_v50 = vlaneseq (!%p346_p2) }
   0x6   : > { %349 = sbr.rel (%p346_p2) target bundleno = 3608 (0xe18), region = 64  ;;  %v407_v1 = vmul.f32 (!%p346_p2), %v401_v0, %v401_v0  ;;  %v1611_v45 = vld [vmem:[%s1987_s3] sm:$0xff] (!%p346_p2)   ;;  %1495 = vmatprep.subr.bf16.mxu0 (!%p346_p2), %v1679_v46  ;;  %1499 = vmatprep.mubr.msk.bf16.mxu0 (!%p346_p2), %vm1680_vm1, %v1679_v46  ;;  %s1681_s15 = smov (!%p346_p2), 88   ;;  %vm542_vm2 = vcmask (!%p346_p2), 64512   ;;  %vm604_vm3 = vcmask (!%p346_p2), 1043456   ;;  %vm993_vm4 = vcmask (!%p346_p2), 130048  }
   0x7   : > { %1496 = vmatpush3.bf16.msra.mxu0 (!%p346_p2), %v1611_v45  ;;  %1515 = vmatprep.subr.bf16.mxu1 (!%p346_p2), %v1679_v46  ;;  %v1804_v52 = vshrl.u32 (!%p346_p2), %v461_v50, 7  ;;  %s1682_s16 = smov (!%p346_p2), 96   ;;  %s1684_s19 = smov (!%p346_p2), 112   ;;  %vm995_vm5 = vcmask (!%p346_p2), 195584  }
   0x8   : > { %v408_v2 = vsel (!%p346_p2), %vm403_vm0, %v407_v1, 0.0  ;;  %1497 = vmatprep.subr.bf16.mxu0 (!%p346_p2), %v1679_v46  ;;  %1517 = vmatprep.mubr.msk.bf16.mxu1 (!%p346_p2), %vm1680_vm1, %v1679_v46  ;;  %s1685_s20 = smov (!%p346_p2), 80   ;;  %s1686_s22 = smov (!%p346_p2), 104  }
   0x9   : > { %409 = vadd.xlane.f32.xlu1 (!%p346_p2), %v408_v2  ;;  %v463_v55 = vsub.s32 (!%p346_p2), 1, %v1804_v52  ;;  %v468_v56 = vsub.s32 (!%p346_p2), 0, %v1804_v52  ;;  %s1687_s23 = smov (!%p346_p2), 72   ;;  %s1689_s25 = smov (!%p346_p2), 48  }
   0xa   : > { %s1690_s26 = smov (!%p346_p2), 40   ;;  %s1691_s27 = smov (!%p346_p2), 56  }
   0xb   : > { %1498 = vmatpush3.bf16.msra.mxu0 (!%p346_p2), %v1612_v47  ;;  %s1692_s30 = smov (!%p346_p2), 8   ;;  %s1693_s14 = smov (!%p346_p2), 16  }
   0xc   : > { %1503 = vmatprep.subr.bf16.mxu0 (!%p346_p2), %v1679_v46 }
   0xd   : > { %s1997_s18 = smov (!%p387_p3, %s1420_s18), 1 }
   0xe   : > { %s1767_s21 = sshll.u32 %s1997_s18, 3  ;;  %s1683_s18 = smov 120  }
   0xf   : > { %s390_s24 = scalar_lea.vmem %s1984_s0, %s1767_s21  ;;  %s394_s12 = scalar_lea.vmem %s1985_s1, %s1767_s21 }
  0x10   : > { %v400_v3 = vld [vmem:[%s390_s24] sm:$0xff]  ;;  %s1688_s24 = smov 64   ;;  %s398_s29 = scalar_lea.vmem %s1995_s11, %s1767_s21 }
  0x11   : > { %v411_v4 = vmul.f32 %v401_v0, %v400_v3  ;;  %v402_v5 = vmul.f32 %v400_v3, %v400_v3  ;;  %v1806_v53 = vld [vmem:[%s394_s12] sm:$0x3f] }
  0x12   : > { %v1809_v54 = vadd.f32 1.0, %v1806_v53  ;;  %v469_v60 = vrot.slane %v1806_v53, %v468_v56 }
  0x13   : > { %v412_v6 = vsel %vm403_vm0, %v411_v4, 0.0  ;;  %v404_v7 = vsel %vm403_vm0, %v402_v5, 0.0 }
  0x14   : > { %413 = vadd.xlane.f32.xlu0 %v412_v6  ;;  %v464_v57 = vrot.slane %v1809_v54, %v463_v55 }
  0x18   : > { %405 = vadd.xlane.f32.xlu0 %v404_v7 }
  0x96   : > { %v410_v10 = vpop.xlane.xlu1 %409 }
  0xa1   : > { %v414_v8 = vpop.xlane.xlu0 %413 }
  0xa2   : > { %v415_v9 = vmul.f32 2.0, %v414_v8 }
  0xa4   : > { %v416_v12 = vadd.f32 1.0, %v415_v9 }
  0xa5   : > { %v406_v11 = vpop.xlane.xlu0 %405 }
  0xa6   : > { %v422_v13 = vmul.f32 %v410_v10, %v406_v11  ;;  %v417_v16 = vadd.f32 %v416_v12, %v410_v10  ;;  %v419_v17 = vsub.f32 1.0, %v406_v11 }
  0xa8   : > { %v423_v14 = vadd.f32 %v422_v13, %v416_v12  ;;  %v418_v18 = vmul.f32 %v417_v16, %v400_v3  ;;  %v420_v19 = vmul.f32 %v419_v17, %v401_v0  ;;  %v1429_v0 = vld [vmem:[%s1988_s4] ss:$0 sm:$0xff] }
  0xaa   : > { %v424_v15 = vmax.f32 %v423_v14, 1e-15  ;;  %v421_v20 = vadd.f32 %v420_v19, %v418_v18 }
  0xac   : > { %1625 = vrcp.f32 %v424_v15 }
  0xb6   : > { %v1626_v21 = vpop.eup %1625 }
  0xb7   : > { %v1775_v22 = vmul.f32 %v1626_v21, %v421_v20 }
  0xb9   : > { %v428_v23 = vmul.f32 %v1775_v22, %v1775_v22 }
  0xbb   : > { %v429_v24 = vsel %vm403_vm0, %v428_v23, 0.0 }
  0xbc   : > { %430 = vadd.xlane.f32.xlu1 %v429_v24 }
 0x149   : > { %v1780_v25 = vpop.xlane.xlu1 %430 }
 0x14a   : > { %v432_v26 = vmax.f32 %v1780_v25, 1e-30 }
 0x14c   : > { %1627 = vrsqrt.f32 %v432_v26 }
 0x156   : > { %v1628_v27 = vpop.eup %1627 }
 0x157   : > { %v434_v28 = vmul.f32 %v1628_v27, %v432_v26 }
 0x159   : > { %v1428_v29 = vclamps-f32 %v434_v28, 0.9999999 }
 0x15b   : > { %v438_v30 = vsub.f32 1.0, %v1428_v29  ;;  %v437_v31 = vadd.f32 1.0, %v1428_v29 }
 0x15d   : > { %1629 = vrcp.f32 %v438_v30 }
 0x167   : > { %v1630_v32 = vpop.eup %1629 }
 0x168   : > { %v440_v33 = vmul.f32 %v1630_v32, %v437_v31 }
 0x16a   : > { %1631 = vlog2.f32 %v440_v33 }
 0x174   : > { %v1632_v34 = vpop.eup %1631 }
 0x175   : > { %v442_v35 = vmul.f32 0.6931472, %v1632_v34 }
 0x177   : > { %v443_v36 = vmul.f32 0.5, %v442_v35 }
 0x179   : > { %v444_v37 = vmul.f32 %v1628_v27, %v443_v36 }
 0x17b   : > { %v445_v38 = vmul.f32 %v444_v37, %v1775_v22 }
 0x17d   : > { %v446_v39 = vsel %vm403_vm0, %v445_v38, 0.0 }
 0x17e   : > { %447 = vadd.xlane.f32.xlu0 %v446_v39 }
 0x20b   : > { %v448_v40 = vpop.xlane.xlu0 %447 }
 0x20c   : > { %v450_v41 = vmul.f32 0.03125, %v448_v40 }
 0x20e   : > { %v451_v42 = vsub.f32 %v445_v38, %v450_v41 }
 0x210   : > { %v452_v43 = vmul.f32 %v451_v42, %v451_v42 }
 0x212   : > { %v453_v44 = vsel %vm403_vm0, %v452_v43, 0.0 }
 0x213   : > { %454 = vadd.xlane.f32.xlu1 %v453_v44 }
 0x2a0   : > { %v455_v48 = vpop.xlane.xlu1 %454 }
 0x2a1   : > { %v456_v49 = vmul.f32 0.03125, %v455_v48 }
 0x2a3   : > { %v457_v51 = vadd.f32 1e-06, %v456_v49 }
 0x2a5   : > { %1633 = vrsqrt.f32 %v457_v51 }
 0x2af   : > { %v1634_v58 = vpop.eup %1633 }
 0x2b0   : > { %v459_v59 = vmul.f32 %v1634_v58, %v451_v42 }
 0x2b2   : > { %v465_v61 = vmul.f32 %v464_v57, %v459_v59 }
 0x2b4   : > { %v470_v62 = vadd.f32 %v469_v60, %v465_v61 }
 0x2b6   : > { %v471_v63 = vpack.c.bf16 %v470_v62, %v470_v62 }
 0x2b8   : > { %1500 = vmatmul.mubr.msk.bf16.vlgmr.msra.gmra.mrb[0].mxu0 %vm403_vm0, %v471_v63 }
 0x2b9   : > { %1505 = vmatprep.mubr.msk.bf16.mxu0 %vm1680_vm1, %v1679_v46 }
 0x38b   : > { %v532_v1 = vpop.f32.mrb[0].mxu0 }
 0x38c   : > { %v533_v2 = vadd.f32 %v1429_v0, %v532_v1  ;;  %v1501_v3 = vpop.f32.mrb[1].mxu0 }
 0x38d   : > { %v535_v4 = vpop.f32.mrb[2].mxu0 }
 0x38e   : > { %v1821_v5 = vpack.c.bf16 %v533_v2, %v533_v2  ;;  %v1502_v6 = vpop.f32.mrb[3].mxu0 }
 0x390   : > { %652 = vrot.lane.b32.xlu1 %v1821_v5, %s1681_s15  ;;  %540 = vrot.lane.b32.xlu0 %v1821_v5, %s1682_s16  ;;  %s1694_s15 = smov 24  }
 0x394   : > { %650 = vrot.lane.b32.xlu1 %v1821_v5, %s1683_s18  ;;  %760 = vrot.lane.b32.xlu0 %v1821_v5, %s1684_s19 }
 0x398   : > { %762 = vrot.lane.b32.xlu1 %v1821_v5, %s1685_s20  ;;  %870 = vrot.lane.b32.xlu0 %v1821_v5, %s1686_s22 }
 0x39c   : > { %872 = vrot.lane.b32.xlu1 %v1821_v5, %s1687_s23 }
 0x402   : > { %v653_v7 = vpop.permute.xlu1 %652  ;;  %v541_v8 = vpop.permute.xlu0 %540 }
 0x403   : > { %v547_v9 = vsel %vm542_vm2, %v541_v8, 0  ;;  %v658_v10 = vsel %vm542_vm2, %v653_v7, 0 }
 0x404   : > { %1504 = vmatpush3.bf16.xpose.msra.mxu0 %v547_v9  ;;  %1516 = vmatpush3.bf16.xpose.msra.mxu1 %v658_v10 }
 0x405   : > { %1527 = vmatprep.subr.bf16.mxu1 %v1679_v46  ;;  %1509 = vmatprep.subr.bf16.mxu0 %v1679_v46 }
 0x406   : > { %v651_v11 = vpop.permute.xlu1 %650  ;;  %v761_v15 = vpop.permute.xlu0 %760 }
 0x40a   : > { %v763_v12 = vpop.permute.xlu1 %762  ;;  %v871_v17 = vpop.permute.xlu0 %870 }
 0x40b   : > { %v768_v13 = vsel %vm542_vm2, %v763_v12, 0  ;;  %1506 = vmatmul.mubr.msk.bf16.vlgmr.msra.gmra.mrb[4].mxu0 %vm542_vm2, %v1821_v5  ;;  %1518 = vmatmul.mubr.msk.bf16.vlgmr.msra.gmra.mrb[0].mxu1 %vm542_vm2, %v651_v11 }
 0x40c   : > { %1528 = vmatpush3.bf16.xpose.msra.mxu1 %v768_v13  ;;  %1529 = vmatprep.mubr.msk.bf16.mxu1 %vm1680_vm1, %v1679_v46 }
 0x40d   : > { %1539 = vmatprep.subr.bf16.mxu1 %v1679_v46  ;;  %1511 = vmatprep.mubr.msk.bf16.mxu0 %vm1680_vm1, %v1679_v46 }
 0x40e   : > { %v873_v14 = vpop.permute.xlu1 %872 }
 0x40f   : > { %v878_v16 = vsel %vm542_vm2, %v873_v14, 0 }
 0x413   : > { %1530 = vmatmul.mubr.msk.bf16.vlgmr.msra.gmra.mrb[4].mxu1 %vm542_vm2, %v761_v15 }
 0x414   : > { %1540 = vmatpush3.bf16.xpose.msra.mxu1 %v878_v16  ;;  %1541 = vmatprep.mubr.msk.bf16.mxu1 %vm1680_vm1, %v1679_v46 }
 0x415   : > { %1551 = vmatprep.subr.bf16.mxu1 %v1679_v46 }
 0x41b   : > { %1542 = vmatmul.mubr.msk.bf16.vlgmr.msra.gmra.mrb[8].mxu1 %vm542_vm2, %v871_v17 }
 0x41c   : > { %1555 = vmatprep.mubr.msk.bf16.mxu1 %vm1680_vm1, %v1679_v46 }
 0x4de   : > { %v583_v18 = vpop.f32.mrb[4].mxu0  ;;  %v694_v19 = vpop.f32.mrb[0].mxu1 }
 0x4df   : > { %v1507_v20 = vpop.f32.mrb[5].mxu0  ;;  %v1519_v21 = vpop.f32.mrb[1].mxu1  ;;  %v700_v23 = vsel %vm542_vm2, %v694_v19, -inf  ;;  %v589_v24 = vsel %vm542_vm2, %v583_v18, -inf }
 0x4e0   : > { %v697_v26 = vpop.f32.mrb[2].mxu1  ;;  %701 = vmax.xlane.f32.xlu0 %v700_v23  ;;  %590 = vmax.xlane.f32.xlu1 %v589_v24  ;;  %v586_v27 = vpop.f32.mrb[6].mxu0 }
 0x4e1   : > { %v1508_v28 = vpop.f32.mrb[7].mxu0  ;;  %v1520_v29 = vpop.f32.mrb[3].mxu1 }
 0x4e2   : > { %v1614_v28 = vld [vmem:[%s1989_s5 + $0x8] sm:$0xff]  }
 0x4e6   : > { %v804_v30 = vpop.f32.mrb[4].mxu1 }
 0x4e7   : > { %v1531_v31 = vpop.f32.mrb[5].mxu1  ;;  %v810_v32 = vsel %vm542_vm2, %v804_v30, -inf }
 0x4e8   : > { %811 = vmax.xlane.f32.xlu0 %v810_v32  ;;  %v807_v33 = vpop.f32.mrb[6].mxu1 }
 0x4e9   : > { %v1532_v34 = vpop.f32.mrb[7].mxu1 }
 0x4ee   : > { %v914_v35 = vpop.f32.mrb[8].mxu1 }
 0x4ef   : > { %v1543_v36 = vpop.f32.mrb[9].mxu1  ;;  %v920_v37 = vsel %vm542_vm2, %v914_v35, -inf }
 0x4f0   : > { %921 = vmax.xlane.f32.xlu0 %v920_v37  ;;  %v917_v38 = vpop.f32.mrb[10].mxu1 }
 0x4f1   : > { %v1544_v39 = vpop.f32.mrb[11].mxu1  ;;  %599 = vrot.lane.b32.xlu1 %v1821_v5, %s1688_s24 }
 0x4f5   : > { %820 = vrot.lane.b32.xlu1 %v1821_v5, %s1689_s25 }
 0x4f9   : > { %930 = vrot.lane.b32.xlu1 %v1821_v5, %s1690_s26 }
 0x506   : > { %710 = vrot.lane.b32.xlu0 %v1821_v5, %s1691_s27 }
 0x56d   : > { %v702_v40 = vpop.xlane.xlu0 %701  ;;  %v591_v41 = vpop.xlane.xlu1 %590 }
 0x56e   : > { %v703_v42 = vsub.f32 %v694_v19, %v702_v40  ;;  %v592_v43 = vsub.f32 %v583_v18, %v591_v41  ;;  %v1613_v18 = vld [vmem:[%s1989_s5] sm:$0xff]  }
 0x56f   : > { %1552 = vmatpush3.bf16.msra.mxu1 %v1613_v18 }
 0x570   : > { %v704_v44 = vmul.f32 1.442695, %v703_v42  ;;  %v593_v45 = vmul.f32 1.442695, %v592_v43  ;;  %1553 = vmatprep.subr.bf16.mxu1 %v1679_v46 }
 0x571   : > { %v600_v47 = vpop.permute.xlu1 %599 }
 0x572   : > { %1635 = vpow2.f32 %v704_v44  ;;  %v606_v48 = vsel %vm604_vm3, %v600_v47, 0 }
 0x573   : > { %1637 = vpow2.f32 %v593_v45  ;;  %1510 = vmatpush3.bf16.msra.mxu0 %v606_v48  ;;  %1554 = vmatpush3.bf16.msra.mxu1 %v1614_v28 }
 0x574   : > { %1521 = vmatprep.subr.bf16.mxu0 %v1679_v46  ;;  %1567 = vmatprep.subr.bf16.mxu1 %v1679_v46 }
 0x575   : > { %v812_v49 = vpop.xlane.xlu0 %811  ;;  %v821_v1 = vpop.permute.xlu1 %820 }
 0x576   : > { %v813_v50 = vsub.f32 %v804_v30, %v812_v49  ;;  %v826_v4 = vsel %vm604_vm3, %v821_v1, 0 }
 0x578   : > { %v814_v51 = vmul.f32 1.442695, %v813_v50 }
 0x579   : > { %v931_v6 = vpop.permute.xlu1 %930 }
 0x57a   : > { %1639 = vpow2.f32 %v814_v51  ;;  %v936_v9 = vsel %vm604_vm3, %v931_v6, 0 }
 0x57c   : > { %v1636_v55 = vpop.eup %1635 }
 0x57d   : > { %v1638_v56 = vpop.eup %1637  ;;  %v922_v57 = vpop.xlane.xlu0 %921  ;;  %v706_v58 = vsel %vm542_vm2, %v1636_v55, 0.0  ;;  %v709_v3 = vpack.c.bf16 %v1636_v55, %v1636_v55  ;;  %v1066_v55 = vsub.s32 2, %v1804_v52 }
 0x57e   : > { %v923_v59 = vsub.f32 %v914_v35, %v922_v57  ;;  %707 = vadd.xlane.f32.xlu1 %v706_v58  ;;  %v598_v60 = vpack.c.bf16 %v1638_v56, %v1638_v56  ;;  %v595_v10 = vsel %vm542_vm2, %v1638_v56, 0.0  ;;  %v1441_v56 = vld [vmem:[%s1990_s6] ss:$0 sm:$0xff] }
 0x57f   : > { %v1067_v57 = vrot.slane %v1806_v53, %v1066_v55  ;;  %v1617_v55 = vld [vmem:[%s1993_s9] sm:$0xff]  }
 0x580   : > { %v924_v61 = vmul.f32 1.442695, %v923_v59  ;;  %1512 = vmatmul.mubr.msk.bf16.vlgmr.msra.gmra.mrb[8].mxu0 %vm542_vm2, %v598_v60 }
 0x581   : > { %v711_v62 = vpop.permute.xlu0 %710  ;;  %1523 = vmatprep.mubr.msk.bf16.mxu0 %vm1680_vm1, %v1679_v46 }
 0x582   : > { %1641 = vpow2.f32 %v924_v61  ;;  %v716_v63 = vsel %vm604_vm3, %v711_v62, 0 }
 0x583   : > { %1522 = vmatpush3.bf16.msra.mxu0 %v716_v63 }
 0x584   : > { %v1640_v0 = vpop.eup %1639  ;;  %1533 = vmatprep.subr.bf16.mxu0 %v1679_v46 }
 0x585   : > { %v816_v2 = vsel %vm542_vm2, %v1640_v0, 0.0  ;;  %v819_v8 = vpack.c.bf16 %v1640_v0, %v1640_v0 }
 0x586   : > { %817 = vadd.xlane.f32.xlu0 %v816_v2 }
 0x588   : > { %1524 = vmatmul.mubr.msk.bf16.vlgmr.msra.gmra.mrb[12].mxu0 %vm542_vm2, %v709_v3 }
 0x589   : > { %1534 = vmatpush3.bf16.msra.mxu0 %v826_v4  ;;  %1535 = vmatprep.mubr.msk.bf16.mxu0 %vm1680_vm1, %v1679_v46 }
 0x58a   : > { %1545 = vmatprep.subr.bf16.mxu0 %v1679_v46 }
 0x58c   : > { %v1642_v5 = vpop.eup %1641 }
 0x58d   : > { %v926_v7 = vsel %vm542_vm2, %v1642_v5, 0.0  ;;  %v929_v11 = vpack.c.bf16 %v1642_v5, %v1642_v5 }
 0x58e   : > { %927 = vadd.xlane.f32.xlu0 %v926_v7 }
 0x590   : > { %1536 = vmatmul.mubr.msk.bf16.vlgmr.msra.gmra.mrb[16].mxu0 %vm542_vm2, %v819_v8 }
 0x591   : > { %1546 = vmatpush3.bf16.msra.mxu0 %v936_v9  ;;  %1547 = vmatprep.mubr.msk.bf16.mxu0 %vm1680_vm1, %v1679_v46 }
 0x592   : > { %596 = vadd.xlane.f32.xlu0 %v595_v10  ;;  %1559 = vmatprep.subr.bf16.mxu0 %v1679_v46 }
 0x598   : > { %1548 = vmatmul.mubr.msk.bf16.vlgmr.msra.gmra.mrb[20].mxu0 %vm542_vm2, %v929_v11 }
 0x599   : > { %1563 = vmatprep.mubr.msk.bf16.mxu0 %vm1680_vm1, %v1679_v46 }
 0x60b   : > { %v708_v12 = vpop.xlane.xlu1 %707 }
 0x60c   : > { %1643 = vrcp.f32 %v708_v12 }
 0x613   : > { %v818_v16 = vpop.xlane.xlu0 %817 }
 0x614   : > { %1645 = vrcp.f32 %v818_v16 }
 0x616   : > { %v1644_v19 = vpop.eup %1643 }
 0x61b   : > { %v928_v26 = vpop.xlane.xlu0 %927 }
 0x61c   : > { %1647 = vrcp.f32 %v928_v26 }
 0x61e   : > { %v1646_v29 = vpop.eup %1645 }
 0x61f   : > { %v597_v41 = vpop.xlane.xlu0 %596 }
 0x620   : > { %1649 = vrcp.f32 %v597_v41 }
 0x626   : > { %v1648_v35 = vpop.eup %1647 }
 0x62a   : > { %v1650_v42 = vpop.eup %1649 }
 0x653   : > { %v642_v13 = vpop.f32.mrb[8].mxu0 }
 0x654   : > { %v1513_v14 = vpop.f32.mrb[9].mxu0  ;;  %v649_v44 = vmul.f32 %v1650_v42, %v642_v13 }
 0x655   : > { %v645_v15 = vpop.f32.mrb[10].mxu0 }
 0x656   : > { %v1514_v17 = vpop.f32.mrb[11].mxu0 }
 0x65b   : > { %v752_v20 = vpop.f32.mrb[12].mxu0 }
 0x65c   : > { %v759_v21 = vmul.f32 %v1644_v19, %v752_v20  ;;  %v1525_v23 = vpop.f32.mrb[13].mxu0 }
 0x65d   : > { %v755_v24 = vpop.f32.mrb[14].mxu0 }
 0x65e   : > { %981 = vrot.lane.b32.xlu1 %v759_v21, %s1692_s30  ;;  %v1526_v27 = vpop.f32.mrb[15].mxu0  ;;  %v1091_v21 = vsub.f32 1.0, %v1780_v25 }
 0x663   : > { %v862_v30 = vpop.f32.mrb[16].mxu0 }
 0x664   : > { %v869_v31 = vmul.f32 %v1646_v29, %v862_v30  ;;  %v1537_v32 = vpop.f32.mrb[17].mxu0 }
 0x665   : > { %v865_v33 = vpop.f32.mrb[18].mxu0 }
 0x666   : > { %985 = vrot.lane.b32.xlu0 %v869_v31, %s1693_s14  ;;  %v1538_v34 = vpop.f32.mrb[19].mxu0 }
 0x66b   : > { %v972_v36 = vpop.f32.mrb[20].mxu0 }
 0x66c   : > { %v979_v37 = vmul.f32 %v1648_v35, %v972_v36  ;;  %v1549_v38 = vpop.f32.mrb[21].mxu0 }
 0x66d   : > { %v975_v39 = vpop.f32.mrb[22].mxu0 }
 0x66e   : > { %989 = vrot.lane.b32.xlu1 %v979_v37, %s1694_s15  ;;  %v1550_v40 = vpop.f32.mrb[23].mxu0 }
 0x6d0   : > { %v982_v43 = vpop.permute.xlu1 %981 }
 0x6d1   : > { %v992_v47 = vsel %vm542_vm2, %v649_v44, %v982_v43 }
 0x6d8   : > { %v986_v45 = vpop.permute.xlu0 %985 }
 0x6d9   : > { %v994_v48 = vsel %vm993_vm4, %v992_v47, %v986_v45 }
 0x6e0   : > { %v990_v49 = vpop.permute.xlu1 %989 }
 0x6e1   : > { %v996_v50 = vsel %vm995_vm5, %v994_v48, %v990_v49 }
 0x6e2   : > { %v997_v51 = vpack.c.bf16 %v996_v50, %v996_v50  ;;  %v1615_v50 = vld [vmem:[%s1991_s7] sm:$0xff]  }
 0x6e3   : > { %1560 = vmatpush3.bf16.msra.mxu0 %v1615_v50 }
 0x6e4   : > { %1556 = vmatmul.mubr.msk.bf16.vlgmr.msra.gmra.mrb[12].mxu1 %vm403_vm0, %v997_v51  ;;  %v1616_v51 = vld [vmem:[%s1991_s7 + $0x8] sm:$0xff]   ;;  %1561 = vmatprep.subr.bf16.mxu0 %v1679_v46 }
 0x6e5   : > { %1583 = vmatprep.mubr.msk.bf16.mxu1 %vm1680_vm1, %v1679_v46  ;;  %1568 = vmatpush3.bf16.msra.mxu1 %v1617_v55 }
 0x6e6   : > { %1569 = vmatprep.subr.bf16.mxu1 %v1679_v46 }
 0x6e7   : > { %1562 = vmatpush3.bf16.msra.mxu0 %v1616_v51 }
 0x7b7   : > { %v1058_v58 = vpop.f32.mrb[12].mxu1 }
 0x7b8   : > { %v1059_v59 = vadd.f32 %v1441_v56, %v1058_v58  ;;  %v1557_v60 = vpop.f32.mrb[13].mxu1  ;;  %v1618_v56 = vld [vmem:[%s1993_s9 + $0x8] sm:$0xff]   ;;  %v1620_v58 = vld [vmem:[%s1993_s9 + $0x18] sm:$0xff]  }
 0x7b9   : > { %v1061_v61 = vpop.f32.mrb[14].mxu1  ;;  %1570 = vmatpush3.bf16.msra.mxu1 %v1618_v56  ;;  %v1622_v60 = vld [vmem:[%s1993_s9 + $0x28] sm:$0xff]  }
 0x7ba   : > { %v1068_v62 = vmul.f32 %v1067_v57, %v1059_v59  ;;  %v1558_v63 = vpop.f32.mrb[15].mxu1  ;;  %v1619_v57 = vld [vmem:[%s1993_s9 + $0x10] sm:$0xff]   ;;  %1571 = vmatprep.subr.bf16.mxu1 %v1679_v46  ;;  %v1621_v59 = vld [vmem:[%s1993_s9 + $0x20] sm:$0xff]  }
 0x7bb   : > { %v1623_v61 = vld [vmem:[%s1993_s9 + $0x30] sm:$0xff]  }
 0x7bc   : > { %v1069_v0 = vmul.f32 %v1068_v62, %v1068_v62 }
 0x7bd   : > { %1572 = vmatpush3.bf16.msra.mxu1 %v1619_v57 }
 0x7be   : > { %v1070_v1 = vsel %vm403_vm0, %v1069_v0, 0.0  ;;  %1573 = vmatprep.subr.bf16.mxu1 %v1679_v46 }
 0x7bf   : > { %1071 = vadd.xlane.f32.xlu1 %v1070_v1  ;;  %v1132_v1 = vsub.s32 4, %v1804_v52 }
 0x7c1   : > { %1574 = vmatpush3.bf16.msra.mxu1 %v1620_v58 }
 0x7c2   : > { %1575 = vmatprep.subr.bf16.mxu1 %v1679_v46 }
 0x7c5   : > { %1576 = vmatpush3.bf16.msra.mxu1 %v1621_v59 }
 0x7c6   : > { %1577 = vmatprep.subr.bf16.mxu1 %v1679_v46 }
 0x7c9   : > { %1578 = vmatpush3.bf16.msra.mxu1 %v1622_v60 }
 0x7ca   : > { %1579 = vmatprep.subr.bf16.mxu1 %v1679_v46 }
 0x7cd   : > { %1580 = vmatpush3.bf16.msra.mxu1 %v1623_v61 }
 0x7ce   : > { %1581 = vmatprep.subr.bf16.mxu1 %v1679_v46  ;;  %v1624_v46 = vld [vmem:[%s1993_s9 + $0x38] sm:$0xff]  }
 0x7d1   : > { %1582 = vmatpush3.bf16.msra.mxu1 %v1624_v46 }
 0x84c   : > { %v1072_v2 = vpop.xlane.xlu1 %1071 }
 0x84d   : > { %v1073_v3 = vmax.f32 %v1072_v2, 1e-30  ;;  %v1137_v2 = vsub.s32 3, %v1804_v52 }
 0x84f   : > { %1651 = vrsqrt.f32 %v1073_v3 }
 0x859   : > { %v1652_v4 = vpop.eup %1651 }
 0x85a   : > { %v1075_v5 = vmul.f32 %v1652_v4, %v1073_v3  ;;  %v1133_v3 = vrot.slane %v1809_v54, %v1132_v1 }
 0x85c   : > { %1653 = vtanh.f32 %v1075_v5 }
 0x866   : > { %v1654_v6 = vpop.eup %1653 }
 0x867   : > { %v1077_v7 = vmul.f32 %v1654_v6, %v1652_v4  ;;  %v1138_v6 = vrot.slane %v1806_v53, %v1137_v2 }
 0x869   : > { %v1078_v8 = vmul.f32 %v1077_v7, %v1068_v62 }
 0x86b   : > { %v1083_v9 = vmul.f32 %v1078_v8, %v1775_v22  ;;  %v1079_v11 = vmul.f32 %v1078_v8, %v1078_v8  ;;  %v1092_v24 = vmul.f32 %v1091_v21, %v1078_v8 }
 0x86d   : > { %v1084_v10 = vsel %vm403_vm0, %v1083_v9, 0.0  ;;  %v1080_v12 = vsel %vm403_vm0, %v1079_v11, 0.0 }
 0x86e   : > { %1085 = vadd.xlane.f32.xlu0 %v1084_v10  ;;  %v1446_v10 = vld [vmem:[%s1992_s8] ss:$0 sm:$0xff] }
 0x872   : > { %1081 = vadd.xlane.f32.xlu0 %v1080_v12 }
 0x8fb   : > { %v1086_v13 = vpop.xlane.xlu0 %1085 }
 0x8fc   : > { %v1087_v14 = vmul.f32 2.0, %v1086_v13 }
 0x8fe   : > { %v1088_v16 = vadd.f32 1.0, %v1087_v14 }
 0x8ff   : > { %v1082_v15 = vpop.xlane.xlu0 %1081 }
 0x900   : > { %v1094_v17 = vmul.f32 %v1082_v15, %v1780_v25  ;;  %v1089_v20 = vadd.f32 %v1088_v16, %v1082_v15 }
 0x902   : > { %v1095_v18 = vadd.f32 %v1094_v17, %v1088_v16  ;;  %v1090_v23 = vmul.f32 %v1089_v20, %v1775_v22  ;;  %v1321_v16 = vsub.s32 5, %v1804_v52  ;;  %v1450_v17 = vld [vmem:[%s1994_s10] ss:$0 sm:$0xff] }
 0x904   : > { %v1096_v19 = vmax.f32 %v1095_v18, 1e-15  ;;  %v1093_v26 = vadd.f32 %v1092_v24, %v1090_v23  ;;  %v1322_v18 = vrot.slane %v1806_v53, %v1321_v16 }
 0x906   : > { %1655 = vrcp.f32 %v1096_v19 }
 0x910   : > { %v1656_v27 = vpop.eup %1655 }
 0x911   : > { %v1907_v28 = vmul.f32 %v1656_v27, %v1093_v26 }
 0x913   : > { %v1099_v29 = vmul.f32 %v1907_v28, %v1907_v28 }
 0x915   : > { %v1100_v30 = vsel %vm403_vm0, %v1099_v29, 0.0 }
 0x916   : > { %1101 = vadd.xlane.f32.xlu1 %v1100_v30 }
 0x9a3   : > { %v1912_v31 = vpop.xlane.xlu1 %1101 }
 0x9a4   : > { %v1103_v32 = vmax.f32 %v1912_v31, 1e-30 }
 0x9a6   : > { %1657 = vrsqrt.f32 %v1103_v32 }
 0x9b0   : > { %v1658_v33 = vpop.eup %1657 }
 0x9b1   : > { %v1105_v25 = vmul.f32 %v1658_v33, %v1103_v32 }
 0x9b3   : > { %v1445_v34 = vclamps-f32 %v1105_v25, 0.9999999 }
 0x9b5   : > { %v1109_v22 = vsub.f32 1.0, %v1445_v34  ;;  %v1108_v35 = vadd.f32 1.0, %v1445_v34 }
 0x9b7   : > { %1659 = vrcp.f32 %v1109_v22 }
 0x9c1   : > { %v1660_v36 = vpop.eup %1659 }
 0x9c2   : > { %v1111_v37 = vmul.f32 %v1660_v36, %v1108_v35 }
 0x9c4   : > { %1661 = vlog2.f32 %v1111_v37 }
 0x9ce   : > { %v1662_v38 = vpop.eup %1661 }
 0x9cf   : > { %v1113_v39 = vmul.f32 0.6931472, %v1662_v38 }
 0x9d1   : > { %v1114_v40 = vmul.f32 0.5, %v1113_v39 }
 0x9d3   : > { %v1115_v41 = vmul.f32 %v1658_v33, %v1114_v40 }
 0x9d5   : > { %v1116_v42 = vmul.f32 %v1115_v41, %v1907_v28 }
 0x9d7   : > { %v1117_v43 = vsel %vm403_vm0, %v1116_v42, 0.0 }
 0x9d8   : > { %1118 = vadd.xlane.f32.xlu0 %v1117_v43 }
 0xa65   : > { %v1119_v44 = vpop.xlane.xlu0 %1118 }
 0xa66   : > { %v1120_v45 = vmul.f32 0.03125, %v1119_v44 }
 0xa68   : > { %v1121_v47 = vsub.f32 %v1116_v42, %v1120_v45 }
 0xa6a   : > { %v1122_v48 = vmul.f32 %v1121_v47, %v1121_v47 }
 0xa6c   : > { %v1123_v49 = vsel %vm403_vm0, %v1122_v48, 0.0 }
 0xa6d   : > { %1124 = vadd.xlane.f32.xlu1 %v1123_v49 }
 0xafa   : > { %v1125_v62 = vpop.xlane.xlu1 %1124 }
 0xafb   : > { %v1126_v63 = vmul.f32 0.03125, %v1125_v62 }
 0xafd   : > { %v1127_v0 = vadd.f32 1e-06, %v1126_v63 }
 0xaff   : > { %1663 = vrsqrt.f32 %v1127_v0 }
 0xb09   : > { %v1664_v4 = vpop.eup %1663 }
 0xb0a   : > { %v1129_v5 = vmul.f32 %v1664_v4, %v1121_v47  ;;  %v1346_v47 = vsub.f32 1.0, %v1912_v31 }
 0xb0c   : > { %v1134_v7 = vmul.f32 %v1133_v3, %v1129_v5 }
 0xb0e   : > { %v1139_v8 = vadd.f32 %v1138_v6, %v1134_v7 }
 0xb10   : > { %v1140_v9 = vpack.c.bf16 %v1139_v8, %v1139_v8 }
 0xb12   : > { %1564 = vmatmul.mubr.msk.bf16.vlgmr.msra.gmra.mrb[24].mxu0 %vm403_vm0, %v1140_v9 }
 0xbe5   : > { %v1201_v11 = vpop.f32.mrb[24].mxu0 }
 0xbe6   : > { %v1202_v54 = vadd.f32 %v1446_v10, %v1201_v11  ;;  %v1565_v12 = vpop.f32.mrb[25].mxu0 }
 0xbe7   : > { %v1204_v13 = vpop.f32.mrb[26].mxu0 }
 0xbe8   : > { %v1207_v14 = vpack.c.bf16 %v1202_v54, %v1202_v54  ;;  %v1566_v15 = vpop.f32.mrb[27].mxu0 }
 0xbea   : > { %1584 = vmatmul.mubr.bf16.vlgmr.msra.gmra.mrb[16].mxu1 %v1207_v14 }
 0xcbd   : > { %v1313_v19 = vpop.f32.mrb[16].mxu1 }
 0xcbe   : > { %v1314_v20 = vadd.f32 %v1450_v17, %v1313_v19  ;;  %v1585_v21 = vpop.f32.mrb[17].mxu1 }
 0xcbf   : > { %v1316_v23 = vpop.f32.mrb[18].mxu1 }
 0xcc0   : > { %v1323_v24 = vmul.f32 %v1322_v18, %v1314_v20  ;;  %v1586_v26 = vpop.f32.mrb[19].mxu1 }
 0xcc2   : > { %v1324_v27 = vmul.f32 %v1323_v24, %v1323_v24 }
 0xcc4   : > { %v1325_v29 = vsel %vm403_vm0, %v1324_v27, 0.0 }
 0xcc5   : > { %1326 = vadd.xlane.f32.xlu0 %v1325_v29 }
 0xd52   : > { %v1327_v30 = vpop.xlane.xlu0 %1326 }
 0xd53   : > { %v1328_v32 = vmax.f32 %v1327_v30, 1e-30 }
 0xd55   : > { %1665 = vrsqrt.f32 %v1328_v32 }
 0xd5f   : > { %v1666_v52 = vpop.eup %1665 }
 0xd60   : > { %v1330_v33 = vmul.f32 %v1666_v52, %v1328_v32 }
 0xd62   : > { %1667 = vtanh.f32 %v1330_v33 }
 0xd6c   : > { %v1668_v25 = vpop.eup %1667 }
 0xd6d   : > { %v1332_v34 = vmul.f32 %v1668_v25, %v1666_v52 }
 0xd6f   : > { %v1333_v22 = vmul.f32 %v1332_v34, %v1323_v24 }
 0xd71   : > { %v1338_v53 = vmul.f32 %v1333_v22, %v1907_v28  ;;  %v1334_v35 = vmul.f32 %v1333_v22, %v1333_v22  ;;  %v1347_v49 = vmul.f32 %v1346_v47, %v1333_v22 }
 0xd73   : > { %v1339_v36 = vsel %vm403_vm0, %v1338_v53, 0.0  ;;  %v1335_v37 = vsel %vm403_vm0, %v1334_v35, 0.0 }
 0xd74   : > { %1340 = vadd.xlane.f32.xlu1 %v1339_v36  ;;  %1336 = vadd.xlane.f32.xlu0 %v1335_v37 }
 0xe01   : > { %v1341_v38 = vpop.xlane.xlu1 %1340  ;;  %v1337_v39 = vpop.xlane.xlu0 %1336 }
 0xe02   : > { %v1342_v40 = vmul.f32 2.0, %v1341_v38  ;;  %v1349_v42 = vmul.f32 %v1337_v39, %v1912_v31 }
 0xe04   : > { %v1343_v41 = vadd.f32 1.0, %v1342_v40 }
 0xe06   : > { %v1350_v43 = vadd.f32 %v1349_v42, %v1343_v41  ;;  %v1344_v45 = vadd.f32 %v1343_v41, %v1337_v39 }
 0xe08   : > { %v1351_v44 = vmax.f32 %v1350_v43, 1e-15  ;;  %v1345_v48 = vmul.f32 %v1344_v45, %v1907_v28 }
 0xe0a   : > { %1669 = vrcp.f32 %v1351_v44  ;;  %v1348_v50 = vadd.f32 %v1347_v49, %v1345_v48 }
 0xe14   : > { %v1670_v51 = vpop.eup %1669 }
 0xe15   : > { %v1353_v55 = vmul.f32 %v1670_v51, %v1348_v50 }
 0xe17   : > { %1354 = vst.msk [vmem:[%s398_s29] sm:$0xff] %vm403_vm0, %v1353_v55 }
 0xe18 PF: > { %s21_s17 = sadd.s32 1, %s1677_s17  }
 0xe19   : > { %p18_p4 = scmp.ge.s32.totalorder %s21_s17, 4  }
 0xe1b   :  { %20 = sbr.rel (!%p18_p4) target bundleno = 1 (0x1), region = 97 }

// kernel: forward.3
= control target key start
LH: loop header
LB: loop body
LE: loop exit
PB: predicated region body
PF: predicated region fallthrough
CT: control target
= control target key end

     0   :  { %s2316_s0 = inlined_call_operand.vmem [shape: f32[2,8,32], index: 0, kind: input, shape index: {}]   ;;  %s2317_s1 = inlined_call_operand.vmem [shape: f32[2,6,32], index: 1, kind: input, shape index: {}]   ;;  %s2318_s2 = inlined_call_operand.vmem [shape: bf16[32,96], index: 2, kind: input, shape index: {}]   ;;  %s2319_s3 = inlined_call_operand.vmem [shape: f32[1,96], index: 3, kind: input, shape index: {}]   ;;  %s2320_s4 = inlined_call_operand.vmem [shape: bf16[32,32], index: 4, kind: input, shape index: {}]   ;;  %s2321_s5 = inlined_call_operand.vmem [shape: f32[1,32], index: 5, kind: input, shape index: {}]   ;;  %s2322_s6 = inlined_call_operand.vmem [shape: bf16[32,128], index: 6, kind: input, shape index: {}]   ;;  %s2323_s7 = inlined_call_operand.vmem [shape: f32[1,128], index: 7, kind: input, shape index: {}]   ;;  %s2324_s8 = inlined_call_operand.vmem [shape: bf16[128,32], index: 8, kind: input, shape index: {}]   ;;  %s2325_s9 = inlined_call_operand.vmem [shape: f32[1,32], index: 9, kind: input, shape index: {}]   ;;  %s2326_s10 = inlined_call_operand.vmem [shape: bf16[32,32], index: 10, kind: input, shape index: {}]   ;;  %s2327_s11 = inlined_call_operand.vmem [shape: f32[1,32], index: 11, kind: input, shape index: {}]   ;;  %s2328_s12 = inlined_call_operand.hbm [shape: f32[2,8,32], index: 12, kind: output, shape index: {}]  }
   0x1   :  { %2329 = sst [smem:[#allocation5_spill]] %s2316_s0 }
   0x2   :  { %2330 = sst [smem:[#allocation6_spill]] %s2317_s1 }
   0x3   :  { %17 = vsyncpa [#allocation3], 0 }
   0x4   :  { %19 = vsyncpa [#allocation3 + $0x1], 0  ;;  %s1992_s21 = smov 0   ;;  %s1994_s22 = smov 0  }
   0x5   :  { %s1996_s23 = smov 0   ;;  %s1998_s24 = smov 0  }
   0x6 LB: > { %s2013_s25 = sadd.s32 4294967295, %s1908_s24   ;;  %s1537_s26 = sadd.s32 4294967294, %s1908_s24   ;;  %s1908_s24 = sphi %s1998_s24, %s2338_s24   ;;  %s1904_s23 = sphi %s1996_s23, %s2337_s23   ;;  %s1900_s22 = sphi %s1994_s22, %s2336_s22   ;;  %s1896_s21 = sphi %s1992_s21, %s2335_s21  }
   0x7   : > { %s2017_s27 = sadd.s32 1, %s1908_s24   ;;  %s294_s28 = sadd.s32 1, %s1904_s23 }
   0x8   : > { %s291_s29 = ssub.s32 %s1908_s24, %s2017_s27  ;;  %p304_p0 = scmp.ne.s32.totalorder %s1904_s23, %s1900_s22 }
   0x9   : > { %p292_p1 = scmp.eq.s32.totalorder %s291_s29, 0  ;;  %p305_p2 = scmp.eq.s32.totalorder %s2013_s25, 1 }
   0xa   : > { %p310_p3 = scmp.ne.s32.totalorder %s1900_s22, %s1896_s21  ;;  %p311_p4 = scmp.eq.s32.totalorder %s1537_s26, 1 }
   0xb   : > { %s2028_s30 = scalar_select %p292_p1, %s1904_s23, %s294_s28  }
   0xc   : > { %p2030_p5 = por %p305_p2, %p304_p0  ;;  %p2034_p6 = por %p311_p4, %p310_p3 }
   0xd   : > { %p1540_p7 = scmp.ge.s32.totalorder %s1908_s24, 1  ;;  %p373_p8 = scmp.lt.s32.totalorder %s1908_s24, 3 }
   0xf   : > { %p374_p9 = pnand %p1540_p7, %p373_p8 }
  0x10   : > { %p418_p10 = scmp.lt.s32.totalorder (!%p374_p9), %s2013_s25, 1  ;;  %s2333_s0 = sld [smem:[#allocation5_spill]] (!%p374_p9)  ;;  %vm430_vm0 = vcmask (!%p374_p9), 261120   ;;  %v1776_v23 = vld [vmem:[%s2318_s2] sm:$0xff] (!%p374_p9)   ;;  %v1910_v24 = vmov (!%p374_p9), 0.0   ;;  %vm1911_vm1 = vmmov (!%p374_p9), 0   ;;  %v463_v28 = vlaneseq (!%p374_p9) }
  0x11   : > { %377 = sbr.rel (%p374_p9) target bundleno = 4058 (0xfda), region = 68  ;;  %1621 = vmatprep.subr.bf16.mxu0 (!%p374_p9), %v1910_v24  ;;  %1625 = vmatprep.mubr.msk.bf16.mxu0 (!%p374_p9), %vm1911_vm1, %v1910_v24  ;;  %v1777_v25 = vld [vmem:[%s2318_s2 + $0x8] sm:$0xff] (!%p374_p9)   ;;  %s2334_s1 = sld [smem:[#allocation6_spill]] (!%p374_p9)  ;;  %v1545_v42 = vld [vmem:[%s2319_s3] ss:$0 sm:$0xff] (!%p374_p9)  ;;  %vm544_vm2 = vcmask (!%p374_p9), 64512  }
  0x12   : > { %1622 = vmatpush3.bf16.msra.mxu0 (!%p374_p9), %v1776_v23  ;;  %1641 = vmatprep.subr.bf16.mxu1 (!%p374_p9), %v1910_v24  ;;  %v2080_v30 = vshrl.u32 (!%p374_p9), %v463_v28, 7  ;;  %s1912_s20 = smov (!%p374_p9), 88   ;;  %s1913_s26 = smov (!%p374_p9), 96   ;;  %vm606_vm3 = vcmask (!%p374_p9), 1043456   ;;  %vm995_vm4 = vcmask (!%p374_p9), 130048   ;;  %vm997_vm5 = vcmask (!%p374_p9), 195584  }
  0x13   : > { %1623 = vmatprep.subr.bf16.mxu0 (!%p374_p9), %v1910_v24  ;;  %1643 = vmatprep.mubr.msk.bf16.mxu1 (!%p374_p9), %vm1911_vm1, %v1910_v24  ;;  %s1914_s28 = smov (!%p374_p9), 72   ;;  %s1915_s29 = smov (!%p374_p9), 120  }
  0x14   : > { %v465_v33 = vsub.s32 (!%p374_p9), 1, %v2080_v30  ;;  %v470_v34 = vsub.s32 (!%p374_p9), 0, %v2080_v30  ;;  %s1916_s17 = smov (!%p374_p9), 80   ;;  %s1917_s18 = smov (!%p374_p9), 112  }
  0x16   : > { %1624 = vmatpush3.bf16.msra.mxu0 (!%p374_p9), %v1777_v25 }
  0x17   : > { %1629 = vmatprep.subr.bf16.mxu0 (!%p374_p9), %v1910_v24 }
  0x18   : > { %s2042_s15 = scalar_select %p418_p10, %s2013_s25, 1 }
  0x1a   : > { %s1542_s16 = sshll.u32 %s2042_s15, 3  ;;  %s1919_s15 = smov 56  }
  0x1b   : > { %s421_s19 = scalar_lea.vmem %s2333_s0, %s1542_s16 }
  0x1c   : > { %v2050_v0 = vld [vmem:[%s421_s19] sm:$0xff]  ;;  %s425_s19 = scalar_lea.vmem %s2334_s1, %s1542_s16  ;;  %s1920_s16 = smov 48  }
  0x1d   : > { %v429_v1 = vmul.f32 %v2050_v0, %v2050_v0  ;;  %v2082_v31 = vld [vmem:[%s425_s19] sm:$0x3f]  ;;  %s1918_s19 = smov 104  }
  0x1e   : > { %v2085_v32 = vadd.f32 1.0, %v2082_v31  ;;  %v471_v38 = vrot.slane %v2082_v31, %v470_v34 }
  0x1f   : > { %v431_v2 = vsel %vm430_vm0, %v429_v1, 0.0 }
  0x20   : > { %432 = vadd.xlane.f32.xlu0 %v431_v2  ;;  %v466_v35 = vrot.slane %v2085_v32, %v465_v33 }
  0xad   : > { %v2055_v3 = vpop.xlane.xlu0 %432 }
  0xae   : > { %v434_v4 = vmax.f32 %v2055_v3, 1e-30 }
  0xb0   : > { %1792 = vrsqrt.f32 %v434_v4 }
  0xba   : > { %v1793_v5 = vpop.eup %1792 }
  0xbb   : > { %v436_v6 = vmul.f32 %v1793_v5, %v434_v4 }
  0xbd   : > { %v1544_v7 = vclamps-f32 %v436_v6, 0.9999999 }
  0xbf   : > { %v440_v8 = vsub.f32 1.0, %v1544_v7  ;;  %v439_v9 = vadd.f32 1.0, %v1544_v7 }
  0xc1   : > { %1794 = vrcp.f32 %v440_v8 }
  0xcb   : > { %v1795_v10 = vpop.eup %1794 }
  0xcc   : > { %v442_v11 = vmul.f32 %v1795_v10, %v439_v9 }
  0xce   : > { %1796 = vlog2.f32 %v442_v11 }
  0xd8   : > { %v1797_v12 = vpop.eup %1796 }
  0xd9   : > { %v444_v13 = vmul.f32 0.6931472, %v1797_v12 }
  0xdb   : > { %v445_v14 = vmul.f32 0.5, %v444_v13 }
  0xdd   : > { %v446_v15 = vmul.f32 %v1793_v5, %v445_v14 }
  0xdf   : > { %v447_v16 = vmul.f32 %v446_v15, %v2050_v0 }
  0xe1   : > { %v448_v17 = vsel %vm430_vm0, %v447_v16, 0.0 }
  0xe2   : > { %449 = vadd.xlane.f32.xlu0 %v448_v17 }
 0x16f   : > { %v450_v18 = vpop.xlane.xlu0 %449 }
 0x170   : > { %v452_v19 = vmul.f32 0.03125, %v450_v18 }
 0x172   : > { %v453_v20 = vsub.f32 %v447_v16, %v452_v19 }
 0x174   : > { %v454_v21 = vmul.f32 %v453_v20, %v453_v20 }
 0x176   : > { %v455_v22 = vsel %vm430_vm0, %v454_v21, 0.0 }
 0x177   : > { %456 = vadd.xlane.f32.xlu1 %v455_v22 }
 0x204   : > { %v457_v26 = vpop.xlane.xlu1 %456 }
 0x205   : > { %v458_v27 = vmul.f32 0.03125, %v457_v26 }
 0x207   : > { %v459_v29 = vadd.f32 1e-06, %v458_v27 }
 0x209   : > { %1798 = vrsqrt.f32 %v459_v29 }
 0x213   : > { %v1799_v36 = vpop.eup %1798 }
 0x214   : > { %v461_v37 = vmul.f32 %v1799_v36, %v453_v20 }
 0x216   : > { %v467_v39 = vmul.f32 %v466_v35, %v461_v37 }
 0x218   : > { %v472_v40 = vadd.f32 %v471_v38, %v467_v39 }
 0x21a   : > { %v473_v41 = vpack.c.bf16 %v472_v40, %v472_v40 }
 0x21c   : > { %1626 = vmatmul.mubr.msk.bf16.vlgmr.msra.gmra.mrb[0].mxu0 %vm430_vm0, %v473_v41 }
 0x21d   : > { %1631 = vmatprep.mubr.msk.bf16.mxu0 %vm1911_vm1, %v1910_v24 }
 0x2ef   : > { %v534_v43 = vpop.f32.mrb[0].mxu0 }
 0x2f0   : > { %v535_v44 = vadd.f32 %v1545_v42, %v534_v43  ;;  %v1627_v45 = vpop.f32.mrb[1].mxu0 }
 0x2f1   : > { %v537_v46 = vpop.f32.mrb[2].mxu0 }
 0x2f2   : > { %v2097_v47 = vpack.c.bf16 %v535_v44, %v535_v44  ;;  %v1628_v48 = vpop.f32.mrb[3].mxu0 }
 0x2f4   : > { %654 = vrot.lane.b32.xlu0 %v2097_v47, %s1912_s20  ;;  %542 = vrot.lane.b32.xlu1 %v2097_v47, %s1913_s26  ;;  %s1921_s20 = smov 40   ;;  %s1922_s26 = smov 64  }
 0x2f8   : > { %874 = vrot.lane.b32.xlu0 %v2097_v47, %s1914_s28  ;;  %652 = vrot.lane.b32.xlu1 %v2097_v47, %s1915_s29 }
 0x2fc   : > { %764 = vrot.lane.b32.xlu1 %v2097_v47, %s1916_s17  ;;  %s1923_s17 = smov 8  }
 0x300   : > { %762 = vrot.lane.b32.xlu1 %v2097_v47, %s1917_s18  ;;  %s415_s18 = sand.u32 1, %s1900_s22  }
 0x304   : > { %872 = vrot.lane.b32.xlu1 %v2097_v47, %s1918_s19  ;;  %s1541_s19 = sshll.u32 %s415_s18, 3 }
 0x366   : > { %v655_v49 = vpop.permute.xlu0 %654  ;;  %v543_v50 = vpop.permute.xlu1 %542 }
 0x367   : > { %v549_v51 = vsel %vm544_vm2, %v543_v50, 0  ;;  %v660_v52 = vsel %vm544_vm2, %v655_v49, 0 }
 0x368   : > { %1630 = vmatpush3.bf16.xpose.msra.mxu0 %v549_v51  ;;  %1642 = vmatpush3.bf16.xpose.msra.mxu1 %v660_v52 }
 0x369   : > { %1653 = vmatprep.subr.bf16.mxu1 %v1910_v24  ;;  %1635 = vmatprep.subr.bf16.mxu0 %v1910_v24 }
 0x36a   : > { %v653_v53 = vpop.permute.xlu1 %652  ;;  %v875_v56 = vpop.permute.xlu0 %874 }
 0x36b   : > { %v880_v58 = vsel %vm544_vm2, %v875_v56, 0 }
 0x36e   : > { %v765_v54 = vpop.permute.xlu1 %764 }
 0x36f   : > { %v770_v55 = vsel %vm544_vm2, %v765_v54, 0  ;;  %1632 = vmatmul.mubr.msk.bf16.vlgmr.msra.gmra.mrb[4].mxu0 %vm544_vm2, %v2097_v47  ;;  %1644 = vmatmul.mubr.msk.bf16.vlgmr.msra.gmra.mrb[0].mxu1 %vm544_vm2, %v653_v53 }
 0x370   : > { %1654 = vmatpush3.bf16.xpose.msra.mxu1 %v770_v55  ;;  %1655 = vmatprep.mubr.msk.bf16.mxu1 %vm1911_vm1, %v1910_v24 }
 0x371   : > { %1665 = vmatprep.subr.bf16.mxu1 %v1910_v24  ;;  %1637 = vmatprep.mubr.msk.bf16.mxu0 %vm1911_vm1, %v1910_v24 }
 0x372   : > { %v763_v57 = vpop.permute.xlu1 %762 }
 0x376   : > { %v873_v59 = vpop.permute.xlu1 %872 }
 0x377   : > { %1656 = vmatmul.mubr.msk.bf16.vlgmr.msra.gmra.mrb[4].mxu1 %vm544_vm2, %v763_v57 }
 0x378   : > { %1666 = vmatpush3.bf16.xpose.msra.mxu1 %v880_v58  ;;  %1667 = vmatprep.mubr.msk.bf16.mxu1 %vm1911_vm1, %v1910_v24 }
 0x379   : > { %1677 = vmatprep.subr.bf16.mxu1 %v1910_v24 }
 0x37f   : > { %1668 = vmatmul.mubr.msk.bf16.vlgmr.msra.gmra.mrb[8].mxu1 %vm544_vm2, %v873_v59 }
 0x380   : > { %1681 = vmatprep.mubr.msk.bf16.mxu1 %vm1911_vm1, %v1910_v24 }
 0x442   : > { %v585_v60 = vpop.f32.mrb[4].mxu0  ;;  %v696_v61 = vpop.f32.mrb[0].mxu1 }
 0x443   : > { %v1633_v62 = vpop.f32.mrb[5].mxu0  ;;  %v1645_v63 = vpop.f32.mrb[1].mxu1  ;;  %v702_v1 = vsel %vm544_vm2, %v696_v61, -inf  ;;  %v591_v2 = vsel %vm544_vm2, %v585_v60, -inf }
 0x444   : > { %703 = vmax.xlane.f32.xlu1 %v702_v1  ;;  %v699_v4 = vpop.f32.mrb[2].mxu1  ;;  %592 = vmax.xlane.f32.xlu0 %v591_v2  ;;  %v588_v5 = vpop.f32.mrb[6].mxu0 }
 0x445   : > { %v1634_v6 = vpop.f32.mrb[7].mxu0  ;;  %v1646_v7 = vpop.f32.mrb[3].mxu1 }
 0x446   : > { %v1779_v6 = vld [vmem:[%s2320_s4 + $0x8] sm:$0xff]  }
 0x44a   : > { %v806_v8 = vpop.f32.mrb[4].mxu1 }
 0x44b   : > { %v1657_v9 = vpop.f32.mrb[5].mxu1  ;;  %v812_v10 = vsel %vm544_vm2, %v806_v8, -inf }
 0x44c   : > { %v809_v11 = vpop.f32.mrb[6].mxu1  ;;  %813 = vmax.xlane.f32.xlu0 %v812_v10 }
 0x44d   : > { %v1658_v12 = vpop.f32.mrb[7].mxu1 }
 0x452   : > { %v916_v13 = vpop.f32.mrb[8].mxu1 }
 0x453   : > { %v1669_v14 = vpop.f32.mrb[9].mxu1  ;;  %v922_v15 = vsel %vm544_vm2, %v916_v13, -inf }
 0x454   : > { %v919_v16 = vpop.f32.mrb[10].mxu1  ;;  %923 = vmax.xlane.f32.xlu0 %v922_v15 }
 0x455   : > { %712 = vrot.lane.b32.xlu1 %v2097_v47, %s1919_s15  ;;  %v1670_v17 = vpop.f32.mrb[11].mxu1  ;;  %s1924_s15 = smov 16  }
 0x459   : > { %822 = vrot.lane.b32.xlu1 %v2097_v47, %s1920_s16  ;;  %s1925_s16 = smov 24  }
 0x45d   : > { %932 = vrot.lane.b32.xlu1 %v2097_v47, %s1921_s20 }
 0x46a   : > { %601 = vrot.lane.b32.xlu0 %v2097_v47, %s1922_s26 }
 0x4d1   : > { %v704_v18 = vpop.xlane.xlu1 %703  ;;  %v593_v19 = vpop.xlane.xlu0 %592 }
 0x4d2   : > { %v705_v20 = vsub.f32 %v696_v61, %v704_v18  ;;  %v594_v21 = vsub.f32 %v585_v60, %v593_v19  ;;  %v1778_v60 = vld [vmem:[%s2320_s4] sm:$0xff]  }
 0x4d3   : > { %1678 = vmatpush3.bf16.msra.mxu1 %v1778_v60 }
 0x4d4   : > { %v706_v22 = vmul.f32 1.442695, %v705_v20  ;;  %v595_v23 = vmul.f32 1.442695, %v594_v21  ;;  %1679 = vmatprep.subr.bf16.mxu1 %v1910_v24 }
 0x4d5   : > { %v713_v39 = vpop.permute.xlu1 %712 }
 0x4d6   : > { %1800 = vpow2.f32 %v706_v22  ;;  %v718_v43 = vsel %vm606_vm3, %v713_v39, 0 }
 0x4d7   : > { %1802 = vpow2.f32 %v595_v23  ;;  %1680 = vmatpush3.bf16.msra.mxu1 %v1779_v6 }
 0x4d8   : > { %1693 = vmatprep.subr.bf16.mxu1 %v1910_v24 }
 0x4d9   : > { %v814_v25 = vpop.xlane.xlu0 %813  ;;  %v823_v44 = vpop.permute.xlu1 %822 }
 0x4da   : > { %v815_v26 = vsub.f32 %v806_v8, %v814_v25  ;;  %v828_v48 = vsel %vm606_vm3, %v823_v44, 0 }
 0x4dc   : > { %v816_v27 = vmul.f32 1.442695, %v815_v26 }
 0x4dd   : > { %v933_v50 = vpop.permute.xlu1 %932 }
 0x4de   : > { %1804 = vpow2.f32 %v816_v27  ;;  %v938_v52 = vsel %vm606_vm3, %v933_v50, 0 }
 0x4e0   : > { %v1801_v28 = vpop.eup %1800 }
 0x4e1   : > { %v924_v29 = vpop.xlane.xlu0 %923  ;;  %v708_v33 = vsel %vm544_vm2, %v1801_v28, 0.0  ;;  %v1803_v36 = vpop.eup %1802  ;;  %v711_v46 = vpack.c.bf16 %v1801_v28, %v1801_v28 }
 0x4e2   : > { %v925_v34 = vsub.f32 %v916_v13, %v924_v29  ;;  %709 = vadd.xlane.f32.xlu0 %v708_v33  ;;  %v600_v41 = vpack.c.bf16 %v1803_v36, %v1803_v36  ;;  %v597_v49 = vsel %vm544_vm2, %v1803_v36, 0.0  ;;  %v1068_v33 = vsub.s32 2, %v2080_v30 }
 0x4e4   : > { %v926_v35 = vmul.f32 1.442695, %v925_v34  ;;  %v1557_v34 = vld [vmem:[%s2321_s5] ss:$0 sm:$0xff] }
 0x4e5   : > { %v602_v37 = vpop.permute.xlu0 %601 }
 0x4e6   : > { %1806 = vpow2.f32 %v926_v35  ;;  %v608_v38 = vsel %vm606_vm3, %v602_v37, 0  ;;  %v1069_v35 = vrot.slane %v2082_v31, %v1068_v33  ;;  %v1782_v33 = vld [vmem:[%s2324_s8] sm:$0xff]  }
 0x4e7   : > { %1636 = vmatpush3.bf16.msra.mxu0 %v608_v38 }
 0x4e8   : > { %v1805_v40 = vpop.eup %1804  ;;  %1647 = vmatprep.subr.bf16.mxu0 %v1910_v24 }
 0x4e9   : > { %v818_v42 = vsel %vm544_vm2, %v1805_v40, 0.0  ;;  %v821_v51 = vpack.c.bf16 %v1805_v40, %v1805_v40 }
 0x4ea   : > { %819 = vadd.xlane.f32.xlu1 %v818_v42  ;;  %1638 = vmatmul.mubr.msk.bf16.vlgmr.msra.gmra.mrb[8].mxu0 %vm544_vm2, %v600_v41 }
 0x4eb   : > { %1648 = vmatpush3.bf16.msra.mxu0 %v718_v43  ;;  %1649 = vmatprep.mubr.msk.bf16.mxu0 %vm1911_vm1, %v1910_v24 }
 0x4ec   : > { %1659 = vmatprep.subr.bf16.mxu0 %v1910_v24 }
 0x4f0   : > { %v1807_v45 = vpop.eup %1806 }
 0x4f1   : > { %v928_v47 = vsel %vm544_vm2, %v1807_v45, 0.0  ;;  %v931_v53 = vpack.c.bf16 %v1807_v45, %v1807_v45 }
 0x4f2   : > { %929 = vadd.xlane.f32.xlu0 %v928_v47  ;;  %1650 = vmatmul.mubr.msk.bf16.vlgmr.msra.gmra.mrb[12].mxu0 %vm544_vm2, %v711_v46 }
 0x4f3   : > { %1660 = vmatpush3.bf16.msra.mxu0 %v828_v48  ;;  %1661 = vmatprep.mubr.msk.bf16.mxu0 %vm1911_vm1, %v1910_v24 }
 0x4f4   : > { %1671 = vmatprep.subr.bf16.mxu0 %v1910_v24 }
 0x4f6   : > { %598 = vadd.xlane.f32.xlu0 %v597_v49 }
 0x4fa   : > { %1662 = vmatmul.mubr.msk.bf16.vlgmr.msra.gmra.mrb[16].mxu0 %vm544_vm2, %v821_v51 }
 0x4fb   : > { %1672 = vmatpush3.bf16.msra.mxu0 %v938_v52  ;;  %1673 = vmatprep.mubr.msk.bf16.mxu0 %vm1911_vm1, %v1910_v24 }
 0x4fc   : > { %1685 = vmatprep.subr.bf16.mxu0 %v1910_v24 }
 0x502   : > { %1674 = vmatmul.mubr.msk.bf16.vlgmr.msra.gmra.mrb[20].mxu0 %vm544_vm2, %v931_v53 }
 0x503   : > { %1689 = vmatprep.mubr.msk.bf16.mxu0 %vm1911_vm1, %v1910_v24 }
 0x56f   : > { %v710_v54 = vpop.xlane.xlu0 %709 }
 0x570   : > { %1808 = vrcp.f32 %v710_v54 }
 0x577   : > { %v820_v58 = vpop.xlane.xlu1 %819 }
 0x578   : > { %1810 = vrcp.f32 %v820_v58 }
 0x57a   : > { %v1809_v61 = vpop.eup %1808 }
 0x57f   : > { %v930_v4 = vpop.xlane.xlu0 %929 }
 0x580   : > { %1812 = vrcp.f32 %v930_v4 }
 0x582   : > { %v1811_v7 = vpop.eup %1810 }
 0x583   : > { %v599_v19 = vpop.xlane.xlu0 %598 }
 0x584   : > { %1814 = vrcp.f32 %v599_v19 }
 0x58a   : > { %v1813_v13 = vpop.eup %1812 }
 0x58e   : > { %v1815_v20 = vpop.eup %1814 }
 0x5bd   : > { %v644_v55 = vpop.f32.mrb[8].mxu0 }
 0x5be   : > { %v1639_v56 = vpop.f32.mrb[9].mxu0  ;;  %v651_v23 = vmul.f32 %v1815_v20, %v644_v55 }
 0x5bf   : > { %v647_v57 = vpop.f32.mrb[10].mxu0 }
 0x5c0   : > { %v1640_v59 = vpop.f32.mrb[11].mxu0 }
 0x5c5   : > { %v754_v62 = vpop.f32.mrb[12].mxu0 }
 0x5c6   : > { %v761_v63 = vmul.f32 %v1809_v61, %v754_v62  ;;  %v1651_v1 = vpop.f32.mrb[13].mxu0 }
 0x5c7   : > { %v757_v2 = vpop.f32.mrb[14].mxu0 }
 0x5c8   : > { %983 = vrot.lane.b32.xlu0 %v761_v63, %s1923_s17  ;;  %v1652_v5 = vpop.f32.mrb[15].mxu0  ;;  %v1093_v63 = vsub.f32 1.0, %v2055_v3  ;;  %s1453_s17 = scalar_lea.sflag [#allocation3], %s415_s18 }
 0x5cd   : > { %v864_v8 = vpop.f32.mrb[16].mxu0 }
 0x5ce   : > { %v871_v9 = vmul.f32 %v1811_v7, %v864_v8  ;;  %v1663_v10 = vpop.f32.mrb[17].mxu0 }
 0x5cf   : > { %v867_v11 = vpop.f32.mrb[18].mxu0 }
 0x5d0   : > { %987 = vrot.lane.b32.xlu1 %v871_v9, %s1924_s15  ;;  %v1664_v12 = vpop.f32.mrb[19].mxu0  ;;  %s1581_s15 = sshll.u32 %s2013_s25, 7  ;;  %s1926_s25 = smov [#allocation2]  }
 0x5d1   : > { %s2273_s29 = scalar_lea.hbm %s2328_s12, %s1581_s15 }
 0x5d5   : > { %v974_v14 = vpop.f32.mrb[20].mxu0 }
 0x5d6   : > { %v981_v15 = vmul.f32 %v1813_v13, %v974_v14  ;;  %v1675_v16 = vpop.f32.mrb[21].mxu0 }
 0x5d7   : > { %v977_v17 = vpop.f32.mrb[22].mxu0 }
 0x5d8   : > { %991 = vrot.lane.b32.xlu1 %v981_v15, %s1925_s16  ;;  %v1676_v18 = vpop.f32.mrb[23].mxu0  ;;  %s417_s16 = scalar_lea.vmem [#allocation2], %s1541_s19  ;;  %s1850_s19 = sshll.u32 %s1926_s25, 4  ;;  %s1851_s19 = int_to_ptr.vmem [resolvable:$false] %s1850_s19 }
 0x5d9   : > { %s1466_s20 = sshll.u32 %s417_s16, 4  ;;  %s1852_s1 = scalar_lea.vmem %s1851_s19, 256  ;;  %s2275_s20 = int_to_ptr.vmem [resolvable:$true] %s1466_s20 }
 0x5da   : > { %s1846_s0 = scalar_lea.vmem %s2275_s20, 128  ;;  %p1853_p0 = scmp.lt.s32.totalorder %s2275_s20, %s1851_s19 }
 0x5db   : > { %p1847_p11 = scmp.ne.s32.totalorder %s2275_s20, %s1846_s0  ;;  %p1854_p1 = scmp.lt.s32.totalorder %s1852_s1, %s1846_s0 }
 0x5dd   : > { %p1848_p12 = pnand %p1847_p11, %p2030_p5  ;;  %p1855_p2 = por %p1854_p1, %p1853_p0 }
 0x5df   : > { %p1849_p13 = pneg %p1848_p12 }
 0x5e1   : > { %p1856_p3 = pnand %p1855_p2, %p1849_p13 }
 0x63a   : > { %v984_v21 = vpop.permute.xlu0 %983 }
 0x63b   : > { %v994_v25 = vsel %vm544_vm2, %v651_v23, %v984_v21 }
 0x642   : > { %v988_v22 = vpop.permute.xlu1 %987 }
 0x643   : > { %v996_v26 = vsel %vm995_vm4, %v994_v25, %v988_v22 }
 0x64a   : > { %v992_v27 = vpop.permute.xlu1 %991 }
 0x64b   : > { %v998_v28 = vsel %vm997_vm5, %v996_v26, %v992_v27 }
 0x64c   : > { %v999_v29 = vpack.c.bf16 %v998_v28, %v998_v28  ;;  %v1780_v28 = vld [vmem:[%s2322_s6] sm:$0xff]  }
 0x64d   : > { %1686 = vmatpush3.bf16.msra.mxu0 %v1780_v28 }
 0x64e   : > { %1682 = vmatmul.mubr.msk.bf16.vlgmr.msra.gmra.mrb[12].mxu1 %vm430_vm0, %v999_v29  ;;  %v1781_v29 = vld [vmem:[%s2322_s6 + $0x8] sm:$0xff]   ;;  %1687 = vmatprep.subr.bf16.mxu0 %v1910_v24 }
 0x64f   : > { %1709 = vmatprep.mubr.msk.bf16.mxu1 %vm1911_vm1, %v1910_v24  ;;  %1694 = vmatpush3.bf16.msra.mxu1 %v1782_v33 }
 0x650   : > { %1695 = vmatprep.subr.bf16.mxu1 %v1910_v24 }
 0x651   : > { %1688 = vmatpush3.bf16.msra.mxu0 %v1781_v29 }
 0x652   : > { %1713 = vmatprep.subr.bf16.mxu0 %v1910_v24 }
 0x721   : > { %v1060_v36 = vpop.f32.mrb[12].mxu1 }
 0x722   : > { %v1061_v37 = vadd.f32 %v1557_v34, %v1060_v36  ;;  %v1683_v38 = vpop.f32.mrb[13].mxu1  ;;  %v1783_v34 = vld [vmem:[%s2324_s8 + $0x8] sm:$0xff]   ;;  %v1785_v36 = vld [vmem:[%s2324_s8 + $0x18] sm:$0xff]  }
 0x723   : > { %v1063_v39 = vpop.f32.mrb[14].mxu1  ;;  %1696 = vmatpush3.bf16.msra.mxu1 %v1783_v34  ;;  %v1787_v38 = vld [vmem:[%s2324_s8 + $0x28] sm:$0xff]  }
 0x724   : > { %v1070_v40 = vmul.f32 %v1069_v35, %v1061_v37  ;;  %v1684_v41 = vpop.f32.mrb[15].mxu1  ;;  %v1784_v35 = vld [vmem:[%s2324_s8 + $0x10] sm:$0xff]   ;;  %1697 = vmatprep.subr.bf16.mxu1 %v1910_v24  ;;  %v1786_v37 = vld [vmem:[%s2324_s8 + $0x20] sm:$0xff]  }
 0x725   : > { %v1788_v39 = vld [vmem:[%s2324_s8 + $0x30] sm:$0xff]  }
 0x726   : > { %v1071_v42 = vmul.f32 %v1070_v40, %v1070_v40 }
 0x727   : > { %1698 = vmatpush3.bf16.msra.mxu1 %v1784_v35 }
 0x728   : > { %v1072_v43 = vsel %vm430_vm0, %v1071_v42, 0.0  ;;  %1699 = vmatprep.subr.bf16.mxu1 %v1910_v24 }
 0x729   : > { %1073 = vadd.xlane.f32.xlu1 %v1072_v43  ;;  %v1134_v43 = vsub.s32 4, %v2080_v30 }
 0x72b   : > { %1700 = vmatpush3.bf16.msra.mxu1 %v1785_v36 }
 0x72c   : > { %1701 = vmatprep.subr.bf16.mxu1 %v1910_v24 }
 0x72f   : > { %1702 = vmatpush3.bf16.msra.mxu1 %v1786_v37  ;;  %v1790_v37 = vld [vmem:[%s2326_s10] sm:$0xff]  }
 0x730   : > { %1703 = vmatprep.subr.bf16.mxu1 %v1910_v24 }
 0x733   : > { %1704 = vmatpush3.bf16.msra.mxu1 %v1787_v38  ;;  %v1791_v38 = vld [vmem:[%s2326_s10 + $0x8] sm:$0xff]  }
 0x734   : > { %1705 = vmatprep.subr.bf16.mxu1 %v1910_v24 }
 0x737   : > { %1706 = vmatpush3.bf16.msra.mxu1 %v1788_v39 }
 0x738   : > { %1707 = vmatprep.subr.bf16.mxu1 %v1910_v24 }
 0x7b6   : > { %v1074_v44 = vpop.xlane.xlu1 %1073 }
 0x7b7   : > { %v1075_v45 = vmax.f32 %v1074_v44, 1e-30  ;;  %v1139_v44 = vsub.s32 3, %v2080_v30 }
 0x7b9   : > { %1816 = vrsqrt.f32 %v1075_v45 }
 0x7c3   : > { %v1817_v46 = vpop.eup %1816 }
 0x7c4   : > { %v1077_v47 = vmul.f32 %v1817_v46, %v1075_v45  ;;  %v1135_v45 = vrot.slane %v2085_v32, %v1134_v43  ;;  %v1562_v32 = vld [vmem:[%s2323_s7] ss:$0 sm:$0xff] }
 0x7c6   : > { %1818 = vtanh.f32 %v1077_v47 }
 0x7d0   : > { %v1819_v48 = vpop.eup %1818 }
 0x7d1   : > { %v1079_v49 = vmul.f32 %v1819_v48, %v1817_v46  ;;  %v1140_v48 = vrot.slane %v2082_v31, %v1139_v44 }
 0x7d3   : > { %v1080_v50 = vmul.f32 %v1079_v49, %v1070_v40 }
 0x7d5   : > { %v1085_v51 = vmul.f32 %v1080_v50, %v2050_v0  ;;  %v1081_v53 = vmul.f32 %v1080_v50, %v1080_v50  ;;  %v1094_v2 = vmul.f32 %v1093_v63, %v1080_v50 }
 0x7d7   : > { %v1086_v52 = vsel %vm430_vm0, %v1085_v51, 0.0  ;;  %v1082_v54 = vsel %vm430_vm0, %v1081_v53, 0.0 }
 0x7d8   : > { %1087 = vadd.xlane.f32.xlu0 %v1086_v52  ;;  %v1789_v52 = vld [vmem:[%s2324_s8 + $0x38] sm:$0xff]  }
 0x7d9   : > { %1708 = vmatpush3.bf16.msra.mxu1 %v1789_v52 }
 0x7dc   : > { %1083 = vadd.xlane.f32.xlu0 %v1082_v54 }
 0x865   : > { %v1088_v55 = vpop.xlane.xlu0 %1087 }
 0x866   : > { %v1089_v56 = vmul.f32 2.0, %v1088_v55 }
 0x868   : > { %v1090_v58 = vadd.f32 1.0, %v1089_v56 }
 0x869   : > { %v1084_v57 = vpop.xlane.xlu0 %1083 }
 0x86a   : > { %v1096_v59 = vmul.f32 %v1084_v57, %v2055_v3  ;;  %v1091_v62 = vadd.f32 %v1090_v58, %v1084_v57 }
 0x86c   : > { %v1097_v60 = vadd.f32 %v1096_v59, %v1090_v58  ;;  %v1092_v1 = vmul.f32 %v1091_v62, %v2050_v0  ;;  %v1323_v59 = vsub.s32 5, %v2080_v30 }
 0x86e   : > { %v1098_v61 = vmax.f32 %v1097_v60, 1e-15  ;;  %v1095_v4 = vadd.f32 %v1094_v2, %v1092_v1  ;;  %v1566_v60 = vld [vmem:[%s2325_s9] ss:$0 sm:$0xff] }
 0x870   : > { %1820 = vrcp.f32 %v1098_v61  ;;  %v1324_v61 = vrot.slane %v2082_v31, %v1323_v59 }
 0x87a   : > { %v1821_v5 = vpop.eup %1820 }
 0x87b   : > { %v2183_v6 = vmul.f32 %v1821_v5, %v1095_v4 }
 0x87d   : > { %v1101_v7 = vmul.f32 %v2183_v6, %v2183_v6 }
 0x87f   : > { %v1102_v8 = vsel %vm430_vm0, %v1101_v7, 0.0 }
 0x880   : > { %1103 = vadd.xlane.f32.xlu0 %v1102_v8 }
 0x90d   : > { %v2188_v9 = vpop.xlane.xlu0 %1103 }
 0x90e   : > { %v1105_v10 = vmax.f32 %v2188_v9, 1e-30 }
 0x910   : > { %1822 = vrsqrt.f32 %v1105_v10 }
 0x91a   : > { %v1823_v11 = vpop.eup %1822 }
 0x91b   : > { %v1107_v3 = vmul.f32 %v1823_v11, %v1105_v10 }
 0x91d   : > { %v1561_v12 = vclamps-f32 %v1107_v3, 0.9999999 }
 0x91f   : > { %v1111_v0 = vsub.f32 1.0, %v1561_v12  ;;  %v1110_v13 = vadd.f32 1.0, %v1561_v12 }
 0x921   : > { %1824 = vrcp.f32 %v1111_v0 }
 0x92b   : > { %v1825_v14 = vpop.eup %1824 }
 0x92c   : > { %v1113_v15 = vmul.f32 %v1825_v14, %v1110_v13 }
 0x92e   : > { %1826 = vlog2.f32 %v1113_v15 }
 0x938   : > { %v1827_v16 = vpop.eup %1826 }
 0x939   : > { %v1115_v17 = vmul.f32 0.6931472, %v1827_v16 }
 0x93b   : > { %v1116_v18 = vmul.f32 0.5, %v1115_v17 }
 0x93d   : > { %v1117_v19 = vmul.f32 %v1823_v11, %v1116_v18 }
 0x93f   : > { %v1118_v20 = vmul.f32 %v1117_v19, %v2183_v6 }
 0x941   : > { %v1119_v21 = vsel %vm430_vm0, %v1118_v20, 0.0 }
 0x942   : > { %1120 = vadd.xlane.f32.xlu1 %v1119_v21 }
 0x9cf   : > { %v1121_v22 = vpop.xlane.xlu1 %1120 }
 0x9d0   : > { %v1122_v23 = vmul.f32 0.03125, %v1121_v22 }
 0x9d2   : > { %v1123_v25 = vsub.f32 %v1118_v20, %v1122_v23 }
 0x9d4   : > { %v1124_v26 = vmul.f32 %v1123_v25, %v1123_v25 }
 0x9d6   : > { %v1125_v27 = vsel %vm430_vm0, %v1124_v26, 0.0  ;;  %v1348_v26 = vsub.f32 1.0, %v2188_v9 }
 0x9d7   : > { %1126 = vadd.xlane.f32.xlu0 %v1125_v27 }
 0xa64   : > { %v1127_v40 = vpop.xlane.xlu0 %1126 }
 0xa65   : > { %v1128_v41 = vmul.f32 0.03125, %v1127_v40 }
 0xa67   : > { %v1129_v42 = vadd.f32 1e-06, %v1128_v41 }
 0xa69   : > { %1828 = vrsqrt.f32 %v1129_v42 }
 0xa73   : > { %v1829_v46 = vpop.eup %1828 }
 0xa74   : > { %v1131_v47 = vmul.f32 %v1829_v46, %v1123_v25 }
 0xa76   : > { %v1136_v49 = vmul.f32 %v1135_v45, %v1131_v47 }
 0xa78   : > { %v1141_v50 = vadd.f32 %v1140_v48, %v1136_v49 }
 0xa7a   : > { %v1142_v51 = vpack.c.bf16 %v1141_v50, %v1141_v50 }
 0xa7c   : > { %1690 = vmatmul.mubr.msk.bf16.vlgmr.msra.gmra.mrb[24].mxu0 %vm430_vm0, %v1142_v51 }
 0xa7d   : > { %1717 = vmatprep.mubr.msk.bf16.mxu0 %vm1911_vm1, %v1910_v24  ;;  %1714 = vmatpush3.bf16.msra.mxu0 %v1790_v37 }
 0xa7e   : > { %1715 = vmatprep.subr.bf16.mxu0 %v1910_v24  ;;  %v1576_v24 = vld [vmem:[%s2327_s11] ss:$0 sm:$0xff] }
 0xa81   : > { %1716 = vmatpush3.bf16.msra.mxu0 %v1791_v38 }
 0xb4f   : > { %v1203_v53 = vpop.f32.mrb[24].mxu0 }
 0xb50   : > { %v1204_v54 = vadd.f32 %v1562_v32, %v1203_v53  ;;  %v1691_v55 = vpop.f32.mrb[25].mxu0 }
 0xb51   : > { %v1206_v56 = vpop.f32.mrb[26].mxu0 }
 0xb52   : > { %v1209_v57 = vpack.c.bf16 %v1204_v54, %v1204_v54  ;;  %v1692_v58 = vpop.f32.mrb[27].mxu0 }
 0xb54   : > { %1710 = vmatmul.mubr.bf16.vlgmr.msra.gmra.mrb[16].mxu1 %v1209_v57 }
 0xc27   : > { %v1315_v62 = vpop.f32.mrb[16].mxu1 }
 0xc28   : > { %v1316_v63 = vadd.f32 %v1566_v60, %v1315_v62  ;;  %v1711_v1 = vpop.f32.mrb[17].mxu1 }
 0xc29   : > { %v1318_v2 = vpop.f32.mrb[18].mxu1 }
 0xc2a   : > { %v1325_v4 = vmul.f32 %v1324_v61, %v1316_v63  ;;  %v1712_v5 = vpop.f32.mrb[19].mxu1 }
 0xc2c   : > { %v1326_v7 = vmul.f32 %v1325_v4, %v1325_v4 }
 0xc2e   : > { %v1327_v8 = vsel %vm430_vm0, %v1326_v7, 0.0 }
 0xc2f   : > { %1328 = vadd.xlane.f32.xlu1 %v1327_v8 }
 0xcbc   : > { %v1329_v10 = vpop.xlane.xlu1 %1328 }
 0xcbd   : > { %v1330_v11 = vmax.f32 %v1329_v10, 1e-30 }
 0xcbf   : > { %1830 = vrsqrt.f32 %v1330_v11 }
 0xcc9   : > { %v1831_v30 = vpop.eup %1830 }
 0xcca   : > { %v1332_v3 = vmul.f32 %v1831_v30, %v1330_v11 }
 0xccc   : > { %1832 = vtanh.f32 %v1332_v3 }
 0xcd6   : > { %v1833_v12 = vpop.eup %1832 }
 0xcd7   : > { %v1334_v0 = vmul.f32 %v1833_v12, %v1831_v30 }
 0xcd9   : > { %v1335_v13 = vmul.f32 %v1334_v0, %v1325_v4 }
 0xcdb   : > { %v1340_v31 = vmul.f32 %v1335_v13, %v2183_v6  ;;  %v1336_v14 = vmul.f32 %v1335_v13, %v1335_v13  ;;  %v1349_v28 = vmul.f32 %v1348_v26, %v1335_v13 }
 0xcdd   : > { %v1341_v15 = vsel %vm430_vm0, %v1340_v31, 0.0  ;;  %v1337_v16 = vsel %vm430_vm0, %v1336_v14, 0.0 }
 0xcde   : > { %1342 = vadd.xlane.f32.xlu0 %v1341_v15  ;;  %1338 = vadd.xlane.f32.xlu1 %v1337_v16 }
 0xd6b   : > { %v1343_v17 = vpop.xlane.xlu0 %1342  ;;  %v1339_v18 = vpop.xlane.xlu1 %1338 }
 0xd6c   : > { %v1344_v19 = vmul.f32 2.0, %v1343_v17  ;;  %v1351_v21 = vmul.f32 %v1339_v18, %v2188_v9 }
 0xd6e   : > { %v1345_v20 = vadd.f32 1.0, %v1344_v19 }
 0xd70   : > { %v1352_v22 = vadd.f32 %v1351_v21, %v1345_v20  ;;  %v1346_v25 = vadd.f32 %v1345_v20, %v1339_v18 }
 0xd72   : > { %v1353_v23 = vmax.f32 %v1352_v22, 1e-15  ;;  %v1347_v27 = vmul.f32 %v1346_v25, %v2183_v6 }
 0xd74   : > { %1834 = vrcp.f32 %v1353_v23  ;;  %v1350_v29 = vadd.f32 %v1349_v28, %v1347_v27 }
 0xd7e   : > { %v1835_v33 = vpop.eup %1834 }
 0xd7f   : > { %v1355_v34 = vmul.f32 %v1835_v33, %v1350_v29 }
 0xd81   : > { %v1356_v35 = vmul.f32 %v1355_v34, %v1355_v34 }
 0xd83   : > { %v1357_v36 = vsel %vm430_vm0, %v1356_v35, 0.0 }
 0xd84   : > { %1358 = vadd.xlane.f32.xlu0 %v1357_v36 }
 0xe11   : > { %v1359_v6 = vpop.xlane.xlu0 %1358 }
 0xe12   : > { %v1360_v9 = vmax.f32 %v1359_v6, 1e-30 }
 0xe14   : > { %1836 = vrsqrt.f32 %v1360_v9 }
 0xe1e   : > { %v1837_v39 = vpop.eup %1836 }
 0xe1f   : > { %v1362_v40 = vmul.f32 %v1837_v39, %v1360_v9 }
 0xe21   : > { %v1575_v41 = vclamps-f32 %v1362_v40, 0.9999999 }
 0xe23   : > { %v1366_v42 = vsub.f32 1.0, %v1575_v41  ;;  %v1365_v43 = vadd.f32 1.0, %v1575_v41 }
 0xe25   : > { %1838 = vrcp.f32 %v1366_v42 }
 0xe2f   : > { %v1839_v44 = vpop.eup %1838 }
 0xe30   : > { %v1368_v45 = vmul.f32 %v1839_v44, %v1365_v43 }
 0xe32   : > { %1840 = vlog2.f32 %v1368_v45 }
 0xe3c   : > { %v1841_v46 = vpop.eup %1840 }
 0xe3d   : > { %v1370_v47 = vmul.f32 0.6931472, %v1841_v46 }
 0xe3f   : > { %v1371_v48 = vmul.f32 0.5, %v1370_v47 }
 0xe41   : > { %v1372_v49 = vmul.f32 %v1837_v39, %v1371_v48 }
 0xe43   : > { %v1373_v50 = vmul.f32 %v1372_v49, %v1355_v34 }
 0xe45   : > { %v1374_v51 = vpack.c.bf16 %v1373_v50, %v1373_v50 }
 0xe47   : > { %1718 = vmatmul.mubr.msk.bf16.vlgmr.msra.gmra.mrb[28].mxu0 %vm430_vm0, %v1374_v51 }
 0xf1a   : > { %v1435_v52 = vpop.f32.mrb[28].mxu0 }
 0xf1b   : > { %v1436_v32 = vadd.f32 %v1576_v24, %v1435_v52  ;;  %v1719_v53 = vpop.f32.mrb[29].mxu0 }
 0xf1c   : > { %v1438_v54 = vpop.f32.mrb[30].mxu0 }
 0xf1d   : > { %v1720_v55 = vpop.f32.mrb[31].mxu0  ;;  %v1441_v56 = vmul.f32 %v1436_v32, %v1436_v32 }
 0xf1f   : > { %v1442_v57 = vsel %vm430_vm0, %v1441_v56, 0.0 }
 0xf20   : > { %1443 = vadd.xlane.f32.xlu1 %v1442_v57 }
 0xfad   : > { %v1444_v58 = vpop.xlane.xlu1 %1443 }
 0xfae   : > { %v1445_v59 = vmax.f32 %v1444_v58, 1e-30 }
 0xfb0   : > { %1842 = vrsqrt.f32 %v1445_v59 }
 0xfba   : > { %v1843_v60 = vpop.eup %1842 }
 0xfbb   : > { %v1447_v61 = vmul.f32 %v1843_v60, %v1445_v59 }
 0xfbd   : > { %1844 = vtanh.f32 %v1447_v61 }
 0xfc7   : > { %v1845_v62 = vpop.eup %1844 }
 0xfc8   : > { %v1449_v63 = vmul.f32 %v1845_v62, %v1843_v60 }
 0xfca   : > { %v1450_v1 = vmul.f32 %v1449_v63, %v1436_v32 }
 0xfcc   : > { %1451 = vst.msk [vmem:[%s417_s16] sm:$0xff] %vm430_vm0, %v1450_v1 }
 0xfcd   : > { %1859 = shalt.err (!%p1856_p3)
}
 0xfce   : > { %s1860_s18 = scalar_lea.hbm %s2273_s29, 128  ;;  %s1864_s26 = scalar_lea.hbm %s2328_s12, 256 }
 0xfcf   : > { %p1861_p4 = scmp.ne.s32.totalorder %s2273_s29, %s1860_s18  ;;  %p1865_p9 = scmp.lt.u32.totalorder %s2273_s29, %s2328_s12 }
 0xfd0   : > { %p1866_p10 = scmp.lt.u32.totalorder %s1864_s26, %s1860_s18  ;;  %p1868_p12 = scmp.lt.u32.totalorder %s1860_s18, %s2273_s29 }
 0xfd1   : > { %p1862_p7 = pnand %p1861_p4, %p2030_p5 }
 0xfd2   : > { %p1867_p11 = por %p1866_p10, %p1865_p9 }
 0xfd3   : > { %p1863_p8 = pneg %p1862_p7 }
 0xfd4   : > { %p1869_p13 = por %p1868_p12, %p1867_p11 }
 0xfd6   : > { %p1870_p0 = pnand %p1869_p13, %p1863_p8 }
 0xfd8   : > { %1873 = shalt.err (!%p1870_p0)
}
 0xfd9   : > { %1721 = dma.vmem_to_hbm [thread:$0]  (%p2030_p5), %s2275_s20, 128, %s2273_s29, %s1453_s17  }
 0xfda PF: > { %p1727_p1 = scmp.ge.s32.totalorder %s1908_s24, 2  ;;  %s1478_s0 = sand.u32 1, %s1896_s21  }
 0xfdb   : > { %s1479_s1 = scalar_lea.sflag [#allocation3], %s1478_s0 }
 0xfdc   : > { %p1724_p2 = pnand %p1727_p1, %p2034_p6 }
 0xfde   : > { %1891 = dma.done.wait (!%p1724_p2), %s1479_s1, 128  }
 0xfdf   : > { %1893 = vsyncadd (!%p1724_p2), %s1479_s1, 4294967168  ;;  %p22_p3 = scmp.ge.s32.totalorder %s2017_s27, 4   ;;  %s2335_s21 = smov %s1900_s22 }
 0xfe0   : > { %s2336_s22 = smov %s1904_s23  ;;  %s2337_s23 = smov %s2028_s30 }
 0xfe1   : > { %s2338_s24 = smov %s2017_s27  ;;  %24 = sbr.rel (!%p22_p3) target bundleno = 6 (0x6), region = 106 }
 0xfe8   :  { %1484 = vsyncpa [#allocation3], 1 }
 0xfe9   :  { %1486 = vsyncpa [#allocation3 + $0x1], 1 }

</bundles_post_ra>
